<compile_context>
chip_gen: v7x
topology: tpu7x:2x2x1
jax: 0.10.0
libtpu: 0.0.40
codegen_flags: <defaults>
</compile_context>

<pallas_src>
import functools
import math

import jax
import jax.numpy as jnp
from jax.experimental import pallas as pl
from jax.experimental.pallas import tpu as pltpu

# ----------------------------- configuration --------------------------------
S_CLIPS  = 6      # source sequence length (number of clips)
C_IN     = 4      # clip input channels
T_CLIP   = 4      # clip frames
HW       = 8      # clip spatial size (H == W)
K3       = 3      # 3D conv kernel size (padding 1, stride 1)
C_CONV   = 8      # 3D conv output channels
D_MODEL  = 32
N_HEADS  = 4
D_HEAD   = D_MODEL // N_HEADS
D_FF     = 64
N_LAYERS = 2
VOCAB    = 16
T_TGT    = 8
EPS      = 1e-6
LOC      = T_CLIP * HW * HW          # conv output positions per clip (256)
PATCH    = C_IN * K3 ** 3            # im2col patch length (108)
SCALE    = 1.0 / math.sqrt(D_HEAD)
NEG_BIG  = 1e9
LANES    = 128
CONV_BF16 = True                      # bf16 MXU operands for the conv matmul only

# Whole-array-in-VMEM BlockSpec (everything here is tiny, no tiling needed).
_VMEM = functools.partial(pl.BlockSpec, memory_space=pltpu.MemorySpace.VMEM)


# --------------------- static parameter-blob layout --------------------------
def _attn_entries(prefix):
    return [(prefix + "wqkv", (D_MODEL, 3 * D_MODEL)),
            (prefix + "bqkv", (1, 3 * D_MODEL)),
            (prefix + "wo",   (D_MODEL, D_MODEL)),
            (prefix + "bo",   (1, D_MODEL))]


def _ffn_entries(prefix):
    return [(prefix + "w1", (D_MODEL, D_FF)), (prefix + "b1", (1, D_FF)),
            (prefix + "w2", (D_FF, D_MODEL)), (prefix + "b2", (1, D_MODEL))]


def _ln_entries(name):
    return [(name + "_g", (1, D_MODEL)), (name + "_b", (1, D_MODEL))]


def _param_layout():
    entries = [("cnn_w_conv", (C_CONV, PATCH)),     # Conv3d weight.reshape(Cout, Cin*k^3)
               ("cnn_b_conv", (C_CONV, 1)),         # per-channel bias as a column
               ("cnn_w_proj", (C_CONV, D_MODEL)),
               ("cnn_b_proj", (1, D_MODEL))]
    for l in range(N_LAYERS):
        p = f"enc{l}_"
        entries += _ln_entries(p + "ln1") + _attn_entries(p)
        entries += _ln_entries(p + "ln2") + _ffn_entries(p)
    entries += _ln_entries("enc_ln")
    for l in range(N_LAYERS):
        p = f"dec{l}_"
        entries += _ln_entries(p + "ln1") + _attn_entries(p)          # self attn
        entries += _ln_entries(p + "ln2") + _attn_entries(p + "c")    # cross attn
        entries += _ln_entries(p + "ln3") + _ffn_entries(p)
    entries += _ln_entries("dec_ln")
    return entries


_LAYOUT = _param_layout()
_OFFSETS = {}
_row = 0
for _name, (_r, _c) in _LAYOUT:
    _OFFSETS[_name] = _row
    _row += -(-_r // 8) * 8           # 8-row (sublane tile) aligned blocks
_BLOB_ROWS = _row                     # 1152 rows -> 576 KiB f32 blob

# Per-call "data" blob layout (one small DMA for xt / sbias / tbias).
_XT_ROW, _SB_ROW, _TB_ROW, _DATA_ROWS = 0, 8, 16, 24


# ------------------------------ fused kernel ---------------------------------
def _fused_model_kernel(blob_ref, patches_ref, data_ref, out_ref):
    """cnn3d -> transformer encoder -> transformer decoder, all in one kernel."""
    f32 = jnp.float32
    D = D_MODEL

    def P(name, rows, cols):          # static-offset slice of the packed param blob
        off = _OFFSETS[name]
        return blob_ref[off:off + rows, 0:cols]

    def dotf(a, b):                   # (..., K) x (K, N) matmul on MXU, f32 accum
        return jax.lax.dot_general(a, b, (((a.ndim - 1,), (0,)), ((), ())),
                                   preferred_element_type=f32)

    def dot_qkT(a, b):                # (Tq, d) x (Tk, d) -> (Tq, Tk)
        return jax.lax.dot_general(a, b, (((1,), (1,)), ((), ())),
                                   preferred_element_type=f32)

    def layer_norm(x, name):
        g = P(name + "_g", 1, D)
        b = P(name + "_b", 1, D)
        m = jnp.mean(x, axis=-1, keepdims=True)
        c = x - m
        v = jnp.mean(c * c, axis=-1, keepdims=True)
        return c * jax.lax.rsqrt(v + EPS) * g + b

    def softmax_rows(s):
        s = s - jnp.max(s, axis=-1, keepdims=True)
        e = jnp.exp(s)
        return e * pl.reciprocal(jnp.sum(e, axis=-1, keepdims=True), approx=True)

    def mha(x_q, x_kv, bias, prefix, cross):
        # One contiguous load of the fused (D, 3D) QKV weight; single fused
        # projection for self-attention (Q-only + KV-only for cross-attention).
        wqkv = P(prefix + "wqkv", D, 3 * D)
        bqkv = P(prefix + "bqkv", 1, 3 * D)
        if cross:
            q = dotf(x_q, wqkv[:, :D]) + bqkv[:, :D]
            kv = dotf(x_kv, wqkv[:, D:]) + bqkv[:, D:]
            k, v = kv[:, :D], kv[:, D:]
        else:
            qkv = dotf(x_q, wqkv) + bqkv
            q, k, v = qkv[:, :D], qkv[:, D:2 * D], qkv[:, 2 * D:]
        ctx = []
        for h in range(N_HEADS):
            lo, hi = h * D_HEAD, (h + 1) * D_HEAD
            p = softmax_rows(dot_qkT(q[:, lo:hi], k[:, lo:hi]) * SCALE + bias)
            ctx.append(dotf(p, v[:, lo:hi]))
        ctx = jnp.concatenate(ctx, axis=-1)       # (Tq, D): one output projection
        return dotf(ctx, P(prefix + "wo", D, D)) + P(prefix + "bo", 1, D)

    def ffn(y, prefix):
        h = jnp.maximum(dotf(y, P(prefix + "w1", D, D_FF)) + P(prefix + "b1", 1, D_FF), 0.0)
        return dotf(h, P(prefix + "w2", D_FF, D)) + P(prefix + "b2", 1, D)

    # ---- cnn3d: conv-as-matmul (lane-dense), ReLU, per-clip mean-pool, proj ----
    pt = patches_ref[...]                                    # (PATCH, S*LOC) bf16/f32
    wc = P("cnn_w_conv", C_CONV, PATCH).astype(pt.dtype)
    conv_t = jax.lax.dot_general(wc, pt, (((1,), (0,)), ((), ())),
                                 preferred_element_type=f32)          # (8, 1536)
    conv_t = jnp.maximum(conv_t + P("cnn_b_conv", C_CONV, 1), 0.0)
    cols = []
    for s in range(S_CLIPS):                                  # lane-aligned segment sums
        cols.append(jnp.sum(conv_t[:, s * LOC:(s + 1) * LOC], axis=1, keepdims=True))
    pooled_t = jnp.concatenate(cols, axis=1) * (1.0 / LOC)    # (C_CONV, S)
    x = jax.lax.dot_general(pooled_t, P("cnn_w_proj", C_CONV, D),
                            (((0,), (0,)), ((), ())),
                            preferred_element_type=f32) + P("cnn_b_proj", 1, D)  # (S, D)

    sbias = data_ref[_SB_ROW:_SB_ROW + 1, 0:S_CLIPS]          # (1, S) additive bias

    # ------------------------------- encoder ---------------------------------
    for l in range(N_LAYERS):
        p = f"enc{l}_"
        y = layer_norm(x, p + "ln1")
        x = x + mha(y, y, sbias, p, cross=False)
        y = layer_norm(x, p + "ln2")
        x = x + ffn(y, p)
    memory = layer_norm(x, "enc_ln")                          # (S, D)

    # ------------------------------- decoder ---------------------------------
    x = data_ref[_XT_ROW:_XT_ROW + T_TGT, 0:D]                # embedded tgt + PE
    tbias = data_ref[_TB_ROW:_TB_ROW + T_TGT, 0:T_TGT]        # (T, T) causal bias
    for l in range(N_LAYERS):
        p = f"dec{l}_"
        y = layer_norm(x, p + "ln1")
        x = x + mha(y, y, tbias, p, cross=False)
        y = layer_norm(x, p + "ln2")
        x = x + mha(y, memory, sbias, p + "c", cross=True)
        y = layer_norm(x, p + "ln3")
        x = x + ffn(y, p)

    out_ref[...] = layer_norm(x, "dec_ln").astype(out_ref.dtype)


# ------------------------------ wrapper glue ----------------------------------
def im2col_3d_transposed(x, k=K3, pad=1):
    """x: (S, C, T, H, W) -> (C*k^3, S*T*H*W), row = c*27 + ((dt*k+dh)*k+dw).

    Same column order as torch Conv3d weight.reshape(Cout, Cin*k^3); the output is
    already transposed to the lane-dense layout the kernel wants.
    """
    s, c, t, h, w = x.shape
    xp = jnp.pad(x, ((0, 0), (0, 0), (pad, pad), (pad, pad), (pad, pad)))
    cols = []
    for dt in range(k):
        for dh in range(k):
            for dw in range(k):
                cols.append(xp[:, :, dt:dt + t, dh:dh + h, dw:dw + w])
    pat = jnp.stack(cols, axis=2)                 # (S, C, 27, T, H, W)
    pat = pat.transpose(1, 2, 0, 3, 4, 5)         # (C, 27, S, T, H, W)
    return pat.reshape(c * k * k * k, s * t * h * w)


def make_pe(max_len, d):
    pos = jnp.arange(max_len, dtype=jnp.float32)[:, None]
    div = jnp.exp(jnp.arange(0, d, 2, dtype=jnp.float32) * (-math.log(10000.0) / d))
    pe = jnp.zeros((max_len, d), jnp.float32)
    pe = pe.at[:, 0::2].set(jnp.sin(pos * div))
    pe = pe.at[:, 1::2].set(jnp.cos(pos * div))
    return pe


def encoder_decoder_forward(blob, tgt_embed, src, tgt, src_mask, tgt_mask):
    t_tgt = tgt.shape[0]

    # im2col patch extraction (plain-JAX glue), lane-dense transposed layout.
    patches_t = im2col_3d_transposed(src)
    if CONV_BF16:
        patches_t = patches_t.astype(jnp.bfloat16)   # halves the biggest input DMA

    # target embedding + positional encoding (gather stays as plain-JAX glue).
    xt = jnp.take(tgt_embed["emb"], tgt, axis=0) * math.sqrt(D_MODEL)
    xt = xt + tgt_embed["pe"][:t_tgt]

    # additive attention-bias masks (1 -> 0, 0 -> -1e9) packed with xt into ONE
    # small (24, 128) blob -> a single DMA instead of three.
    sbias = (src_mask.astype(jnp.float32) - 1.0) * NEG_BIG        # (1, S)
    tbias = (tgt_mask.astype(jnp.float32) - 1.0) * NEG_BIG        # (T, T)
    data = jnp.zeros((_DATA_ROWS, LANES), jnp.float32)
    data = data.at[_XT_ROW:_XT_ROW + t_tgt, :D_MODEL].set(xt)
    data = data.at[_SB_ROW:_SB_ROW + 1, :sbias.shape[1]].set(sbias)
    data = data.at[_TB_ROW:_TB_ROW + t_tgt, :t_tgt].set(tbias)

    return pl.pallas_call(
        _fused_model_kernel,
        out_shape=jax.ShapeDtypeStruct((t_tgt, D_MODEL), jnp.float32),
        in_specs=[_VMEM(), _VMEM(), _VMEM()],
        out_specs=_VMEM(),
    )(blob, patches_t, data)


# ------------------------------ parameter handling ----------------------------
def init_params(key):
    kit = iter(jax.random.split(key, 128))

    def nrm(shape, scale=0.05):
        return scale * jax.random.normal(next(kit), shape, jnp.float32)

    def zeros(shape):
        return jnp.zeros(shape, jnp.float32)

    def ones(shape):
        return jnp.ones(shape, jnp.float32)

    D, F = D_MODEL, D_FF

    def attn():
        return dict(wq=nrm((D, D)), bq=zeros((D,)), wk=nrm((D, D)), bk=zeros((D,)),
                    wv=nrm((D, D)), bv=zeros((D,)), wo=nrm((D, D)), bo=zeros((D,)))

    def enc_layer():
        return dict(ln1_g=ones((D,)), ln1_b=zeros((D,)), self_attn=attn(),
                    ln2_g=ones((D,)), ln2_b=zeros((D,)),
                    w1=nrm((D, F)), b1=zeros((F,)), w2=nrm((F, D)), b2=zeros((D,)))

    def dec_layer():
        return dict(ln1_g=ones((D,)), ln1_b=zeros((D,)), self_attn=attn(),
                    ln2_g=ones((D,)), ln2_b=zeros((D,)), cross_attn=attn(),
                    ln3_g=ones((D,)), ln3_b=zeros((D,)),
                    w1=nrm((D, F)), b1=zeros((F,)), w2=nrm((F, D)), b2=zeros((D,)))

    return dict(
        cnn=dict(w_conv=nrm((C_CONV, C_IN, K3, K3, K3)), b_conv=zeros((C_CONV,)),
                 w_proj=nrm((C_CONV, D)), b_proj=zeros((D,))),
        encoder=dict(layers=[enc_layer() for _ in range(N_LAYERS)],
                     ln_g=ones((D,)), ln_b=zeros((D,))),
        decoder=dict(layers=[dec_layer() for _ in range(N_LAYERS)],
                     ln_g=ones((D,)), ln_b=zeros((D,))),
        tgt_embed=dict(emb=jax.random.normal(next(kit), (VOCAB, D), jnp.float32),
                       pe=make_pe(64, D)),
        # NOTE: generator / src_embed exist in the PyTorch __init__ but are never
        # called inside forward(), so they carry no parameters here.
    )


def pack_params(params):
    """Flatten all weights into one (rows, 128) lane-padded f32 blob (done once)."""
    flat = {}
    cnn = params["cnn"]
    flat["cnn_w_conv"] = cnn["w_conv"].reshape(C_CONV, PATCH)
    flat["cnn_b_conv"] = cnn["b_conv"].reshape(C_CONV, 1)
    flat["cnn_w_proj"] = cnn["w_proj"]
    flat["cnn_b_proj"] = cnn["b_proj"].reshape(1, D_MODEL)

    def put_ln(name, g, b):
        flat[name + "_g"] = g.reshape(1, -1)
        flat[name + "_b"] = b.reshape(1, -1)

    def put_attn(prefix, a):
        flat[prefix + "wqkv"] = jnp.concatenate([a["wq"], a["wk"], a["wv"]], axis=1)
        flat[prefix + "bqkv"] = jnp.concatenate(
            [a["bq"], a["bk"], a["bv"]]).reshape(1, 3 * D_MODEL)
        flat[prefix + "wo"] = a["wo"]
        flat[prefix + "bo"] = a["bo"].reshape(1, D_MODEL)

    def put_ffn(prefix, lay):
        flat[prefix + "w1"] = lay["w1"]
        flat[prefix + "b1"] = lay["b1"].reshape(1, -1)
        flat[prefix + "w2"] = lay["w2"]
        flat[prefix + "b2"] = lay["b2"].reshape(1, -1)

    for l, lay in enumerate(params["encoder"]["layers"]):
        p = f"enc{l}_"
        put_ln(p + "ln1", lay["ln1_g"], lay["ln1_b"])
        put_attn(p, lay["self_attn"])
        put_ln(p + "ln2", lay["ln2_g"], lay["ln2_b"])
        put_ffn(p, lay)
    put_ln("enc_ln", params["encoder"]["ln_g"], params["encoder"]["ln_b"])

    for l, lay in enumerate(params["decoder"]["layers"]):
        p = f"dec{l}_"
        put_ln(p + "ln1", lay["ln1_g"], lay["ln1_b"])
        put_attn(p, lay["self_attn"])
        put_ln(p + "ln2", lay["ln2_g"], lay["ln2_b"])
        put_attn(p + "c", lay["cross_attn"])
        put_ln(p + "ln3", lay["ln3_g"], lay["ln3_b"])
        put_ffn(p, lay)
    put_ln("dec_ln", params["decoder"]["ln_g"], params["decoder"]["ln_b"])

    blob = jnp.zeros((_BLOB_ROWS, LANES), jnp.float32)
    for name, (r, c) in _LAYOUT:
        a = jnp.asarray(flat[name], jnp.float32)
        assert a.shape == (r, c), (name, a.shape, (r, c))
        blob = blob.at[_OFFSETS[name]:_OFFSETS[name] + r, :c].set(a)
    return blob


# ----------------------------------- main -------------------------------------
if __name__ == "__main__":
    root = jax.random.PRNGKey(0)
    k_param, k_src, k_tgt = jax.random.split(root, 3)

    params = init_params(k_param)
    blob = pack_params(params)                     # one-time parameter packing
    tgt_embed = params["tgt_embed"]

    src = jax.random.normal(k_src, (S_CLIPS, C_IN, T_CLIP, HW, HW), jnp.float32)
    tgt = jax.random.randint(k_tgt, (T_TGT,), 0, VOCAB)
    src_mask = jnp.ones((1, S_CLIPS), jnp.float32)
    tgt_mask = jnp.tril(jnp.ones((T_TGT, T_TGT), jnp.float32))   # subsequent mask

    fwd = jax.jit(encoder_decoder_forward)
    out = fwd(blob, tgt_embed, src, tgt, src_mask, tgt_mask)
    jax.block_until_ready(out)

    assert out.shape == (T_TGT, D_MODEL), out.shape
    assert bool(jnp.all(jnp.isfinite(out)))
    print("KERNEL_OK")
</pallas_src>

<mosaic_0001>
module attributes {stable_mosaic.version = 11 : i64} {
  func.func @_fused_model_kernel(%arg0: memref<1152x128xf32, #tpu.memory_space<vmem>>, %arg1: memref<108x1536xbf16, #tpu.memory_space<vmem>>, %arg2: memref<24x128xf32, #tpu.memory_space<vmem>>, %arg3: memref<8x32xf32, #tpu.memory_space<vmem>>) attributes {dimension_semantics = [], scalar_prefetch = 0 : i64, scratch_operands = 0 : i64, tpu.core_type = #tpu.core_type<tc>} {
    %c0 = arith.constant 0 : index
    %c0_0 = arith.constant 0 : index
    %0 = vector.load %arg1[%c0, %c0_0] : memref<108x1536xbf16, #tpu.memory_space<vmem>>, vector<108x1536xbf16>
    %c0_1 = arith.constant 0 : index
    %c0_2 = arith.constant 0 : index
    %1 = vector.load %arg0[%c0_1, %c0_2] : memref<1152x128xf32, #tpu.memory_space<vmem>>, vector<8x108xf32>
    %2 = arith.truncf %1 : vector<8x108xf32> to vector<8x108xbf16>
    %cst = arith.constant dense<0.000000e+00> : vector<8x1536xf32>
    %3 = tpu.matmul %2, %0, %cst {dimension_numbers = #tpu.dot_dimension_numbers<[1], [0], [0], [1], [0, 0, 1, 1], [], []>} : vector<8x108xbf16>, vector<108x1536xbf16>, vector<8x1536xf32> -> vector<8x1536xf32>
    %c8 = arith.constant 8 : index
    %c0_3 = arith.constant 0 : index
    %4 = vector.load %arg0[%c8, %c0_3] : memref<1152x128xf32, #tpu.memory_space<vmem>>, vector<8x1xf32>
    %5 = vector.broadcast %4 : vector<8x1xf32> to vector<8x1536xf32>
    %6 = arith.addf %3, %5 : vector<8x1536xf32>
    %cst_4 = arith.constant 0.000000e+00 : f32
    %7 = vector.broadcast %cst_4 : f32 to vector<8x1536xf32>
    %8 = arith.maximumf %6, %7 : vector<8x1536xf32>
    %9 = vector.extract_strided_slice %8 {offsets = [0, 0], sizes = [8, 256], strides = [1, 1]} : vector<8x1536xf32> to vector<8x256xf32>
    %cst_5 = arith.constant dense<0.000000e+00> : vector<8xf32>
    %10 = vector.multi_reduction <add>, %9, %cst_5 [1] : vector<8x256xf32> to vector<8xf32>
    %11 = vector.shape_cast %10 : vector<8xf32> to vector<8x1xf32>
    %12 = vector.extract_strided_slice %8 {offsets = [0, 256], sizes = [8, 256], strides = [1, 1]} : vector<8x1536xf32> to vector<8x256xf32>
    %cst_6 = arith.constant dense<0.000000e+00> : vector<8xf32>
    %13 = vector.multi_reduction <add>, %12, %cst_6 [1] : vector<8x256xf32> to vector<8xf32>
    %14 = vector.shape_cast %13 : vector<8xf32> to vector<8x1xf32>
    %15 = vector.extract_strided_slice %8 {offsets = [0, 512], sizes = [8, 256], strides = [1, 1]} : vector<8x1536xf32> to vector<8x256xf32>
    %cst_7 = arith.constant dense<0.000000e+00> : vector<8xf32>
    %16 = vector.multi_reduction <add>, %15, %cst_7 [1] : vector<8x256xf32> to vector<8xf32>
    %17 = vector.shape_cast %16 : vector<8xf32> to vector<8x1xf32>
    %18 = vector.extract_strided_slice %8 {offsets = [0, 768], sizes = [8, 256], strides = [1, 1]} : vector<8x1536xf32> to vector<8x256xf32>
    %cst_8 = arith.constant dense<0.000000e+00> : vector<8xf32>
    %19 = vector.multi_reduction <add>, %18, %cst_8 [1] : vector<8x256xf32> to vector<8xf32>
    %20 = vector.shape_cast %19 : vector<8xf32> to vector<8x1xf32>
    %21 = vector.extract_strided_slice %8 {offsets = [0, 1024], sizes = [8, 256], strides = [1, 1]} : vector<8x1536xf32> to vector<8x256xf32>
    %cst_9 = arith.constant dense<0.000000e+00> : vector<8xf32>
    %22 = vector.multi_reduction <add>, %21, %cst_9 [1] : vector<8x256xf32> to vector<8xf32>
    %23 = vector.shape_cast %22 : vector<8xf32> to vector<8x1xf32>
    %24 = vector.extract_strided_slice %8 {offsets = [0, 1280], sizes = [8, 256], strides = [1, 1]} : vector<8x1536xf32> to vector<8x256xf32>
    %cst_10 = arith.constant dense<0.000000e+00> : vector<8xf32>
    %25 = vector.multi_reduction <add>, %24, %cst_10 [1] : vector<8x256xf32> to vector<8xf32>
    %26 = vector.shape_cast %25 : vector<8xf32> to vector<8x1xf32>
    %27 = tpu.concatenate %11, %14, %17, %20, %23, %26 in 1 : vector<8x1xf32>, vector<8x1xf32>, vector<8x1xf32>, vector<8x1xf32>, vector<8x1xf32>, vector<8x1xf32> -> vector<8x6xf32>
    %cst_11 = arith.constant 3.906250e-03 : f32
    %28 = vector.broadcast %cst_11 : f32 to vector<8x6xf32>
    %29 = arith.mulf %27, %28 : vector<8x6xf32>
    %c16 = arith.constant 16 : index
    %c0_12 = arith.constant 0 : index
    %30 = vector.load %arg0[%c16, %c0_12] : memref<1152x128xf32, #tpu.memory_space<vmem>>, vector<8x32xf32>
    %cst_13 = arith.constant dense<0.000000e+00> : vector<6x32xf32>
    %31 = tpu.matmul %29, %30, %cst_13 {dimension_numbers = #tpu.dot_dimension_numbers<[0], [0], [1], [1], [0, 1, 1, 1], [], []>} : vector<8x6xf32>, vector<8x32xf32>, vector<6x32xf32> -> vector<6x32xf32>
    %c24 = arith.constant 24 : index
    %c0_14 = arith.constant 0 : index
    %32 = vector.load %arg0[%c24, %c0_14] : memref<1152x128xf32, #tpu.memory_space<vmem>>, vector<1x32xf32>
    %33 = vector.broadcast %32 : vector<1x32xf32> to vector<6x32xf32>
    %34 = arith.addf %31, %33 : vector<6x32xf32>
    %c8_15 = arith.constant 8 : index
    %c0_16 = arith.constant 0 : index
    %35 = vector.load %arg2[%c8_15, %c0_16] : memref<24x128xf32, #tpu.memory_space<vmem>>, vector<1x6xf32>
    %c32 = arith.constant 32 : index
    %c0_17 = arith.constant 0 : index
    %36 = vector.load %arg0[%c32, %c0_17] : memref<1152x128xf32, #tpu.memory_space<vmem>>, vector<1x32xf32>
    %c40 = arith.constant 40 : index
    %c0_18 = arith.constant 0 : index
    %37 = vector.load %arg0[%c40, %c0_18] : memref<1152x128xf32, #tpu.memory_space<vmem>>, vector<1x32xf32>
    %cst_19 = arith.constant dense<0.000000e+00> : vector<6xf32>
    %38 = vector.multi_reduction <add>, %34, %cst_19 [1] : vector<6x32xf32> to vector<6xf32>
    %39 = vector.shape_cast %38 : vector<6xf32> to vector<6x1xf32>
    %cst_20 = arith.constant 3.200000e+01 : f32
    %40 = vector.broadcast %cst_20 : f32 to vector<6x1xf32>
    %41 = arith.divf %39, %40 : vector<6x1xf32>
    %42 = vector.broadcast %41 : vector<6x1xf32> to vector<6x32xf32>
    %43 = arith.subf %34, %42 : vector<6x32xf32>
    %44 = arith.mulf %43, %43 : vector<6x32xf32>
    %cst_21 = arith.constant dense<0.000000e+00> : vector<6xf32>
    %45 = vector.multi_reduction <add>, %44, %cst_21 [1] : vector<6x32xf32> to vector<6xf32>
    %46 = vector.shape_cast %45 : vector<6xf32> to vector<6x1xf32>
    %cst_22 = arith.constant 3.200000e+01 : f32
    %47 = vector.broadcast %cst_22 : f32 to vector<6x1xf32>
    %48 = arith.divf %46, %47 : vector<6x1xf32>
    %cst_23 = arith.constant 9.99999997E-7 : f32
    %49 = vector.broadcast %cst_23 : f32 to vector<6x1xf32>
    %50 = arith.addf %48, %49 : vector<6x1xf32>
    %51 = math.rsqrt %50 : vector<6x1xf32>
    %52 = vector.broadcast %51 : vector<6x1xf32> to vector<6x32xf32>
    %53 = arith.mulf %43, %52 : vector<6x32xf32>
    %54 = vector.broadcast %36 : vector<1x32xf32> to vector<6x32xf32>
    %55 = arith.mulf %53, %54 : vector<6x32xf32>
    %56 = vector.broadcast %37 : vector<1x32xf32> to vector<6x32xf32>
    %57 = arith.addf %55, %56 : vector<6x32xf32>
    %c48 = arith.constant 48 : index
    %c0_24 = arith.constant 0 : index
    %58 = vector.load %arg0[%c48, %c0_24] : memref<1152x128xf32, #tpu.memory_space<vmem>>, vector<32x96xf32>
    %c80 = arith.constant 80 : index
    %c0_25 = arith.constant 0 : index
    %59 = vector.load %arg0[%c80, %c0_25] : memref<1152x128xf32, #tpu.memory_space<vmem>>, vector<1x96xf32>
    %cst_26 = arith.constant dense<0.000000e+00> : vector<6x96xf32>
    %60 = tpu.matmul %57, %58, %cst_26 {dimension_numbers = #tpu.dot_dimension_numbers<[1], [0], [0], [1], [0, 0, 1, 1], [], []>} : vector<6x32xf32>, vector<32x96xf32>, vector<6x96xf32> -> vector<6x96xf32>
    %61 = vector.broadcast %59 : vector<1x96xf32> to vector<6x96xf32>
    %62 = arith.addf %60, %61 : vector<6x96xf32>
    %63 = vector.extract_strided_slice %62 {offsets = [0, 0], sizes = [6, 32], strides = [1, 1]} : vector<6x96xf32> to vector<6x32xf32>
    %64 = vector.extract_strided_slice %62 {offsets = [0, 32], sizes = [6, 32], strides = [1, 1]} : vector<6x96xf32> to vector<6x32xf32>
    %65 = vector.extract_strided_slice %62 {offsets = [0, 64], sizes = [6, 32], strides = [1, 1]} : vector<6x96xf32> to vector<6x32xf32>
    %66 = vector.extract_strided_slice %63 {offsets = [0, 0], sizes = [6, 8], strides = [1, 1]} : vector<6x32xf32> to vector<6x8xf32>
    %67 = vector.extract_strided_slice %64 {offsets = [0, 0], sizes = [6, 8], strides = [1, 1]} : vector<6x32xf32> to vector<6x8xf32>
    %cst_27 = arith.constant dense<0.000000e+00> : vector<6x6xf32>
    %68 = tpu.matmul %66, %67, %cst_27 {dimension_numbers = #tpu.dot_dimension_numbers<[1], [1], [0], [0], [0, 0, 1, 0], [], []>} : vector<6x8xf32>, vector<6x8xf32>, vector<6x6xf32> -> vector<6x6xf32>
    %cst_28 = arith.constant 0.353553385 : f32
    %69 = vector.broadcast %cst_28 : f32 to vector<6x6xf32>
    %70 = arith.mulf %68, %69 : vector<6x6xf32>
    %71 = vector.broadcast %35 : vector<1x6xf32> to vector<6x6xf32>
    %72 = arith.addf %70, %71 : vector<6x6xf32>
    %cst_29 = arith.constant dense<0xFF800000> : vector<6xf32>
    %73 = vector.multi_reduction <maximumf>, %72, %cst_29 [1] : vector<6x6xf32> to vector<6xf32>
    %74 = vector.shape_cast %73 : vector<6xf32> to vector<6x1xf32>
    %75 = vector.broadcast %74 : vector<6x1xf32> to vector<6x6xf32>
    %76 = arith.subf %72, %75 : vector<6x6xf32>
    %77 = math.exp %76 : vector<6x6xf32>
    %cst_30 = arith.constant dense<0.000000e+00> : vector<6xf32>
    %78 = vector.multi_reduction <add>, %77, %cst_30 [1] : vector<6x6xf32> to vector<6xf32>
    %79 = vector.shape_cast %78 : vector<6xf32> to vector<6x1xf32>
    %80 = tpu.reciprocal %79 {approx = true} : vector<6x1xf32> -> vector<6x1xf32>
    %81 = vector.broadcast %80 : vector<6x1xf32> to vector<6x6xf32>
    %82 = arith.mulf %77, %81 : vector<6x6xf32>
    %83 = vector.extract_strided_slice %65 {offsets = [0, 0], sizes = [6, 8], strides = [1, 1]} : vector<6x32xf32> to vector<6x8xf32>
    %cst_31 = arith.constant dense<0.000000e+00> : vector<6x8xf32>
    %84 = tpu.matmul %82, %83, %cst_31 {dimension_numbers = #tpu.dot_dimension_numbers<[1], [0], [0], [1], [0, 0, 1, 1], [], []>} : vector<6x6xf32>, vector<6x8xf32>, vector<6x8xf32> -> vector<6x8xf32>
    %85 = vector.extract_strided_slice %63 {offsets = [0, 8], sizes = [6, 8], strides = [1, 1]} : vector<6x32xf32> to vector<6x8xf32>
    %86 = vector.extract_strided_slice %64 {offsets = [0, 8], sizes = [6, 8], strides = [1, 1]} : vector<6x32xf32> to vector<6x8xf32>
    %cst_32 = arith.constant dense<0.000000e+00> : vector<6x6xf32>
    %87 = tpu.matmul %85, %86, %cst_32 {dimension_numbers = #tpu.dot_dimension_numbers<[1], [1], [0], [0], [0, 0, 1, 0], [], []>} : vector<6x8xf32>, vector<6x8xf32>, vector<6x6xf32> -> vector<6x6xf32>
    %cst_33 = arith.constant 0.353553385 : f32
    %88 = vector.broadcast %cst_33 : f32 to vector<6x6xf32>
    %89 = arith.mulf %87, %88 : vector<6x6xf32>
    %90 = vector.broadcast %35 : vector<1x6xf32> to vector<6x6xf32>
    %91 = arith.addf %89, %90 : vector<6x6xf32>
    %cst_34 = arith.constant dense<0xFF800000> : vector<6xf32>
    %92 = vector.multi_reduction <maximumf>, %91, %cst_34 [1] : vector<6x6xf32> to vector<6xf32>
    %93 = vector.shape_cast %92 : vector<6xf32> to vector<6x1xf32>
    %94 = vector.broadcast %93 : vector<6x1xf32> to vector<6x6xf32>
    %95 = arith.subf %91, %94 : vector<6x6xf32>
    %96 = math.exp %95 : vector<6x6xf32>
    %cst_35 = arith.constant dense<0.000000e+00> : vector<6xf32>
    %97 = vector.multi_reduction <add>, %96, %cst_35 [1] : vector<6x6xf32> to vector<6xf32>
    %98 = vector.shape_cast %97 : vector<6xf32> to vector<6x1xf32>
    %99 = tpu.reciprocal %98 {approx = true} : vector<6x1xf32> -> vector<6x1xf32>
    %100 = vector.broadcast %99 : vector<6x1xf32> to vector<6x6xf32>
    %101 = arith.mulf %96, %100 : vector<6x6xf32>
    %102 = vector.extract_strided_slice %65 {offsets = [0, 8], sizes = [6, 8], strides = [1, 1]} : vector<6x32xf32> to vector<6x8xf32>
    %cst_36 = arith.constant dense<0.000000e+00> : vector<6x8xf32>
    %103 = tpu.matmul %101, %102, %cst_36 {dimension_numbers = #tpu.dot_dimension_numbers<[1], [0], [0], [1], [0, 0, 1, 1], [], []>} : vector<6x6xf32>, vector<6x8xf32>, vector<6x8xf32> -> vector<6x8xf32>
    %104 = vector.extract_strided_slice %63 {offsets = [0, 16], sizes = [6, 8], strides = [1, 1]} : vector<6x32xf32> to vector<6x8xf32>
    %105 = vector.extract_strided_slice %64 {offsets = [0, 16], sizes = [6, 8], strides = [1, 1]} : vector<6x32xf32> to vector<6x8xf32>
    %cst_37 = arith.constant dense<0.000000e+00> : vector<6x6xf32>
    %106 = tpu.matmul %104, %105, %cst_37 {dimension_numbers = #tpu.dot_dimension_numbers<[1], [1], [0], [0], [0, 0, 1, 0], [], []>} : vector<6x8xf32>, vector<6x8xf32>, vector<6x6xf32> -> vector<6x6xf32>
    %cst_38 = arith.constant 0.353553385 : f32
    %107 = vector.broadcast %cst_38 : f32 to vector<6x6xf32>
    %108 = arith.mulf %106, %107 : vector<6x6xf32>
    %109 = vector.broadcast %35 : vector<1x6xf32> to vector<6x6xf32>
    %110 = arith.addf %108, %109 : vector<6x6xf32>
    %cst_39 = arith.constant dense<0xFF800000> : vector<6xf32>
    %111 = vector.multi_reduction <maximumf>, %110, %cst_39 [1] : vector<6x6xf32> to vector<6xf32>
    %112 = vector.shape_cast %111 : vector<6xf32> to vector<6x1xf32>
    %113 = vector.broadcast %112 : vector<6x1xf32> to vector<6x6xf32>
    %114 = arith.subf %110, %113 : vector<6x6xf32>
    %115 = math.exp %114 : vector<6x6xf32>
    %cst_40 = arith.constant dense<0.000000e+00> : vector<6xf32>
    %116 = vector.multi_reduction <add>, %115, %cst_40 [1] : vector<6x6xf32> to vector<6xf32>
    %117 = vector.shape_cast %116 : vector<6xf32> to vector<6x1xf32>
    %118 = tpu.reciprocal %117 {approx = true} : vector<6x1xf32> -> vector<6x1xf32>
    %119 = vector.broadcast %118 : vector<6x1xf32> to vector<6x6xf32>
    %120 = arith.mulf %115, %119 : vector<6x6xf32>
    %121 = vector.extract_strided_slice %65 {offsets = [0, 16], sizes = [6, 8], strides = [1, 1]} : vector<6x32xf32> to vector<6x8xf32>
    %cst_41 = arith.constant dense<0.000000e+00> : vector<6x8xf32>
    %122 = tpu.matmul %120, %121, %cst_41 {dimension_numbers = #tpu.dot_dimension_numbers<[1], [0], [0], [1], [0, 0, 1, 1], [], []>} : vector<6x6xf32>, vector<6x8xf32>, vector<6x8xf32> -> vector<6x8xf32>
    %123 = vector.extract_strided_slice %63 {offsets = [0, 24], sizes = [6, 8], strides = [1, 1]} : vector<6x32xf32> to vector<6x8xf32>
    %124 = vector.extract_strided_slice %64 {offsets = [0, 24], sizes = [6, 8], strides = [1, 1]} : vector<6x32xf32> to vector<6x8xf32>
    %cst_42 = arith.constant dense<0.000000e+00> : vector<6x6xf32>
    %125 = tpu.matmul %123, %124, %cst_42 {dimension_numbers = #tpu.dot_dimension_numbers<[1], [1], [0], [0], [0, 0, 1, 0], [], []>} : vector<6x8xf32>, vector<6x8xf32>, vector<6x6xf32> -> vector<6x6xf32>
    %cst_43 = arith.constant 0.353553385 : f32
    %126 = vector.broadcast %cst_43 : f32 to vector<6x6xf32>
    %127 = arith.mulf %125, %126 : vector<6x6xf32>
    %128 = vector.broadcast %35 : vector<1x6xf32> to vector<6x6xf32>
    %129 = arith.addf %127, %128 : vector<6x6xf32>
    %cst_44 = arith.constant dense<0xFF800000> : vector<6xf32>
    %130 = vector.multi_reduction <maximumf>, %129, %cst_44 [1] : vector<6x6xf32> to vector<6xf32>
    %131 = vector.shape_cast %130 : vector<6xf32> to vector<6x1xf32>
    %132 = vector.broadcast %131 : vector<6x1xf32> to vector<6x6xf32>
    %133 = arith.subf %129, %132 : vector<6x6xf32>
    %134 = math.exp %133 : vector<6x6xf32>
    %cst_45 = arith.constant dense<0.000000e+00> : vector<6xf32>
    %135 = vector.multi_reduction <add>, %134, %cst_45 [1] : vector<6x6xf32> to vector<6xf32>
    %136 = vector.shape_cast %135 : vector<6xf32> to vector<6x1xf32>
    %137 = tpu.reciprocal %136 {approx = true} : vector<6x1xf32> -> vector<6x1xf32>
    %138 = vector.broadcast %137 : vector<6x1xf32> to vector<6x6xf32>
    %139 = arith.mulf %134, %138 : vector<6x6xf32>
    %140 = vector.extract_strided_slice %65 {offsets = [0, 24], sizes = [6, 8], strides = [1, 1]} : vector<6x32xf32> to vector<6x8xf32>
    %cst_46 = arith.constant dense<0.000000e+00> : vector<6x8xf32>
    %141 = tpu.matmul %139, %140, %cst_46 {dimension_numbers = #tpu.dot_dimension_numbers<[1], [0], [0], [1], [0, 0, 1, 1], [], []>} : vector<6x6xf32>, vector<6x8xf32>, vector<6x8xf32> -> vector<6x8xf32>
    %142 = tpu.concatenate %84, %103, %122, %141 in 1 : vector<6x8xf32>, vector<6x8xf32>, vector<6x8xf32>, vector<6x8xf32> -> vector<6x32xf32>
    %c88 = arith.constant 88 : index
    %c0_47 = arith.constant 0 : index
    %143 = vector.load %arg0[%c88, %c0_47] : memref<1152x128xf32, #tpu.memory_space<vmem>>, vector<32x32xf32>
    %cst_48 = arith.constant dense<0.000000e+00> : vector<6x32xf32>
    %144 = tpu.matmul %142, %143, %cst_48 {dimension_numbers = #tpu.dot_dimension_numbers<[1], [0], [0], [1], [0, 0, 1, 1], [], []>} : vector<6x32xf32>, vector<32x32xf32>, vector<6x32xf32> -> vector<6x32xf32>
    %c120 = arith.constant 120 : index
    %c0_49 = arith.constant 0 : index
    %145 = vector.load %arg0[%c120, %c0_49] : memref<1152x128xf32, #tpu.memory_space<vmem>>, vector<1x32xf32>
    %146 = vector.broadcast %145 : vector<1x32xf32> to vector<6x32xf32>
    %147 = arith.addf %144, %146 : vector<6x32xf32>
    %148 = arith.addf %34, %147 : vector<6x32xf32>
    %c128 = arith.constant 128 : index
    %c0_50 = arith.constant 0 : index
    %149 = vector.load %arg0[%c128, %c0_50] : memref<1152x128xf32, #tpu.memory_space<vmem>>, vector<1x32xf32>
    %c136 = arith.constant 136 : index
    %c0_51 = arith.constant 0 : index
    %150 = vector.load %arg0[%c136, %c0_51] : memref<1152x128xf32, #tpu.memory_space<vmem>>, vector<1x32xf32>
    %cst_52 = arith.constant dense<0.000000e+00> : vector<6xf32>
    %151 = vector.multi_reduction <add>, %148, %cst_52 [1] : vector<6x32xf32> to vector<6xf32>
    %152 = vector.shape_cast %151 : vector<6xf32> to vector<6x1xf32>
    %cst_53 = arith.constant 3.200000e+01 : f32
    %153 = vector.broadcast %cst_53 : f32 to vector<6x1xf32>
    %154 = arith.divf %152, %153 : vector<6x1xf32>
    %155 = vector.broadcast %154 : vector<6x1xf32> to vector<6x32xf32>
    %156 = arith.subf %148, %155 : vector<6x32xf32>
    %157 = arith.mulf %156, %156 : vector<6x32xf32>
    %cst_54 = arith.constant dense<0.000000e+00> : vector<6xf32>
    %158 = vector.multi_reduction <add>, %157, %cst_54 [1] : vector<6x32xf32> to vector<6xf32>
    %159 = vector.shape_cast %158 : vector<6xf32> to vector<6x1xf32>
    %cst_55 = arith.constant 3.200000e+01 : f32
    %160 = vector.broadcast %cst_55 : f32 to vector<6x1xf32>
    %161 = arith.divf %159, %160 : vector<6x1xf32>
    %cst_56 = arith.constant 9.99999997E-7 : f32
    %162 = vector.broadcast %cst_56 : f32 to vector<6x1xf32>
    %163 = arith.addf %161, %162 : vector<6x1xf32>
    %164 = math.rsqrt %163 : vector<6x1xf32>
    %165 = vector.broadcast %164 : vector<6x1xf32> to vector<6x32xf32>
    %166 = arith.mulf %156, %165 : vector<6x32xf32>
    %167 = vector.broadcast %149 : vector<1x32xf32> to vector<6x32xf32>
    %168 = arith.mulf %166, %167 : vector<6x32xf32>
    %169 = vector.broadcast %150 : vector<1x32xf32> to vector<6x32xf32>
    %170 = arith.addf %168, %169 : vector<6x32xf32>
    %c144 = arith.constant 144 : index
    %c0_57 = arith.constant 0 : index
    %171 = vector.load %arg0[%c144, %c0_57] : memref<1152x128xf32, #tpu.memory_space<vmem>>, vector<32x64xf32>
    %cst_58 = arith.constant dense<0.000000e+00> : vector<6x64xf32>
    %172 = tpu.matmul %170, %171, %cst_58 {dimension_numbers = #tpu.dot_dimension_numbers<[1], [0], [0], [1], [0, 0, 1, 1], [], []>} : vector<6x32xf32>, vector<32x64xf32>, vector<6x64xf32> -> vector<6x64xf32>
    %c176 = arith.constant 176 : index
    %c0_59 = arith.constant 0 : index
    %173 = vector.load %arg0[%c176, %c0_59] : memref<1152x128xf32, #tpu.memory_space<vmem>>, vector<1x64xf32>
    %174 = vector.broadcast %173 : vector<1x64xf32> to vector<6x64xf32>
    %175 = arith.addf %172, %174 : vector<6x64xf32>
    %cst_60 = arith.constant 0.000000e+00 : f32
    %176 = vector.broadcast %cst_60 : f32 to vector<6x64xf32>
    %177 = arith.maximumf %175, %176 : vector<6x64xf32>
    %c184 = arith.constant 184 : index
    %c0_61 = arith.constant 0 : index
    %178 = vector.load %arg0[%c184, %c0_61] : memref<1152x128xf32, #tpu.memory_space<vmem>>, vector<64x32xf32>
    %cst_62 = arith.constant dense<0.000000e+00> : vector<6x32xf32>
    %179 = tpu.matmul %177, %178, %cst_62 {dimension_numbers = #tpu.dot_dimension_numbers<[1], [0], [0], [1], [0, 0, 1, 1], [], []>} : vector<6x64xf32>, vector<64x32xf32>, vector<6x32xf32> -> vector<6x32xf32>
    %c248 = arith.constant 248 : index
    %c0_63 = arith.constant 0 : index
    %180 = vector.load %arg0[%c248, %c0_63] : memref<1152x128xf32, #tpu.memory_space<vmem>>, vector<1x32xf32>
    %181 = vector.broadcast %180 : vector<1x32xf32> to vector<6x32xf32>
    %182 = arith.addf %179, %181 : vector<6x32xf32>
    %183 = arith.addf %148, %182 : vector<6x32xf32>
    %c256 = arith.constant 256 : index
    %c0_64 = arith.constant 0 : index
    %184 = vector.load %arg0[%c256, %c0_64] : memref<1152x128xf32, #tpu.memory_space<vmem>>, vector<1x32xf32>
    %c264 = arith.constant 264 : index
    %c0_65 = arith.constant 0 : index
    %185 = vector.load %arg0[%c264, %c0_65] : memref<1152x128xf32, #tpu.memory_space<vmem>>, vector<1x32xf32>
    %cst_66 = arith.constant dense<0.000000e+00> : vector<6xf32>
    %186 = vector.multi_reduction <add>, %183, %cst_66 [1] : vector<6x32xf32> to vector<6xf32>
    %187 = vector.shape_cast %186 : vector<6xf32> to vector<6x1xf32>
    %cst_67 = arith.constant 3.200000e+01 : f32
    %188 = vector.broadcast %cst_67 : f32 to vector<6x1xf32>
    %189 = arith.divf %187, %188 : vector<6x1xf32>
    %190 = vector.broadcast %189 : vector<6x1xf32> to vector<6x32xf32>
    %191 = arith.subf %183, %190 : vector<6x32xf32>
    %192 = arith.mulf %191, %191 : vector<6x32xf32>
    %cst_68 = arith.constant dense<0.000000e+00> : vector<6xf32>
    %193 = vector.multi_reduction <add>, %192, %cst_68 [1] : vector<6x32xf32> to vector<6xf32>
    %194 = vector.shape_cast %193 : vector<6xf32> to vector<6x1xf32>
    %cst_69 = arith.constant 3.200000e+01 : f32
    %195 = vector.broadcast %cst_69 : f32 to vector<6x1xf32>
    %196 = arith.divf %194, %195 : vector<6x1xf32>
    %cst_70 = arith.constant 9.99999997E-7 : f32
    %197 = vector.broadcast %cst_70 : f32 to vector<6x1xf32>
    %198 = arith.addf %196, %197 : vector<6x1xf32>
    %199 = math.rsqrt %198 : vector<6x1xf32>
    %200 = vector.broadcast %199 : vector<6x1xf32> to vector<6x32xf32>
    %201 = arith.mulf %191, %200 : vector<6x32xf32>
    %202 = vector.broadcast %184 : vector<1x32xf32> to vector<6x32xf32>
    %203 = arith.mulf %201, %202 : vector<6x32xf32>
    %204 = vector.broadcast %185 : vector<1x32xf32> to vector<6x32xf32>
    %205 = arith.addf %203, %204 : vector<6x32xf32>
    %c272 = arith.constant 272 : index
    %c0_71 = arith.constant 0 : index
    %206 = vector.load %arg0[%c272, %c0_71] : memref<1152x128xf32, #tpu.memory_space<vmem>>, vector<32x96xf32>
    %c304 = arith.constant 304 : index
    %c0_72 = arith.constant 0 : index
    %207 = vector.load %arg0[%c304, %c0_72] : memref<1152x128xf32, #tpu.memory_space<vmem>>, vector<1x96xf32>
    %cst_73 = arith.constant dense<0.000000e+00> : vector<6x96xf32>
    %208 = tpu.matmul %205, %206, %cst_73 {dimension_numbers = #tpu.dot_dimension_numbers<[1], [0], [0], [1], [0, 0, 1, 1], [], []>} : vector<6x32xf32>, vector<32x96xf32>, vector<6x96xf32> -> vector<6x96xf32>
    %209 = vector.broadcast %207 : vector<1x96xf32> to vector<6x96xf32>
    %210 = arith.addf %208, %209 : vector<6x96xf32>
    %211 = vector.extract_strided_slice %210 {offsets = [0, 0], sizes = [6, 32], strides = [1, 1]} : vector<6x96xf32> to vector<6x32xf32>
    %212 = vector.extract_strided_slice %210 {offsets = [0, 32], sizes = [6, 32], strides = [1, 1]} : vector<6x96xf32> to vector<6x32xf32>
    %213 = vector.extract_strided_slice %210 {offsets = [0, 64], sizes = [6, 32], strides = [1, 1]} : vector<6x96xf32> to vector<6x32xf32>
    %214 = vector.extract_strided_slice %211 {offsets = [0, 0], sizes = [6, 8], strides = [1, 1]} : vector<6x32xf32> to vector<6x8xf32>
    %215 = vector.extract_strided_slice %212 {offsets = [0, 0], sizes = [6, 8], strides = [1, 1]} : vector<6x32xf32> to vector<6x8xf32>
    %cst_74 = arith.constant dense<0.000000e+00> : vector<6x6xf32>
    %216 = tpu.matmul %214, %215, %cst_74 {dimension_numbers = #tpu.dot_dimension_numbers<[1], [1], [0], [0], [0, 0, 1, 0], [], []>} : vector<6x8xf32>, vector<6x8xf32>, vector<6x6xf32> -> vector<6x6xf32>
    %cst_75 = arith.constant 0.353553385 : f32
    %217 = vector.broadcast %cst_75 : f32 to vector<6x6xf32>
    %218 = arith.mulf %216, %217 : vector<6x6xf32>
    %219 = vector.broadcast %35 : vector<1x6xf32> to vector<6x6xf32>
    %220 = arith.addf %218, %219 : vector<6x6xf32>
    %cst_76 = arith.constant dense<0xFF800000> : vector<6xf32>
    %221 = vector.multi_reduction <maximumf>, %220, %cst_76 [1] : vector<6x6xf32> to vector<6xf32>
    %222 = vector.shape_cast %221 : vector<6xf32> to vector<6x1xf32>
    %223 = vector.broadcast %222 : vector<6x1xf32> to vector<6x6xf32>
    %224 = arith.subf %220, %223 : vector<6x6xf32>
    %225 = math.exp %224 : vector<6x6xf32>
    %cst_77 = arith.constant dense<0.000000e+00> : vector<6xf32>
    %226 = vector.multi_reduction <add>, %225, %cst_77 [1] : vector<6x6xf32> to vector<6xf32>
    %227 = vector.shape_cast %226 : vector<6xf32> to vector<6x1xf32>
    %228 = tpu.reciprocal %227 {approx = true} : vector<6x1xf32> -> vector<6x1xf32>
    %229 = vector.broadcast %228 : vector<6x1xf32> to vector<6x6xf32>
    %230 = arith.mulf %225, %229 : vector<6x6xf32>
    %231 = vector.extract_strided_slice %213 {offsets = [0, 0], sizes = [6, 8], strides = [1, 1]} : vector<6x32xf32> to vector<6x8xf32>
    %cst_78 = arith.constant dense<0.000000e+00> : vector<6x8xf32>
    %232 = tpu.matmul %230, %231, %cst_78 {dimension_numbers = #tpu.dot_dimension_numbers<[1], [0], [0], [1], [0, 0, 1, 1], [], []>} : vector<6x6xf32>, vector<6x8xf32>, vector<6x8xf32> -> vector<6x8xf32>
    %233 = vector.extract_strided_slice %211 {offsets = [0, 8], sizes = [6, 8], strides = [1, 1]} : vector<6x32xf32> to vector<6x8xf32>
    %234 = vector.extract_strided_slice %212 {offsets = [0, 8], sizes = [6, 8], strides = [1, 1]} : vector<6x32xf32> to vector<6x8xf32>
    %cst_79 = arith.constant dense<0.000000e+00> : vector<6x6xf32>
    %235 = tpu.matmul %233, %234, %cst_79 {dimension_numbers = #tpu.dot_dimension_numbers<[1], [1], [0], [0], [0, 0, 1, 0], [], []>} : vector<6x8xf32>, vector<6x8xf32>, vector<6x6xf32> -> vector<6x6xf32>
    %cst_80 = arith.constant 0.353553385 : f32
    %236 = vector.broadcast %cst_80 : f32 to vector<6x6xf32>
    %237 = arith.mulf %235, %236 : vector<6x6xf32>
    %238 = vector.broadcast %35 : vector<1x6xf32> to vector<6x6xf32>
    %239 = arith.addf %237, %238 : vector<6x6xf32>
    %cst_81 = arith.constant dense<0xFF800000> : vector<6xf32>
    %240 = vector.multi_reduction <maximumf>, %239, %cst_81 [1] : vector<6x6xf32> to vector<6xf32>
    %241 = vector.shape_cast %240 : vector<6xf32> to vector<6x1xf32>
    %242 = vector.broadcast %241 : vector<6x1xf32> to vector<6x6xf32>
    %243 = arith.subf %239, %242 : vector<6x6xf32>
    %244 = math.exp %243 : vector<6x6xf32>
    %cst_82 = arith.constant dense<0.000000e+00> : vector<6xf32>
    %245 = vector.multi_reduction <add>, %244, %cst_82 [1] : vector<6x6xf32> to vector<6xf32>
    %246 = vector.shape_cast %245 : vector<6xf32> to vector<6x1xf32>
    %247 = tpu.reciprocal %246 {approx = true} : vector<6x1xf32> -> vector<6x1xf32>
    %248 = vector.broadcast %247 : vector<6x1xf32> to vector<6x6xf32>
    %249 = arith.mulf %244, %248 : vector<6x6xf32>
    %250 = vector.extract_strided_slice %213 {offsets = [0, 8], sizes = [6, 8], strides = [1, 1]} : vector<6x32xf32> to vector<6x8xf32>
    %cst_83 = arith.constant dense<0.000000e+00> : vector<6x8xf32>
    %251 = tpu.matmul %249, %250, %cst_83 {dimension_numbers = #tpu.dot_dimension_numbers<[1], [0], [0], [1], [0, 0, 1, 1], [], []>} : vector<6x6xf32>, vector<6x8xf32>, vector<6x8xf32> -> vector<6x8xf32>
    %252 = vector.extract_strided_slice %211 {offsets = [0, 16], sizes = [6, 8], strides = [1, 1]} : vector<6x32xf32> to vector<6x8xf32>
    %253 = vector.extract_strided_slice %212 {offsets = [0, 16], sizes = [6, 8], strides = [1, 1]} : vector<6x32xf32> to vector<6x8xf32>
    %cst_84 = arith.constant dense<0.000000e+00> : vector<6x6xf32>
    %254 = tpu.matmul %252, %253, %cst_84 {dimension_numbers = #tpu.dot_dimension_numbers<[1], [1], [0], [0], [0, 0, 1, 0], [], []>} : vector<6x8xf32>, vector<6x8xf32>, vector<6x6xf32> -> vector<6x6xf32>
    %cst_85 = arith.constant 0.353553385 : f32
    %255 = vector.broadcast %cst_85 : f32 to vector<6x6xf32>
    %256 = arith.mulf %254, %255 : vector<6x6xf32>
    %257 = vector.broadcast %35 : vector<1x6xf32> to vector<6x6xf32>
    %258 = arith.addf %256, %257 : vector<6x6xf32>
    %cst_86 = arith.constant dense<0xFF800000> : vector<6xf32>
    %259 = vector.multi_reduction <maximumf>, %258, %cst_86 [1] : vector<6x6xf32> to vector<6xf32>
    %260 = vector.shape_cast %259 : vector<6xf32> to vector<6x1xf32>
    %261 = vector.broadcast %260 : vector<6x1xf32> to vector<6x6xf32>
    %262 = arith.subf %258, %261 : vector<6x6xf32>
    %263 = math.exp %262 : vector<6x6xf32>
    %cst_87 = arith.constant dense<0.000000e+00> : vector<6xf32>
    %264 = vector.multi_reduction <add>, %263, %cst_87 [1] : vector<6x6xf32> to vector<6xf32>
    %265 = vector.shape_cast %264 : vector<6xf32> to vector<6x1xf32>
    %266 = tpu.reciprocal %265 {approx = true} : vector<6x1xf32> -> vector<6x1xf32>
    %267 = vector.broadcast %266 : vector<6x1xf32> to vector<6x6xf32>
    %268 = arith.mulf %263, %267 : vector<6x6xf32>
    %269 = vector.extract_strided_slice %213 {offsets = [0, 16], sizes = [6, 8], strides = [1, 1]} : vector<6x32xf32> to vector<6x8xf32>
    %cst_88 = arith.constant dense<0.000000e+00> : vector<6x8xf32>
    %270 = tpu.matmul %268, %269, %cst_88 {dimension_numbers = #tpu.dot_dimension_numbers<[1], [0], [0], [1], [0, 0, 1, 1], [], []>} : vector<6x6xf32>, vector<6x8xf32>, vector<6x8xf32> -> vector<6x8xf32>
    %271 = vector.extract_strided_slice %211 {offsets = [0, 24], sizes = [6, 8], strides = [1, 1]} : vector<6x32xf32> to vector<6x8xf32>
    %272 = vector.extract_strided_slice %212 {offsets = [0, 24], sizes = [6, 8], strides = [1, 1]} : vector<6x32xf32> to vector<6x8xf32>
    %cst_89 = arith.constant dense<0.000000e+00> : vector<6x6xf32>
    %273 = tpu.matmul %271, %272, %cst_89 {dimension_numbers = #tpu.dot_dimension_numbers<[1], [1], [0], [0], [0, 0, 1, 0], [], []>} : vector<6x8xf32>, vector<6x8xf32>, vector<6x6xf32> -> vector<6x6xf32>
    %cst_90 = arith.constant 0.353553385 : f32
    %274 = vector.broadcast %cst_90 : f32 to vector<6x6xf32>
    %275 = arith.mulf %273, %274 : vector<6x6xf32>
    %276 = vector.broadcast %35 : vector<1x6xf32> to vector<6x6xf32>
    %277 = arith.addf %275, %276 : vector<6x6xf32>
    %cst_91 = arith.constant dense<0xFF800000> : vector<6xf32>
    %278 = vector.multi_reduction <maximumf>, %277, %cst_91 [1] : vector<6x6xf32> to vector<6xf32>
    %279 = vector.shape_cast %278 : vector<6xf32> to vector<6x1xf32>
    %280 = vector.broadcast %279 : vector<6x1xf32> to vector<6x6xf32>
    %281 = arith.subf %277, %280 : vector<6x6xf32>
    %282 = math.exp %281 : vector<6x6xf32>
    %cst_92 = arith.constant dense<0.000000e+00> : vector<6xf32>
    %283 = vector.multi_reduction <add>, %282, %cst_92 [1] : vector<6x6xf32> to vector<6xf32>
    %284 = vector.shape_cast %283 : vector<6xf32> to vector<6x1xf32>
    %285 = tpu.reciprocal %284 {approx = true} : vector<6x1xf32> -> vector<6x1xf32>
    %286 = vector.broadcast %285 : vector<6x1xf32> to vector<6x6xf32>
    %287 = arith.mulf %282, %286 : vector<6x6xf32>
    %288 = vector.extract_strided_slice %213 {offsets = [0, 24], sizes = [6, 8], strides = [1, 1]} : vector<6x32xf32> to vector<6x8xf32>
    %cst_93 = arith.constant dense<0.000000e+00> : vector<6x8xf32>
    %289 = tpu.matmul %287, %288, %cst_93 {dimension_numbers = #tpu.dot_dimension_numbers<[1], [0], [0], [1], [0, 0, 1, 1], [], []>} : vector<6x6xf32>, vector<6x8xf32>, vector<6x8xf32> -> vector<6x8xf32>
    %290 = tpu.concatenate %232, %251, %270, %289 in 1 : vector<6x8xf32>, vector<6x8xf32>, vector<6x8xf32>, vector<6x8xf32> -> vector<6x32xf32>
    %c312 = arith.constant 312 : index
    %c0_94 = arith.constant 0 : index
    %291 = vector.load %arg0[%c312, %c0_94] : memref<1152x128xf32, #tpu.memory_space<vmem>>, vector<32x32xf32>
    %cst_95 = arith.constant dense<0.000000e+00> : vector<6x32xf32>
    %292 = tpu.matmul %290, %291, %cst_95 {dimension_numbers = #tpu.dot_dimension_numbers<[1], [0], [0], [1], [0, 0, 1, 1], [], []>} : vector<6x32xf32>, vector<32x32xf32>, vector<6x32xf32> -> vector<6x32xf32>
    %c344 = arith.constant 344 : index
    %c0_96 = arith.constant 0 : index
    %293 = vector.load %arg0[%c344, %c0_96] : memref<1152x128xf32, #tpu.memory_space<vmem>>, vector<1x32xf32>
    %294 = vector.broadcast %293 : vector<1x32xf32> to vector<6x32xf32>
    %295 = arith.addf %292, %294 : vector<6x32xf32>
    %296 = arith.addf %183, %295 : vector<6x32xf32>
    %c352 = arith.constant 352 : index
    %c0_97 = arith.constant 0 : index
    %297 = vector.load %arg0[%c352, %c0_97] : memref<1152x128xf32, #tpu.memory_space<vmem>>, vector<1x32xf32>
    %c360 = arith.constant 360 : index
    %c0_98 = arith.constant 0 : index
    %298 = vector.load %arg0[%c360, %c0_98] : memref<1152x128xf32, #tpu.memory_space<vmem>>, vector<1x32xf32>
    %cst_99 = arith.constant dense<0.000000e+00> : vector<6xf32>
    %299 = vector.multi_reduction <add>, %296, %cst_99 [1] : vector<6x32xf32> to vector<6xf32>
    %300 = vector.shape_cast %299 : vector<6xf32> to vector<6x1xf32>
    %cst_100 = arith.constant 3.200000e+01 : f32
    %301 = vector.broadcast %cst_100 : f32 to vector<6x1xf32>
    %302 = arith.divf %300, %301 : vector<6x1xf32>
    %303 = vector.broadcast %302 : vector<6x1xf32> to vector<6x32xf32>
    %304 = arith.subf %296, %303 : vector<6x32xf32>
    %305 = arith.mulf %304, %304 : vector<6x32xf32>
    %cst_101 = arith.constant dense<0.000000e+00> : vector<6xf32>
    %306 = vector.multi_reduction <add>, %305, %cst_101 [1] : vector<6x32xf32> to vector<6xf32>
    %307 = vector.shape_cast %306 : vector<6xf32> to vector<6x1xf32>
    %cst_102 = arith.constant 3.200000e+01 : f32
    %308 = vector.broadcast %cst_102 : f32 to vector<6x1xf32>
    %309 = arith.divf %307, %308 : vector<6x1xf32>
    %cst_103 = arith.constant 9.99999997E-7 : f32
    %310 = vector.broadcast %cst_103 : f32 to vector<6x1xf32>
    %311 = arith.addf %309, %310 : vector<6x1xf32>
    %312 = math.rsqrt %311 : vector<6x1xf32>
    %313 = vector.broadcast %312 : vector<6x1xf32> to vector<6x32xf32>
    %314 = arith.mulf %304, %313 : vector<6x32xf32>
    %315 = vector.broadcast %297 : vector<1x32xf32> to vector<6x32xf32>
    %316 = arith.mulf %314, %315 : vector<6x32xf32>
    %317 = vector.broadcast %298 : vector<1x32xf32> to vector<6x32xf32>
    %318 = arith.addf %316, %317 : vector<6x32xf32>
    %c368 = arith.constant 368 : index
    %c0_104 = arith.constant 0 : index
    %319 = vector.load %arg0[%c368, %c0_104] : memref<1152x128xf32, #tpu.memory_space<vmem>>, vector<32x64xf32>
    %cst_105 = arith.constant dense<0.000000e+00> : vector<6x64xf32>
    %320 = tpu.matmul %318, %319, %cst_105 {dimension_numbers = #tpu.dot_dimension_numbers<[1], [0], [0], [1], [0, 0, 1, 1], [], []>} : vector<6x32xf32>, vector<32x64xf32>, vector<6x64xf32> -> vector<6x64xf32>
    %c400 = arith.constant 400 : index
    %c0_106 = arith.constant 0 : index
    %321 = vector.load %arg0[%c400, %c0_106] : memref<1152x128xf32, #tpu.memory_space<vmem>>, vector<1x64xf32>
    %322 = vector.broadcast %321 : vector<1x64xf32> to vector<6x64xf32>
    %323 = arith.addf %320, %322 : vector<6x64xf32>
    %cst_107 = arith.constant 0.000000e+00 : f32
    %324 = vector.broadcast %cst_107 : f32 to vector<6x64xf32>
    %325 = arith.maximumf %323, %324 : vector<6x64xf32>
    %c408 = arith.constant 408 : index
    %c0_108 = arith.constant 0 : index
    %326 = vector.load %arg0[%c408, %c0_108] : memref<1152x128xf32, #tpu.memory_space<vmem>>, vector<64x32xf32>
    %cst_109 = arith.constant dense<0.000000e+00> : vector<6x32xf32>
    %327 = tpu.matmul %325, %326, %cst_109 {dimension_numbers = #tpu.dot_dimension_numbers<[1], [0], [0], [1], [0, 0, 1, 1], [], []>} : vector<6x64xf32>, vector<64x32xf32>, vector<6x32xf32> -> vector<6x32xf32>
    %c472 = arith.constant 472 : index
    %c0_110 = arith.constant 0 : index
    %328 = vector.load %arg0[%c472, %c0_110] : memref<1152x128xf32, #tpu.memory_space<vmem>>, vector<1x32xf32>
    %329 = vector.broadcast %328 : vector<1x32xf32> to vector<6x32xf32>
    %330 = arith.addf %327, %329 : vector<6x32xf32>
    %331 = arith.addf %296, %330 : vector<6x32xf32>
    %c480 = arith.constant 480 : index
    %c0_111 = arith.constant 0 : index
    %332 = vector.load %arg0[%c480, %c0_111] : memref<1152x128xf32, #tpu.memory_space<vmem>>, vector<1x32xf32>
    %c488 = arith.constant 488 : index
    %c0_112 = arith.constant 0 : index
    %333 = vector.load %arg0[%c488, %c0_112] : memref<1152x128xf32, #tpu.memory_space<vmem>>, vector<1x32xf32>
    %cst_113 = arith.constant dense<0.000000e+00> : vector<6xf32>
    %334 = vector.multi_reduction <add>, %331, %cst_113 [1] : vector<6x32xf32> to vector<6xf32>
    %335 = vector.shape_cast %334 : vector<6xf32> to vector<6x1xf32>
    %cst_114 = arith.constant 3.200000e+01 : f32
    %336 = vector.broadcast %cst_114 : f32 to vector<6x1xf32>
    %337 = arith.divf %335, %336 : vector<6x1xf32>
    %338 = vector.broadcast %337 : vector<6x1xf32> to vector<6x32xf32>
    %339 = arith.subf %331, %338 : vector<6x32xf32>
    %340 = arith.mulf %339, %339 : vector<6x32xf32>
    %cst_115 = arith.constant dense<0.000000e+00> : vector<6xf32>
    %341 = vector.multi_reduction <add>, %340, %cst_115 [1] : vector<6x32xf32> to vector<6xf32>
    %342 = vector.shape_cast %341 : vector<6xf32> to vector<6x1xf32>
    %cst_116 = arith.constant 3.200000e+01 : f32
    %343 = vector.broadcast %cst_116 : f32 to vector<6x1xf32>
    %344 = arith.divf %342, %343 : vector<6x1xf32>
    %cst_117 = arith.constant 9.99999997E-7 : f32
    %345 = vector.broadcast %cst_117 : f32 to vector<6x1xf32>
    %346 = arith.addf %344, %345 : vector<6x1xf32>
    %347 = math.rsqrt %346 : vector<6x1xf32>
    %348 = vector.broadcast %347 : vector<6x1xf32> to vector<6x32xf32>
    %349 = arith.mulf %339, %348 : vector<6x32xf32>
    %350 = vector.broadcast %332 : vector<1x32xf32> to vector<6x32xf32>
    %351 = arith.mulf %349, %350 : vector<6x32xf32>
    %352 = vector.broadcast %333 : vector<1x32xf32> to vector<6x32xf32>
    %353 = arith.addf %351, %352 : vector<6x32xf32>
    %c0_118 = arith.constant 0 : index
    %c0_119 = arith.constant 0 : index
    %354 = vector.load %arg2[%c0_118, %c0_119] : memref<24x128xf32, #tpu.memory_space<vmem>>, vector<8x32xf32>
    %c16_120 = arith.constant 16 : index
    %c0_121 = arith.constant 0 : index
    %355 = vector.load %arg2[%c16_120, %c0_121] : memref<24x128xf32, #tpu.memory_space<vmem>>, vector<8x8xf32>
    %c496 = arith.constant 496 : index
    %c0_122 = arith.constant 0 : index
    %356 = vector.load %arg0[%c496, %c0_122] : memref<1152x128xf32, #tpu.memory_space<vmem>>, vector<1x32xf32>
    %c504 = arith.constant 504 : index
    %c0_123 = arith.constant 0 : index
    %357 = vector.load %arg0[%c504, %c0_123] : memref<1152x128xf32, #tpu.memory_space<vmem>>, vector<1x32xf32>
    %cst_124 = arith.constant dense<0.000000e+00> : vector<8xf32>
    %358 = vector.multi_reduction <add>, %354, %cst_124 [1] : vector<8x32xf32> to vector<8xf32>
    %359 = vector.shape_cast %358 : vector<8xf32> to vector<8x1xf32>
    %cst_125 = arith.constant 3.200000e+01 : f32
    %360 = vector.broadcast %cst_125 : f32 to vector<8x1xf32>
    %361 = arith.divf %359, %360 : vector<8x1xf32>
    %362 = vector.broadcast %361 : vector<8x1xf32> to vector<8x32xf32>
    %363 = arith.subf %354, %362 : vector<8x32xf32>
    %364 = arith.mulf %363, %363 : vector<8x32xf32>
    %cst_126 = arith.constant dense<0.000000e+00> : vector<8xf32>
    %365 = vector.multi_reduction <add>, %364, %cst_126 [1] : vector<8x32xf32> to vector<8xf32>
    %366 = vector.shape_cast %365 : vector<8xf32> to vector<8x1xf32>
    %cst_127 = arith.constant 3.200000e+01 : f32
    %367 = vector.broadcast %cst_127 : f32 to vector<8x1xf32>
    %368 = arith.divf %366, %367 : vector<8x1xf32>
    %cst_128 = arith.constant 9.99999997E-7 : f32
    %369 = vector.broadcast %cst_128 : f32 to vector<8x1xf32>
    %370 = arith.addf %368, %369 : vector<8x1xf32>
    %371 = math.rsqrt %370 : vector<8x1xf32>
    %372 = vector.broadcast %371 : vector<8x1xf32> to vector<8x32xf32>
    %373 = arith.mulf %363, %372 : vector<8x32xf32>
    %374 = vector.broadcast %356 : vector<1x32xf32> to vector<8x32xf32>
    %375 = arith.mulf %373, %374 : vector<8x32xf32>
    %376 = vector.broadcast %357 : vector<1x32xf32> to vector<8x32xf32>
    %377 = arith.addf %375, %376 : vector<8x32xf32>
    %c512 = arith.constant 512 : index
    %c0_129 = arith.constant 0 : index
    %378 = vector.load %arg0[%c512, %c0_129] : memref<1152x128xf32, #tpu.memory_space<vmem>>, vector<32x96xf32>
    %c544 = arith.constant 544 : index
    %c0_130 = arith.constant 0 : index
    %379 = vector.load %arg0[%c544, %c0_130] : memref<1152x128xf32, #tpu.memory_space<vmem>>, vector<1x96xf32>
    %cst_131 = arith.constant dense<0.000000e+00> : vector<8x96xf32>
    %380 = tpu.matmul %377, %378, %cst_131 {dimension_numbers = #tpu.dot_dimension_numbers<[1], [0], [0], [1], [0, 0, 1, 1], [], []>} : vector<8x32xf32>, vector<32x96xf32>, vector<8x96xf32> -> vector<8x96xf32>
    %381 = vector.broadcast %379 : vector<1x96xf32> to vector<8x96xf32>
    %382 = arith.addf %380, %381 : vector<8x96xf32>
    %383 = vector.extract_strided_slice %382 {offsets = [0, 0], sizes = [8, 32], strides = [1, 1]} : vector<8x96xf32> to vector<8x32xf32>
    %384 = vector.extract_strided_slice %382 {offsets = [0, 32], sizes = [8, 32], strides = [1, 1]} : vector<8x96xf32> to vector<8x32xf32>
    %385 = vector.extract_strided_slice %382 {offsets = [0, 64], sizes = [8, 32], strides = [1, 1]} : vector<8x96xf32> to vector<8x32xf32>
    %386 = vector.extract_strided_slice %383 {offsets = [0, 0], sizes = [8, 8], strides = [1, 1]} : vector<8x32xf32> to vector<8x8xf32>
    %387 = vector.extract_strided_slice %384 {offsets = [0, 0], sizes = [8, 8], strides = [1, 1]} : vector<8x32xf32> to vector<8x8xf32>
    %cst_132 = arith.constant dense<0.000000e+00> : vector<8x8xf32>
    %388 = tpu.matmul %386, %387, %cst_132 {dimension_numbers = #tpu.dot_dimension_numbers<[1], [1], [0], [0], [0, 0, 1, 0], [], []>} : vector<8x8xf32>, vector<8x8xf32>, vector<8x8xf32> -> vector<8x8xf32>
    %cst_133 = arith.constant 0.353553385 : f32
    %389 = vector.broadcast %cst_133 : f32 to vector<8x8xf32>
    %390 = arith.mulf %388, %389 : vector<8x8xf32>
    %391 = arith.addf %390, %355 : vector<8x8xf32>
    %cst_134 = arith.constant dense<0xFF800000> : vector<8xf32>
    %392 = vector.multi_reduction <maximumf>, %391, %cst_134 [1] : vector<8x8xf32> to vector<8xf32>
    %393 = vector.shape_cast %392 : vector<8xf32> to vector<8x1xf32>
    %394 = vector.broadcast %393 : vector<8x1xf32> to vector<8x8xf32>
    %395 = arith.subf %391, %394 : vector<8x8xf32>
    %396 = math.exp %395 : vector<8x8xf32>
    %cst_135 = arith.constant dense<0.000000e+00> : vector<8xf32>
    %397 = vector.multi_reduction <add>, %396, %cst_135 [1] : vector<8x8xf32> to vector<8xf32>
    %398 = vector.shape_cast %397 : vector<8xf32> to vector<8x1xf32>
    %399 = tpu.reciprocal %398 {approx = true} : vector<8x1xf32> -> vector<8x1xf32>
    %400 = vector.broadcast %399 : vector<8x1xf32> to vector<8x8xf32>
    %401 = arith.mulf %396, %400 : vector<8x8xf32>
    %402 = vector.extract_strided_slice %385 {offsets = [0, 0], sizes = [8, 8], strides = [1, 1]} : vector<8x32xf32> to vector<8x8xf32>
    %cst_136 = arith.constant dense<0.000000e+00> : vector<8x8xf32>
    %403 = tpu.matmul %401, %402, %cst_136 {dimension_numbers = #tpu.dot_dimension_numbers<[1], [0], [0], [1], [0, 0, 1, 1], [], []>} : vector<8x8xf32>, vector<8x8xf32>, vector<8x8xf32> -> vector<8x8xf32>
    %404 = vector.extract_strided_slice %383 {offsets = [0, 8], sizes = [8, 8], strides = [1, 1]} : vector<8x32xf32> to vector<8x8xf32>
    %405 = vector.extract_strided_slice %384 {offsets = [0, 8], sizes = [8, 8], strides = [1, 1]} : vector<8x32xf32> to vector<8x8xf32>
    %cst_137 = arith.constant dense<0.000000e+00> : vector<8x8xf32>
    %406 = tpu.matmul %404, %405, %cst_137 {dimension_numbers = #tpu.dot_dimension_numbers<[1], [1], [0], [0], [0, 0, 1, 0], [], []>} : vector<8x8xf32>, vector<8x8xf32>, vector<8x8xf32> -> vector<8x8xf32>
    %cst_138 = arith.constant 0.353553385 : f32
    %407 = vector.broadcast %cst_138 : f32 to vector<8x8xf32>
    %408 = arith.mulf %406, %407 : vector<8x8xf32>
    %409 = arith.addf %408, %355 : vector<8x8xf32>
    %cst_139 = arith.constant dense<0xFF800000> : vector<8xf32>
    %410 = vector.multi_reduction <maximumf>, %409, %cst_139 [1] : vector<8x8xf32> to vector<8xf32>
    %411 = vector.shape_cast %410 : vector<8xf32> to vector<8x1xf32>
    %412 = vector.broadcast %411 : vector<8x1xf32> to vector<8x8xf32>
    %413 = arith.subf %409, %412 : vector<8x8xf32>
    %414 = math.exp %413 : vector<8x8xf32>
    %cst_140 = arith.constant dense<0.000000e+00> : vector<8xf32>
    %415 = vector.multi_reduction <add>, %414, %cst_140 [1] : vector<8x8xf32> to vector<8xf32>
    %416 = vector.shape_cast %415 : vector<8xf32> to vector<8x1xf32>
    %417 = tpu.reciprocal %416 {approx = true} : vector<8x1xf32> -> vector<8x1xf32>
    %418 = vector.broadcast %417 : vector<8x1xf32> to vector<8x8xf32>
    %419 = arith.mulf %414, %418 : vector<8x8xf32>
    %420 = vector.extract_strided_slice %385 {offsets = [0, 8], sizes = [8, 8], strides = [1, 1]} : vector<8x32xf32> to vector<8x8xf32>
    %cst_141 = arith.constant dense<0.000000e+00> : vector<8x8xf32>
    %421 = tpu.matmul %419, %420, %cst_141 {dimension_numbers = #tpu.dot_dimension_numbers<[1], [0], [0], [1], [0, 0, 1, 1], [], []>} : vector<8x8xf32>, vector<8x8xf32>, vector<8x8xf32> -> vector<8x8xf32>
    %422 = vector.extract_strided_slice %383 {offsets = [0, 16], sizes = [8, 8], strides = [1, 1]} : vector<8x32xf32> to vector<8x8xf32>
    %423 = vector.extract_strided_slice %384 {offsets = [0, 16], sizes = [8, 8], strides = [1, 1]} : vector<8x32xf32> to vector<8x8xf32>
    %cst_142 = arith.constant dense<0.000000e+00> : vector<8x8xf32>
    %424 = tpu.matmul %422, %423, %cst_142 {dimension_numbers = #tpu.dot_dimension_numbers<[1], [1], [0], [0], [0, 0, 1, 0], [], []>} : vector<8x8xf32>, vector<8x8xf32>, vector<8x8xf32> -> vector<8x8xf32>
    %cst_143 = arith.constant 0.353553385 : f32
    %425 = vector.broadcast %cst_143 : f32 to vector<8x8xf32>
    %426 = arith.mulf %424, %425 : vector<8x8xf32>
    %427 = arith.addf %426, %355 : vector<8x8xf32>
    %cst_144 = arith.constant dense<0xFF800000> : vector<8xf32>
    %428 = vector.multi_reduction <maximumf>, %427, %cst_144 [1] : vector<8x8xf32> to vector<8xf32>
    %429 = vector.shape_cast %428 : vector<8xf32> to vector<8x1xf32>
    %430 = vector.broadcast %429 : vector<8x1xf32> to vector<8x8xf32>
    %431 = arith.subf %427, %430 : vector<8x8xf32>
    %432 = math.exp %431 : vector<8x8xf32>
    %cst_145 = arith.constant dense<0.000000e+00> : vector<8xf32>
    %433 = vector.multi_reduction <add>, %432, %cst_145 [1] : vector<8x8xf32> to vector<8xf32>
    %434 = vector.shape_cast %433 : vector<8xf32> to vector<8x1xf32>
    %435 = tpu.reciprocal %434 {approx = true} : vector<8x1xf32> -> vector<8x1xf32>
    %436 = vector.broadcast %435 : vector<8x1xf32> to vector<8x8xf32>
    %437 = arith.mulf %432, %436 : vector<8x8xf32>
    %438 = vector.extract_strided_slice %385 {offsets = [0, 16], sizes = [8, 8], strides = [1, 1]} : vector<8x32xf32> to vector<8x8xf32>
    %cst_146 = arith.constant dense<0.000000e+00> : vector<8x8xf32>
    %439 = tpu.matmul %437, %438, %cst_146 {dimension_numbers = #tpu.dot_dimension_numbers<[1], [0], [0], [1], [0, 0, 1, 1], [], []>} : vector<8x8xf32>, vector<8x8xf32>, vector<8x8xf32> -> vector<8x8xf32>
    %440 = vector.extract_strided_slice %383 {offsets = [0, 24], sizes = [8, 8], strides = [1, 1]} : vector<8x32xf32> to vector<8x8xf32>
    %441 = vector.extract_strided_slice %384 {offsets = [0, 24], sizes = [8, 8], strides = [1, 1]} : vector<8x32xf32> to vector<8x8xf32>
    %cst_147 = arith.constant dense<0.000000e+00> : vector<8x8xf32>
    %442 = tpu.matmul %440, %441, %cst_147 {dimension_numbers = #tpu.dot_dimension_numbers<[1], [1], [0], [0], [0, 0, 1, 0], [], []>} : vector<8x8xf32>, vector<8x8xf32>, vector<8x8xf32> -> vector<8x8xf32>
    %cst_148 = arith.constant 0.353553385 : f32
    %443 = vector.broadcast %cst_148 : f32 to vector<8x8xf32>
    %444 = arith.mulf %442, %443 : vector<8x8xf32>
    %445 = arith.addf %444, %355 : vector<8x8xf32>
    %cst_149 = arith.constant dense<0xFF800000> : vector<8xf32>
    %446 = vector.multi_reduction <maximumf>, %445, %cst_149 [1] : vector<8x8xf32> to vector<8xf32>
    %447 = vector.shape_cast %446 : vector<8xf32> to vector<8x1xf32>
    %448 = vector.broadcast %447 : vector<8x1xf32> to vector<8x8xf32>
    %449 = arith.subf %445, %448 : vector<8x8xf32>
    %450 = math.exp %449 : vector<8x8xf32>
    %cst_150 = arith.constant dense<0.000000e+00> : vector<8xf32>
    %451 = vector.multi_reduction <add>, %450, %cst_150 [1] : vector<8x8xf32> to vector<8xf32>
    %452 = vector.shape_cast %451 : vector<8xf32> to vector<8x1xf32>
    %453 = tpu.reciprocal %452 {approx = true} : vector<8x1xf32> -> vector<8x1xf32>
    %454 = vector.broadcast %453 : vector<8x1xf32> to vector<8x8xf32>
    %455 = arith.mulf %450, %454 : vector<8x8xf32>
    %456 = vector.extract_strided_slice %385 {offsets = [0, 24], sizes = [8, 8], strides = [1, 1]} : vector<8x32xf32> to vector<8x8xf32>
    %cst_151 = arith.constant dense<0.000000e+00> : vector<8x8xf32>
    %457 = tpu.matmul %455, %456, %cst_151 {dimension_numbers = #tpu.dot_dimension_numbers<[1], [0], [0], [1], [0, 0, 1, 1], [], []>} : vector<8x8xf32>, vector<8x8xf32>, vector<8x8xf32> -> vector<8x8xf32>
    %458 = tpu.concatenate %403, %421, %439, %457 in 1 : vector<8x8xf32>, vector<8x8xf32>, vector<8x8xf32>, vector<8x8xf32> -> vector<8x32xf32>
    %c552 = arith.constant 552 : index
    %c0_152 = arith.constant 0 : index
    %459 = vector.load %arg0[%c552, %c0_152] : memref<1152x128xf32, #tpu.memory_space<vmem>>, vector<32x32xf32>
    %cst_153 = arith.constant dense<0.000000e+00> : vector<8x32xf32>
    %460 = tpu.matmul %458, %459, %cst_153 {dimension_numbers = #tpu.dot_dimension_numbers<[1], [0], [0], [1], [0, 0, 1, 1], [], []>} : vector<8x32xf32>, vector<32x32xf32>, vector<8x32xf32> -> vector<8x32xf32>
    %c584 = arith.constant 584 : index
    %c0_154 = arith.constant 0 : index
    %461 = vector.load %arg0[%c584, %c0_154] : memref<1152x128xf32, #tpu.memory_space<vmem>>, vector<1x32xf32>
    %462 = vector.broadcast %461 : vector<1x32xf32> to vector<8x32xf32>
    %463 = arith.addf %460, %462 : vector<8x32xf32>
    %464 = arith.addf %354, %463 : vector<8x32xf32>
    %c592 = arith.constant 592 : index
    %c0_155 = arith.constant 0 : index
    %465 = vector.load %arg0[%c592, %c0_155] : memref<1152x128xf32, #tpu.memory_space<vmem>>, vector<1x32xf32>
    %c600 = arith.constant 600 : index
    %c0_156 = arith.constant 0 : index
    %466 = vector.load %arg0[%c600, %c0_156] : memref<1152x128xf32, #tpu.memory_space<vmem>>, vector<1x32xf32>
    %cst_157 = arith.constant dense<0.000000e+00> : vector<8xf32>
    %467 = vector.multi_reduction <add>, %464, %cst_157 [1] : vector<8x32xf32> to vector<8xf32>
    %468 = vector.shape_cast %467 : vector<8xf32> to vector<8x1xf32>
    %cst_158 = arith.constant 3.200000e+01 : f32
    %469 = vector.broadcast %cst_158 : f32 to vector<8x1xf32>
    %470 = arith.divf %468, %469 : vector<8x1xf32>
    %471 = vector.broadcast %470 : vector<8x1xf32> to vector<8x32xf32>
    %472 = arith.subf %464, %471 : vector<8x32xf32>
    %473 = arith.mulf %472, %472 : vector<8x32xf32>
    %cst_159 = arith.constant dense<0.000000e+00> : vector<8xf32>
    %474 = vector.multi_reduction <add>, %473, %cst_159 [1] : vector<8x32xf32> to vector<8xf32>
    %475 = vector.shape_cast %474 : vector<8xf32> to vector<8x1xf32>
    %cst_160 = arith.constant 3.200000e+01 : f32
    %476 = vector.broadcast %cst_160 : f32 to vector<8x1xf32>
    %477 = arith.divf %475, %476 : vector<8x1xf32>
    %cst_161 = arith.constant 9.99999997E-7 : f32
    %478 = vector.broadcast %cst_161 : f32 to vector<8x1xf32>
    %479 = arith.addf %477, %478 : vector<8x1xf32>
    %480 = math.rsqrt %479 : vector<8x1xf32>
    %481 = vector.broadcast %480 : vector<8x1xf32> to vector<8x32xf32>
    %482 = arith.mulf %472, %481 : vector<8x32xf32>
    %483 = vector.broadcast %465 : vector<1x32xf32> to vector<8x32xf32>
    %484 = arith.mulf %482, %483 : vector<8x32xf32>
    %485 = vector.broadcast %466 : vector<1x32xf32> to vector<8x32xf32>
    %486 = arith.addf %484, %485 : vector<8x32xf32>
    %c608 = arith.constant 608 : index
    %c0_162 = arith.constant 0 : index
    %487 = vector.load %arg0[%c608, %c0_162] : memref<1152x128xf32, #tpu.memory_space<vmem>>, vector<32x96xf32>
    %c640 = arith.constant 640 : index
    %c0_163 = arith.constant 0 : index
    %488 = vector.load %arg0[%c640, %c0_163] : memref<1152x128xf32, #tpu.memory_space<vmem>>, vector<1x96xf32>
    %489 = vector.extract_strided_slice %487 {offsets = [0, 0], sizes = [32, 32], strides = [1, 1]} : vector<32x96xf32> to vector<32x32xf32>
    %cst_164 = arith.constant dense<0.000000e+00> : vector<8x32xf32>
    %490 = tpu.matmul %486, %489, %cst_164 {dimension_numbers = #tpu.dot_dimension_numbers<[1], [0], [0], [1], [0, 0, 1, 1], [], []>} : vector<8x32xf32>, vector<32x32xf32>, vector<8x32xf32> -> vector<8x32xf32>
    %491 = vector.extract_strided_slice %488 {offsets = [0, 0], sizes = [1, 32], strides = [1, 1]} : vector<1x96xf32> to vector<1x32xf32>
    %492 = vector.broadcast %491 : vector<1x32xf32> to vector<8x32xf32>
    %493 = arith.addf %490, %492 : vector<8x32xf32>
    %494 = vector.extract_strided_slice %487 {offsets = [0, 32], sizes = [32, 64], strides = [1, 1]} : vector<32x96xf32> to vector<32x64xf32>
    %cst_165 = arith.constant dense<0.000000e+00> : vector<6x64xf32>
    %495 = tpu.matmul %353, %494, %cst_165 {dimension_numbers = #tpu.dot_dimension_numbers<[1], [0], [0], [1], [0, 0, 1, 1], [], []>} : vector<6x32xf32>, vector<32x64xf32>, vector<6x64xf32> -> vector<6x64xf32>
    %496 = vector.extract_strided_slice %488 {offsets = [0, 32], sizes = [1, 64], strides = [1, 1]} : vector<1x96xf32> to vector<1x64xf32>
    %497 = vector.broadcast %496 : vector<1x64xf32> to vector<6x64xf32>
    %498 = arith.addf %495, %497 : vector<6x64xf32>
    %499 = vector.extract_strided_slice %498 {offsets = [0, 0], sizes = [6, 32], strides = [1, 1]} : vector<6x64xf32> to vector<6x32xf32>
    %500 = vector.extract_strided_slice %498 {offsets = [0, 32], sizes = [6, 32], strides = [1, 1]} : vector<6x64xf32> to vector<6x32xf32>
    %501 = vector.extract_strided_slice %493 {offsets = [0, 0], sizes = [8, 8], strides = [1, 1]} : vector<8x32xf32> to vector<8x8xf32>
    %502 = vector.extract_strided_slice %499 {offsets = [0, 0], sizes = [6, 8], strides = [1, 1]} : vector<6x32xf32> to vector<6x8xf32>
    %cst_166 = arith.constant dense<0.000000e+00> : vector<8x6xf32>
    %503 = tpu.matmul %501, %502, %cst_166 {dimension_numbers = #tpu.dot_dimension_numbers<[1], [1], [0], [0], [0, 0, 1, 0], [], []>} : vector<8x8xf32>, vector<6x8xf32>, vector<8x6xf32> -> vector<8x6xf32>
    %cst_167 = arith.constant 0.353553385 : f32
    %504 = vector.broadcast %cst_167 : f32 to vector<8x6xf32>
    %505 = arith.mulf %503, %504 : vector<8x6xf32>
    %506 = vector.broadcast %35 : vector<1x6xf32> to vector<8x6xf32>
    %507 = arith.addf %505, %506 : vector<8x6xf32>
    %cst_168 = arith.constant dense<0xFF800000> : vector<8xf32>
    %508 = vector.multi_reduction <maximumf>, %507, %cst_168 [1] : vector<8x6xf32> to vector<8xf32>
    %509 = vector.shape_cast %508 : vector<8xf32> to vector<8x1xf32>
    %510 = vector.broadcast %509 : vector<8x1xf32> to vector<8x6xf32>
    %511 = arith.subf %507, %510 : vector<8x6xf32>
    %512 = math.exp %511 : vector<8x6xf32>
    %cst_169 = arith.constant dense<0.000000e+00> : vector<8xf32>
    %513 = vector.multi_reduction <add>, %512, %cst_169 [1] : vector<8x6xf32> to vector<8xf32>
    %514 = vector.shape_cast %513 : vector<8xf32> to vector<8x1xf32>
    %515 = tpu.reciprocal %514 {approx = true} : vector<8x1xf32> -> vector<8x1xf32>
    %516 = vector.broadcast %515 : vector<8x1xf32> to vector<8x6xf32>
    %517 = arith.mulf %512, %516 : vector<8x6xf32>
    %518 = vector.extract_strided_slice %500 {offsets = [0, 0], sizes = [6, 8], strides = [1, 1]} : vector<6x32xf32> to vector<6x8xf32>
    %cst_170 = arith.constant dense<0.000000e+00> : vector<8x8xf32>
    %519 = tpu.matmul %517, %518, %cst_170 {dimension_numbers = #tpu.dot_dimension_numbers<[1], [0], [0], [1], [0, 0, 1, 1], [], []>} : vector<8x6xf32>, vector<6x8xf32>, vector<8x8xf32> -> vector<8x8xf32>
    %520 = vector.extract_strided_slice %493 {offsets = [0, 8], sizes = [8, 8], strides = [1, 1]} : vector<8x32xf32> to vector<8x8xf32>
    %521 = vector.extract_strided_slice %499 {offsets = [0, 8], sizes = [6, 8], strides = [1, 1]} : vector<6x32xf32> to vector<6x8xf32>
    %cst_171 = arith.constant dense<0.000000e+00> : vector<8x6xf32>
    %522 = tpu.matmul %520, %521, %cst_171 {dimension_numbers = #tpu.dot_dimension_numbers<[1], [1], [0], [0], [0, 0, 1, 0], [], []>} : vector<8x8xf32>, vector<6x8xf32>, vector<8x6xf32> -> vector<8x6xf32>
    %cst_172 = arith.constant 0.353553385 : f32
    %523 = vector.broadcast %cst_172 : f32 to vector<8x6xf32>
    %524 = arith.mulf %522, %523 : vector<8x6xf32>
    %525 = vector.broadcast %35 : vector<1x6xf32> to vector<8x6xf32>
    %526 = arith.addf %524, %525 : vector<8x6xf32>
    %cst_173 = arith.constant dense<0xFF800000> : vector<8xf32>
    %527 = vector.multi_reduction <maximumf>, %526, %cst_173 [1] : vector<8x6xf32> to vector<8xf32>
    %528 = vector.shape_cast %527 : vector<8xf32> to vector<8x1xf32>
    %529 = vector.broadcast %528 : vector<8x1xf32> to vector<8x6xf32>
    %530 = arith.subf %526, %529 : vector<8x6xf32>
    %531 = math.exp %530 : vector<8x6xf32>
    %cst_174 = arith.constant dense<0.000000e+00> : vector<8xf32>
    %532 = vector.multi_reduction <add>, %531, %cst_174 [1] : vector<8x6xf32> to vector<8xf32>
    %533 = vector.shape_cast %532 : vector<8xf32> to vector<8x1xf32>
    %534 = tpu.reciprocal %533 {approx = true} : vector<8x1xf32> -> vector<8x1xf32>
    %535 = vector.broadcast %534 : vector<8x1xf32> to vector<8x6xf32>
    %536 = arith.mulf %531, %535 : vector<8x6xf32>
    %537 = vector.extract_strided_slice %500 {offsets = [0, 8], sizes = [6, 8], strides = [1, 1]} : vector<6x32xf32> to vector<6x8xf32>
    %cst_175 = arith.constant dense<0.000000e+00> : vector<8x8xf32>
    %538 = tpu.matmul %536, %537, %cst_175 {dimension_numbers = #tpu.dot_dimension_numbers<[1], [0], [0], [1], [0, 0, 1, 1], [], []>} : vector<8x6xf32>, vector<6x8xf32>, vector<8x8xf32> -> vector<8x8xf32>
    %539 = vector.extract_strided_slice %493 {offsets = [0, 16], sizes = [8, 8], strides = [1, 1]} : vector<8x32xf32> to vector<8x8xf32>
    %540 = vector.extract_strided_slice %499 {offsets = [0, 16], sizes = [6, 8], strides = [1, 1]} : vector<6x32xf32> to vector<6x8xf32>
    %cst_176 = arith.constant dense<0.000000e+00> : vector<8x6xf32>
    %541 = tpu.matmul %539, %540, %cst_176 {dimension_numbers = #tpu.dot_dimension_numbers<[1], [1], [0], [0], [0, 0, 1, 0], [], []>} : vector<8x8xf32>, vector<6x8xf32>, vector<8x6xf32> -> vector<8x6xf32>
    %cst_177 = arith.constant 0.353553385 : f32
    %542 = vector.broadcast %cst_177 : f32 to vector<8x6xf32>
    %543 = arith.mulf %541, %542 : vector<8x6xf32>
    %544 = vector.broadcast %35 : vector<1x6xf32> to vector<8x6xf32>
    %545 = arith.addf %543, %544 : vector<8x6xf32>
    %cst_178 = arith.constant dense<0xFF800000> : vector<8xf32>
    %546 = vector.multi_reduction <maximumf>, %545, %cst_178 [1] : vector<8x6xf32> to vector<8xf32>
    %547 = vector.shape_cast %546 : vector<8xf32> to vector<8x1xf32>
    %548 = vector.broadcast %547 : vector<8x1xf32> to vector<8x6xf32>
    %549 = arith.subf %545, %548 : vector<8x6xf32>
    %550 = math.exp %549 : vector<8x6xf32>
    %cst_179 = arith.constant dense<0.000000e+00> : vector<8xf32>
    %551 = vector.multi_reduction <add>, %550, %cst_179 [1] : vector<8x6xf32> to vector<8xf32>
    %552 = vector.shape_cast %551 : vector<8xf32> to vector<8x1xf32>
    %553 = tpu.reciprocal %552 {approx = true} : vector<8x1xf32> -> vector<8x1xf32>
    %554 = vector.broadcast %553 : vector<8x1xf32> to vector<8x6xf32>
    %555 = arith.mulf %550, %554 : vector<8x6xf32>
    %556 = vector.extract_strided_slice %500 {offsets = [0, 16], sizes = [6, 8], strides = [1, 1]} : vector<6x32xf32> to vector<6x8xf32>
    %cst_180 = arith.constant dense<0.000000e+00> : vector<8x8xf32>
    %557 = tpu.matmul %555, %556, %cst_180 {dimension_numbers = #tpu.dot_dimension_numbers<[1], [0], [0], [1], [0, 0, 1, 1], [], []>} : vector<8x6xf32>, vector<6x8xf32>, vector<8x8xf32> -> vector<8x8xf32>
    %558 = vector.extract_strided_slice %493 {offsets = [0, 24], sizes = [8, 8], strides = [1, 1]} : vector<8x32xf32> to vector<8x8xf32>
    %559 = vector.extract_strided_slice %499 {offsets = [0, 24], sizes = [6, 8], strides = [1, 1]} : vector<6x32xf32> to vector<6x8xf32>
    %cst_181 = arith.constant dense<0.000000e+00> : vector<8x6xf32>
    %560 = tpu.matmul %558, %559, %cst_181 {dimension_numbers = #tpu.dot_dimension_numbers<[1], [1], [0], [0], [0, 0, 1, 0], [], []>} : vector<8x8xf32>, vector<6x8xf32>, vector<8x6xf32> -> vector<8x6xf32>
    %cst_182 = arith.constant 0.353553385 : f32
    %561 = vector.broadcast %cst_182 : f32 to vector<8x6xf32>
    %562 = arith.mulf %560, %561 : vector<8x6xf32>
    %563 = vector.broadcast %35 : vector<1x6xf32> to vector<8x6xf32>
    %564 = arith.addf %562, %563 : vector<8x6xf32>
    %cst_183 = arith.constant dense<0xFF800000> : vector<8xf32>
    %565 = vector.multi_reduction <maximumf>, %564, %cst_183 [1] : vector<8x6xf32> to vector<8xf32>
    %566 = vector.shape_cast %565 : vector<8xf32> to vector<8x1xf32>
    %567 = vector.broadcast %566 : vector<8x1xf32> to vector<8x6xf32>
    %568 = arith.subf %564, %567 : vector<8x6xf32>
    %569 = math.exp %568 : vector<8x6xf32>
    %cst_184 = arith.constant dense<0.000000e+00> : vector<8xf32>
    %570 = vector.multi_reduction <add>, %569, %cst_184 [1] : vector<8x6xf32> to vector<8xf32>
    %571 = vector.shape_cast %570 : vector<8xf32> to vector<8x1xf32>
    %572 = tpu.reciprocal %571 {approx = true} : vector<8x1xf32> -> vector<8x1xf32>
    %573 = vector.broadcast %572 : vector<8x1xf32> to vector<8x6xf32>
    %574 = arith.mulf %569, %573 : vector<8x6xf32>
    %575 = vector.extract_strided_slice %500 {offsets = [0, 24], sizes = [6, 8], strides = [1, 1]} : vector<6x32xf32> to vector<6x8xf32>
    %cst_185 = arith.constant dense<0.000000e+00> : vector<8x8xf32>
    %576 = tpu.matmul %574, %575, %cst_185 {dimension_numbers = #tpu.dot_dimension_numbers<[1], [0], [0], [1], [0, 0, 1, 1], [], []>} : vector<8x6xf32>, vector<6x8xf32>, vector<8x8xf32> -> vector<8x8xf32>
    %577 = tpu.concatenate %519, %538, %557, %576 in 1 : vector<8x8xf32>, vector<8x8xf32>, vector<8x8xf32>, vector<8x8xf32> -> vector<8x32xf32>
    %c648 = arith.constant 648 : index
    %c0_186 = arith.constant 0 : index
    %578 = vector.load %arg0[%c648, %c0_186] : memref<1152x128xf32, #tpu.memory_space<vmem>>, vector<32x32xf32>
    %cst_187 = arith.constant dense<0.000000e+00> : vector<8x32xf32>
    %579 = tpu.matmul %577, %578, %cst_187 {dimension_numbers = #tpu.dot_dimension_numbers<[1], [0], [0], [1], [0, 0, 1, 1], [], []>} : vector<8x32xf32>, vector<32x32xf32>, vector<8x32xf32> -> vector<8x32xf32>
    %c680 = arith.constant 680 : index
    %c0_188 = arith.constant 0 : index
    %580 = vector.load %arg0[%c680, %c0_188] : memref<1152x128xf32, #tpu.memory_space<vmem>>, vector<1x32xf32>
    %581 = vector.broadcast %580 : vector<1x32xf32> to vector<8x32xf32>
    %582 = arith.addf %579, %581 : vector<8x32xf32>
    %583 = arith.addf %464, %582 : vector<8x32xf32>
    %c688 = arith.constant 688 : index
    %c0_189 = arith.constant 0 : index
    %584 = vector.load %arg0[%c688, %c0_189] : memref<1152x128xf32, #tpu.memory_space<vmem>>, vector<1x32xf32>
    %c696 = arith.constant 696 : index
    %c0_190 = arith.constant 0 : index
    %585 = vector.load %arg0[%c696, %c0_190] : memref<1152x128xf32, #tpu.memory_space<vmem>>, vector<1x32xf32>
    %cst_191 = arith.constant dense<0.000000e+00> : vector<8xf32>
    %586 = vector.multi_reduction <add>, %583, %cst_191 [1] : vector<8x32xf32> to vector<8xf32>
    %587 = vector.shape_cast %586 : vector<8xf32> to vector<8x1xf32>
    %cst_192 = arith.constant 3.200000e+01 : f32
    %588 = vector.broadcast %cst_192 : f32 to vector<8x1xf32>
    %589 = arith.divf %587, %588 : vector<8x1xf32>
    %590 = vector.broadcast %589 : vector<8x1xf32> to vector<8x32xf32>
    %591 = arith.subf %583, %590 : vector<8x32xf32>
    %592 = arith.mulf %591, %591 : vector<8x32xf32>
    %cst_193 = arith.constant dense<0.000000e+00> : vector<8xf32>
    %593 = vector.multi_reduction <add>, %592, %cst_193 [1] : vector<8x32xf32> to vector<8xf32>
    %594 = vector.shape_cast %593 : vector<8xf32> to vector<8x1xf32>
    %cst_194 = arith.constant 3.200000e+01 : f32
    %595 = vector.broadcast %cst_194 : f32 to vector<8x1xf32>
    %596 = arith.divf %594, %595 : vector<8x1xf32>
    %cst_195 = arith.constant 9.99999997E-7 : f32
    %597 = vector.broadcast %cst_195 : f32 to vector<8x1xf32>
    %598 = arith.addf %596, %597 : vector<8x1xf32>
    %599 = math.rsqrt %598 : vector<8x1xf32>
    %600 = vector.broadcast %599 : vector<8x1xf32> to vector<8x32xf32>
    %601 = arith.mulf %591, %600 : vector<8x32xf32>
    %602 = vector.broadcast %584 : vector<1x32xf32> to vector<8x32xf32>
    %603 = arith.mulf %601, %602 : vector<8x32xf32>
    %604 = vector.broadcast %585 : vector<1x32xf32> to vector<8x32xf32>
    %605 = arith.addf %603, %604 : vector<8x32xf32>
    %c704 = arith.constant 704 : index
    %c0_196 = arith.constant 0 : index
    %606 = vector.load %arg0[%c704, %c0_196] : memref<1152x128xf32, #tpu.memory_space<vmem>>, vector<32x64xf32>
    %cst_197 = arith.constant dense<0.000000e+00> : vector<8x64xf32>
    %607 = tpu.matmul %605, %606, %cst_197 {dimension_numbers = #tpu.dot_dimension_numbers<[1], [0], [0], [1], [0, 0, 1, 1], [], []>} : vector<8x32xf32>, vector<32x64xf32>, vector<8x64xf32> -> vector<8x64xf32>
    %c736 = arith.constant 736 : index
    %c0_198 = arith.constant 0 : index
    %608 = vector.load %arg0[%c736, %c0_198] : memref<1152x128xf32, #tpu.memory_space<vmem>>, vector<1x64xf32>
    %609 = vector.broadcast %608 : vector<1x64xf32> to vector<8x64xf32>
    %610 = arith.addf %607, %609 : vector<8x64xf32>
    %cst_199 = arith.constant 0.000000e+00 : f32
    %611 = vector.broadcast %cst_199 : f32 to vector<8x64xf32>
    %612 = arith.maximumf %610, %611 : vector<8x64xf32>
    %c744 = arith.constant 744 : index
    %c0_200 = arith.constant 0 : index
    %613 = vector.load %arg0[%c744, %c0_200] : memref<1152x128xf32, #tpu.memory_space<vmem>>, vector<64x32xf32>
    %cst_201 = arith.constant dense<0.000000e+00> : vector<8x32xf32>
    %614 = tpu.matmul %612, %613, %cst_201 {dimension_numbers = #tpu.dot_dimension_numbers<[1], [0], [0], [1], [0, 0, 1, 1], [], []>} : vector<8x64xf32>, vector<64x32xf32>, vector<8x32xf32> -> vector<8x32xf32>
    %c808 = arith.constant 808 : index
    %c0_202 = arith.constant 0 : index
    %615 = vector.load %arg0[%c808, %c0_202] : memref<1152x128xf32, #tpu.memory_space<vmem>>, vector<1x32xf32>
    %616 = vector.broadcast %615 : vector<1x32xf32> to vector<8x32xf32>
    %617 = arith.addf %614, %616 : vector<8x32xf32>
    %618 = arith.addf %583, %617 : vector<8x32xf32>
    %c816 = arith.constant 816 : index
    %c0_203 = arith.constant 0 : index
    %619 = vector.load %arg0[%c816, %c0_203] : memref<1152x128xf32, #tpu.memory_space<vmem>>, vector<1x32xf32>
    %c824 = arith.constant 824 : index
    %c0_204 = arith.constant 0 : index
    %620 = vector.load %arg0[%c824, %c0_204] : memref<1152x128xf32, #tpu.memory_space<vmem>>, vector<1x32xf32>
    %cst_205 = arith.constant dense<0.000000e+00> : vector<8xf32>
    %621 = vector.multi_reduction <add>, %618, %cst_205 [1] : vector<8x32xf32> to vector<8xf32>
    %622 = vector.shape_cast %621 : vector<8xf32> to vector<8x1xf32>
    %cst_206 = arith.constant 3.200000e+01 : f32
    %623 = vector.broadcast %cst_206 : f32 to vector<8x1xf32>
    %624 = arith.divf %622, %623 : vector<8x1xf32>
    %625 = vector.broadcast %624 : vector<8x1xf32> to vector<8x32xf32>
    %626 = arith.subf %618, %625 : vector<8x32xf32>
    %627 = arith.mulf %626, %626 : vector<8x32xf32>
    %cst_207 = arith.constant dense<0.000000e+00> : vector<8xf32>
    %628 = vector.multi_reduction <add>, %627, %cst_207 [1] : vector<8x32xf32> to vector<8xf32>
    %629 = vector.shape_cast %628 : vector<8xf32> to vector<8x1xf32>
    %cst_208 = arith.constant 3.200000e+01 : f32
    %630 = vector.broadcast %cst_208 : f32 to vector<8x1xf32>
    %631 = arith.divf %629, %630 : vector<8x1xf32>
    %cst_209 = arith.constant 9.99999997E-7 : f32
    %632 = vector.broadcast %cst_209 : f32 to vector<8x1xf32>
    %633 = arith.addf %631, %632 : vector<8x1xf32>
    %634 = math.rsqrt %633 : vector<8x1xf32>
    %635 = vector.broadcast %634 : vector<8x1xf32> to vector<8x32xf32>
    %636 = arith.mulf %626, %635 : vector<8x32xf32>
    %637 = vector.broadcast %619 : vector<1x32xf32> to vector<8x32xf32>
    %638 = arith.mulf %636, %637 : vector<8x32xf32>
    %639 = vector.broadcast %620 : vector<1x32xf32> to vector<8x32xf32>
    %640 = arith.addf %638, %639 : vector<8x32xf32>
    %c832 = arith.constant 832 : index
    %c0_210 = arith.constant 0 : index
    %641 = vector.load %arg0[%c832, %c0_210] : memref<1152x128xf32, #tpu.memory_space<vmem>>, vector<32x96xf32>
    %c864 = arith.constant 864 : index
    %c0_211 = arith.constant 0 : index
    %642 = vector.load %arg0[%c864, %c0_211] : memref<1152x128xf32, #tpu.memory_space<vmem>>, vector<1x96xf32>
    %cst_212 = arith.constant dense<0.000000e+00> : vector<8x96xf32>
    %643 = tpu.matmul %640, %641, %cst_212 {dimension_numbers = #tpu.dot_dimension_numbers<[1], [0], [0], [1], [0, 0, 1, 1], [], []>} : vector<8x32xf32>, vector<32x96xf32>, vector<8x96xf32> -> vector<8x96xf32>
    %644 = vector.broadcast %642 : vector<1x96xf32> to vector<8x96xf32>
    %645 = arith.addf %643, %644 : vector<8x96xf32>
    %646 = vector.extract_strided_slice %645 {offsets = [0, 0], sizes = [8, 32], strides = [1, 1]} : vector<8x96xf32> to vector<8x32xf32>
    %647 = vector.extract_strided_slice %645 {offsets = [0, 32], sizes = [8, 32], strides = [1, 1]} : vector<8x96xf32> to vector<8x32xf32>
    %648 = vector.extract_strided_slice %645 {offsets = [0, 64], sizes = [8, 32], strides = [1, 1]} : vector<8x96xf32> to vector<8x32xf32>
    %649 = vector.extract_strided_slice %646 {offsets = [0, 0], sizes = [8, 8], strides = [1, 1]} : vector<8x32xf32> to vector<8x8xf32>
    %650 = vector.extract_strided_slice %647 {offsets = [0, 0], sizes = [8, 8], strides = [1, 1]} : vector<8x32xf32> to vector<8x8xf32>
    %cst_213 = arith.constant dense<0.000000e+00> : vector<8x8xf32>
    %651 = tpu.matmul %649, %650, %cst_213 {dimension_numbers = #tpu.dot_dimension_numbers<[1], [1], [0], [0], [0, 0, 1, 0], [], []>} : vector<8x8xf32>, vector<8x8xf32>, vector<8x8xf32> -> vector<8x8xf32>
    %cst_214 = arith.constant 0.353553385 : f32
    %652 = vector.broadcast %cst_214 : f32 to vector<8x8xf32>
    %653 = arith.mulf %651, %652 : vector<8x8xf32>
    %654 = arith.addf %653, %355 : vector<8x8xf32>
    %cst_215 = arith.constant dense<0xFF800000> : vector<8xf32>
    %655 = vector.multi_reduction <maximumf>, %654, %cst_215 [1] : vector<8x8xf32> to vector<8xf32>
    %656 = vector.shape_cast %655 : vector<8xf32> to vector<8x1xf32>
    %657 = vector.broadcast %656 : vector<8x1xf32> to vector<8x8xf32>
    %658 = arith.subf %654, %657 : vector<8x8xf32>
    %659 = math.exp %658 : vector<8x8xf32>
    %cst_216 = arith.constant dense<0.000000e+00> : vector<8xf32>
    %660 = vector.multi_reduction <add>, %659, %cst_216 [1] : vector<8x8xf32> to vector<8xf32>
    %661 = vector.shape_cast %660 : vector<8xf32> to vector<8x1xf32>
    %662 = tpu.reciprocal %661 {approx = true} : vector<8x1xf32> -> vector<8x1xf32>
    %663 = vector.broadcast %662 : vector<8x1xf32> to vector<8x8xf32>
    %664 = arith.mulf %659, %663 : vector<8x8xf32>
    %665 = vector.extract_strided_slice %648 {offsets = [0, 0], sizes = [8, 8], strides = [1, 1]} : vector<8x32xf32> to vector<8x8xf32>
    %cst_217 = arith.constant dense<0.000000e+00> : vector<8x8xf32>
    %666 = tpu.matmul %664, %665, %cst_217 {dimension_numbers = #tpu.dot_dimension_numbers<[1], [0], [0], [1], [0, 0, 1, 1], [], []>} : vector<8x8xf32>, vector<8x8xf32>, vector<8x8xf32> -> vector<8x8xf32>
    %667 = vector.extract_strided_slice %646 {offsets = [0, 8], sizes = [8, 8], strides = [1, 1]} : vector<8x32xf32> to vector<8x8xf32>
    %668 = vector.extract_strided_slice %647 {offsets = [0, 8], sizes = [8, 8], strides = [1, 1]} : vector<8x32xf32> to vector<8x8xf32>
    %cst_218 = arith.constant dense<0.000000e+00> : vector<8x8xf32>
    %669 = tpu.matmul %667, %668, %cst_218 {dimension_numbers = #tpu.dot_dimension_numbers<[1], [1], [0], [0], [0, 0, 1, 0], [], []>} : vector<8x8xf32>, vector<8x8xf32>, vector<8x8xf32> -> vector<8x8xf32>
    %cst_219 = arith.constant 0.353553385 : f32
    %670 = vector.broadcast %cst_219 : f32 to vector<8x8xf32>
    %671 = arith.mulf %669, %670 : vector<8x8xf32>
    %672 = arith.addf %671, %355 : vector<8x8xf32>
    %cst_220 = arith.constant dense<0xFF800000> : vector<8xf32>
    %673 = vector.multi_reduction <maximumf>, %672, %cst_220 [1] : vector<8x8xf32> to vector<8xf32>
    %674 = vector.shape_cast %673 : vector<8xf32> to vector<8x1xf32>
    %675 = vector.broadcast %674 : vector<8x1xf32> to vector<8x8xf32>
    %676 = arith.subf %672, %675 : vector<8x8xf32>
    %677 = math.exp %676 : vector<8x8xf32>
    %cst_221 = arith.constant dense<0.000000e+00> : vector<8xf32>
    %678 = vector.multi_reduction <add>, %677, %cst_221 [1] : vector<8x8xf32> to vector<8xf32>
    %679 = vector.shape_cast %678 : vector<8xf32> to vector<8x1xf32>
    %680 = tpu.reciprocal %679 {approx = true} : vector<8x1xf32> -> vector<8x1xf32>
    %681 = vector.broadcast %680 : vector<8x1xf32> to vector<8x8xf32>
    %682 = arith.mulf %677, %681 : vector<8x8xf32>
    %683 = vector.extract_strided_slice %648 {offsets = [0, 8], sizes = [8, 8], strides = [1, 1]} : vector<8x32xf32> to vector<8x8xf32>
    %cst_222 = arith.constant dense<0.000000e+00> : vector<8x8xf32>
    %684 = tpu.matmul %682, %683, %cst_222 {dimension_numbers = #tpu.dot_dimension_numbers<[1], [0], [0], [1], [0, 0, 1, 1], [], []>} : vector<8x8xf32>, vector<8x8xf32>, vector<8x8xf32> -> vector<8x8xf32>
    %685 = vector.extract_strided_slice %646 {offsets = [0, 16], sizes = [8, 8], strides = [1, 1]} : vector<8x32xf32> to vector<8x8xf32>
    %686 = vector.extract_strided_slice %647 {offsets = [0, 16], sizes = [8, 8], strides = [1, 1]} : vector<8x32xf32> to vector<8x8xf32>
    %cst_223 = arith.constant dense<0.000000e+00> : vector<8x8xf32>
    %687 = tpu.matmul %685, %686, %cst_223 {dimension_numbers = #tpu.dot_dimension_numbers<[1], [1], [0], [0], [0, 0, 1, 0], [], []>} : vector<8x8xf32>, vector<8x8xf32>, vector<8x8xf32> -> vector<8x8xf32>
    %cst_224 = arith.constant 0.353553385 : f32
    %688 = vector.broadcast %cst_224 : f32 to vector<8x8xf32>
    %689 = arith.mulf %687, %688 : vector<8x8xf32>
    %690 = arith.addf %689, %355 : vector<8x8xf32>
    %cst_225 = arith.constant dense<0xFF800000> : vector<8xf32>
    %691 = vector.multi_reduction <maximumf>, %690, %cst_225 [1] : vector<8x8xf32> to vector<8xf32>
    %692 = vector.shape_cast %691 : vector<8xf32> to vector<8x1xf32>
    %693 = vector.broadcast %692 : vector<8x1xf32> to vector<8x8xf32>
    %694 = arith.subf %690, %693 : vector<8x8xf32>
    %695 = math.exp %694 : vector<8x8xf32>
    %cst_226 = arith.constant dense<0.000000e+00> : vector<8xf32>
    %696 = vector.multi_reduction <add>, %695, %cst_226 [1] : vector<8x8xf32> to vector<8xf32>
    %697 = vector.shape_cast %696 : vector<8xf32> to vector<8x1xf32>
    %698 = tpu.reciprocal %697 {approx = true} : vector<8x1xf32> -> vector<8x1xf32>
    %699 = vector.broadcast %698 : vector<8x1xf32> to vector<8x8xf32>
    %700 = arith.mulf %695, %699 : vector<8x8xf32>
    %701 = vector.extract_strided_slice %648 {offsets = [0, 16], sizes = [8, 8], strides = [1, 1]} : vector<8x32xf32> to vector<8x8xf32>
    %cst_227 = arith.constant dense<0.000000e+00> : vector<8x8xf32>
    %702 = tpu.matmul %700, %701, %cst_227 {dimension_numbers = #tpu.dot_dimension_numbers<[1], [0], [0], [1], [0, 0, 1, 1], [], []>} : vector<8x8xf32>, vector<8x8xf32>, vector<8x8xf32> -> vector<8x8xf32>
    %703 = vector.extract_strided_slice %646 {offsets = [0, 24], sizes = [8, 8], strides = [1, 1]} : vector<8x32xf32> to vector<8x8xf32>
    %704 = vector.extract_strided_slice %647 {offsets = [0, 24], sizes = [8, 8], strides = [1, 1]} : vector<8x32xf32> to vector<8x8xf32>
    %cst_228 = arith.constant dense<0.000000e+00> : vector<8x8xf32>
    %705 = tpu.matmul %703, %704, %cst_228 {dimension_numbers = #tpu.dot_dimension_numbers<[1], [1], [0], [0], [0, 0, 1, 0], [], []>} : vector<8x8xf32>, vector<8x8xf32>, vector<8x8xf32> -> vector<8x8xf32>
    %cst_229 = arith.constant 0.353553385 : f32
    %706 = vector.broadcast %cst_229 : f32 to vector<8x8xf32>
    %707 = arith.mulf %705, %706 : vector<8x8xf32>
    %708 = arith.addf %707, %355 : vector<8x8xf32>
    %cst_230 = arith.constant dense<0xFF800000> : vector<8xf32>
    %709 = vector.multi_reduction <maximumf>, %708, %cst_230 [1] : vector<8x8xf32> to vector<8xf32>
    %710 = vector.shape_cast %709 : vector<8xf32> to vector<8x1xf32>
    %711 = vector.broadcast %710 : vector<8x1xf32> to vector<8x8xf32>
    %712 = arith.subf %708, %711 : vector<8x8xf32>
    %713 = math.exp %712 : vector<8x8xf32>
    %cst_231 = arith.constant dense<0.000000e+00> : vector<8xf32>
    %714 = vector.multi_reduction <add>, %713, %cst_231 [1] : vector<8x8xf32> to vector<8xf32>
    %715 = vector.shape_cast %714 : vector<8xf32> to vector<8x1xf32>
    %716 = tpu.reciprocal %715 {approx = true} : vector<8x1xf32> -> vector<8x1xf32>
    %717 = vector.broadcast %716 : vector<8x1xf32> to vector<8x8xf32>
    %718 = arith.mulf %713, %717 : vector<8x8xf32>
    %719 = vector.extract_strided_slice %648 {offsets = [0, 24], sizes = [8, 8], strides = [1, 1]} : vector<8x32xf32> to vector<8x8xf32>
    %cst_232 = arith.constant dense<0.000000e+00> : vector<8x8xf32>
    %720 = tpu.matmul %718, %719, %cst_232 {dimension_numbers = #tpu.dot_dimension_numbers<[1], [0], [0], [1], [0, 0, 1, 1], [], []>} : vector<8x8xf32>, vector<8x8xf32>, vector<8x8xf32> -> vector<8x8xf32>
    %721 = tpu.concatenate %666, %684, %702, %720 in 1 : vector<8x8xf32>, vector<8x8xf32>, vector<8x8xf32>, vector<8x8xf32> -> vector<8x32xf32>
    %c872 = arith.constant 872 : index
    %c0_233 = arith.constant 0 : index
    %722 = vector.load %arg0[%c872, %c0_233] : memref<1152x128xf32, #tpu.memory_space<vmem>>, vector<32x32xf32>
    %cst_234 = arith.constant dense<0.000000e+00> : vector<8x32xf32>
    %723 = tpu.matmul %721, %722, %cst_234 {dimension_numbers = #tpu.dot_dimension_numbers<[1], [0], [0], [1], [0, 0, 1, 1], [], []>} : vector<8x32xf32>, vector<32x32xf32>, vector<8x32xf32> -> vector<8x32xf32>
    %c904 = arith.constant 904 : index
    %c0_235 = arith.constant 0 : index
    %724 = vector.load %arg0[%c904, %c0_235] : memref<1152x128xf32, #tpu.memory_space<vmem>>, vector<1x32xf32>
    %725 = vector.broadcast %724 : vector<1x32xf32> to vector<8x32xf32>
    %726 = arith.addf %723, %725 : vector<8x32xf32>
    %727 = arith.addf %618, %726 : vector<8x32xf32>
    %c912 = arith.constant 912 : index
    %c0_236 = arith.constant 0 : index
    %728 = vector.load %arg0[%c912, %c0_236] : memref<1152x128xf32, #tpu.memory_space<vmem>>, vector<1x32xf32>
    %c920 = arith.constant 920 : index
    %c0_237 = arith.constant 0 : index
    %729 = vector.load %arg0[%c920, %c0_237] : memref<1152x128xf32, #tpu.memory_space<vmem>>, vector<1x32xf32>
    %cst_238 = arith.constant dense<0.000000e+00> : vector<8xf32>
    %730 = vector.multi_reduction <add>, %727, %cst_238 [1] : vector<8x32xf32> to vector<8xf32>
    %731 = vector.shape_cast %730 : vector<8xf32> to vector<8x1xf32>
    %cst_239 = arith.constant 3.200000e+01 : f32
    %732 = vector.broadcast %cst_239 : f32 to vector<8x1xf32>
    %733 = arith.divf %731, %732 : vector<8x1xf32>
    %734 = vector.broadcast %733 : vector<8x1xf32> to vector<8x32xf32>
    %735 = arith.subf %727, %734 : vector<8x32xf32>
    %736 = arith.mulf %735, %735 : vector<8x32xf32>
    %cst_240 = arith.constant dense<0.000000e+00> : vector<8xf32>
    %737 = vector.multi_reduction <add>, %736, %cst_240 [1] : vector<8x32xf32> to vector<8xf32>
    %738 = vector.shape_cast %737 : vector<8xf32> to vector<8x1xf32>
    %cst_241 = arith.constant 3.200000e+01 : f32
    %739 = vector.broadcast %cst_241 : f32 to vector<8x1xf32>
    %740 = arith.divf %738, %739 : vector<8x1xf32>
    %cst_242 = arith.constant 9.99999997E-7 : f32
    %741 = vector.broadcast %cst_242 : f32 to vector<8x1xf32>
    %742 = arith.addf %740, %741 : vector<8x1xf32>
    %743 = math.rsqrt %742 : vector<8x1xf32>
    %744 = vector.broadcast %743 : vector<8x1xf32> to vector<8x32xf32>
    %745 = arith.mulf %735, %744 : vector<8x32xf32>
    %746 = vector.broadcast %728 : vector<1x32xf32> to vector<8x32xf32>
    %747 = arith.mulf %745, %746 : vector<8x32xf32>
    %748 = vector.broadcast %729 : vector<1x32xf32> to vector<8x32xf32>
    %749 = arith.addf %747, %748 : vector<8x32xf32>
    %c928 = arith.constant 928 : index
    %c0_243 = arith.constant 0 : index
    %750 = vector.load %arg0[%c928, %c0_243] : memref<1152x128xf32, #tpu.memory_space<vmem>>, vector<32x96xf32>
    %c960 = arith.constant 960 : index
    %c0_244 = arith.constant 0 : index
    %751 = vector.load %arg0[%c960, %c0_244] : memref<1152x128xf32, #tpu.memory_space<vmem>>, vector<1x96xf32>
    %752 = vector.extract_strided_slice %750 {offsets = [0, 0], sizes = [32, 32], strides = [1, 1]} : vector<32x96xf32> to vector<32x32xf32>
    %cst_245 = arith.constant dense<0.000000e+00> : vector<8x32xf32>
    %753 = tpu.matmul %749, %752, %cst_245 {dimension_numbers = #tpu.dot_dimension_numbers<[1], [0], [0], [1], [0, 0, 1, 1], [], []>} : vector<8x32xf32>, vector<32x32xf32>, vector<8x32xf32> -> vector<8x32xf32>
    %754 = vector.extract_strided_slice %751 {offsets = [0, 0], sizes = [1, 32], strides = [1, 1]} : vector<1x96xf32> to vector<1x32xf32>
    %755 = vector.broadcast %754 : vector<1x32xf32> to vector<8x32xf32>
    %756 = arith.addf %753, %755 : vector<8x32xf32>
    %757 = vector.extract_strided_slice %750 {offsets = [0, 32], sizes = [32, 64], strides = [1, 1]} : vector<32x96xf32> to vector<32x64xf32>
    %cst_246 = arith.constant dense<0.000000e+00> : vector<6x64xf32>
    %758 = tpu.matmul %353, %757, %cst_246 {dimension_numbers = #tpu.dot_dimension_numbers<[1], [0], [0], [1], [0, 0, 1, 1], [], []>} : vector<6x32xf32>, vector<32x64xf32>, vector<6x64xf32> -> vector<6x64xf32>
    %759 = vector.extract_strided_slice %751 {offsets = [0, 32], sizes = [1, 64], strides = [1, 1]} : vector<1x96xf32> to vector<1x64xf32>
    %760 = vector.broadcast %759 : vector<1x64xf32> to vector<6x64xf32>
    %761 = arith.addf %758, %760 : vector<6x64xf32>
    %762 = vector.extract_strided_slice %761 {offsets = [0, 0], sizes = [6, 32], strides = [1, 1]} : vector<6x64xf32> to vector<6x32xf32>
    %763 = vector.extract_strided_slice %761 {offsets = [0, 32], sizes = [6, 32], strides = [1, 1]} : vector<6x64xf32> to vector<6x32xf32>
    %764 = vector.extract_strided_slice %756 {offsets = [0, 0], sizes = [8, 8], strides = [1, 1]} : vector<8x32xf32> to vector<8x8xf32>
    %765 = vector.extract_strided_slice %762 {offsets = [0, 0], sizes = [6, 8], strides = [1, 1]} : vector<6x32xf32> to vector<6x8xf32>
    %cst_247 = arith.constant dense<0.000000e+00> : vector<8x6xf32>
    %766 = tpu.matmul %764, %765, %cst_247 {dimension_numbers = #tpu.dot_dimension_numbers<[1], [1], [0], [0], [0, 0, 1, 0], [], []>} : vector<8x8xf32>, vector<6x8xf32>, vector<8x6xf32> -> vector<8x6xf32>
    %cst_248 = arith.constant 0.353553385 : f32
    %767 = vector.broadcast %cst_248 : f32 to vector<8x6xf32>
    %768 = arith.mulf %766, %767 : vector<8x6xf32>
    %769 = vector.broadcast %35 : vector<1x6xf32> to vector<8x6xf32>
    %770 = arith.addf %768, %769 : vector<8x6xf32>
    %cst_249 = arith.constant dense<0xFF800000> : vector<8xf32>
    %771 = vector.multi_reduction <maximumf>, %770, %cst_249 [1] : vector<8x6xf32> to vector<8xf32>
    %772 = vector.shape_cast %771 : vector<8xf32> to vector<8x1xf32>
    %773 = vector.broadcast %772 : vector<8x1xf32> to vector<8x6xf32>
    %774 = arith.subf %770, %773 : vector<8x6xf32>
    %775 = math.exp %774 : vector<8x6xf32>
    %cst_250 = arith.constant dense<0.000000e+00> : vector<8xf32>
    %776 = vector.multi_reduction <add>, %775, %cst_250 [1] : vector<8x6xf32> to vector<8xf32>
    %777 = vector.shape_cast %776 : vector<8xf32> to vector<8x1xf32>
    %778 = tpu.reciprocal %777 {approx = true} : vector<8x1xf32> -> vector<8x1xf32>
    %779 = vector.broadcast %778 : vector<8x1xf32> to vector<8x6xf32>
    %780 = arith.mulf %775, %779 : vector<8x6xf32>
    %781 = vector.extract_strided_slice %763 {offsets = [0, 0], sizes = [6, 8], strides = [1, 1]} : vector<6x32xf32> to vector<6x8xf32>
    %cst_251 = arith.constant dense<0.000000e+00> : vector<8x8xf32>
    %782 = tpu.matmul %780, %781, %cst_251 {dimension_numbers = #tpu.dot_dimension_numbers<[1], [0], [0], [1], [0, 0, 1, 1], [], []>} : vector<8x6xf32>, vector<6x8xf32>, vector<8x8xf32> -> vector<8x8xf32>
    %783 = vector.extract_strided_slice %756 {offsets = [0, 8], sizes = [8, 8], strides = [1, 1]} : vector<8x32xf32> to vector<8x8xf32>
    %784 = vector.extract_strided_slice %762 {offsets = [0, 8], sizes = [6, 8], strides = [1, 1]} : vector<6x32xf32> to vector<6x8xf32>
    %cst_252 = arith.constant dense<0.000000e+00> : vector<8x6xf32>
    %785 = tpu.matmul %783, %784, %cst_252 {dimension_numbers = #tpu.dot_dimension_numbers<[1], [1], [0], [0], [0, 0, 1, 0], [], []>} : vector<8x8xf32>, vector<6x8xf32>, vector<8x6xf32> -> vector<8x6xf32>
    %cst_253 = arith.constant 0.353553385 : f32
    %786 = vector.broadcast %cst_253 : f32 to vector<8x6xf32>
    %787 = arith.mulf %785, %786 : vector<8x6xf32>
    %788 = vector.broadcast %35 : vector<1x6xf32> to vector<8x6xf32>
    %789 = arith.addf %787, %788 : vector<8x6xf32>
    %cst_254 = arith.constant dense<0xFF800000> : vector<8xf32>
    %790 = vector.multi_reduction <maximumf>, %789, %cst_254 [1] : vector<8x6xf32> to vector<8xf32>
    %791 = vector.shape_cast %790 : vector<8xf32> to vector<8x1xf32>
    %792 = vector.broadcast %791 : vector<8x1xf32> to vector<8x6xf32>
    %793 = arith.subf %789, %792 : vector<8x6xf32>
    %794 = math.exp %793 : vector<8x6xf32>
    %cst_255 = arith.constant dense<0.000000e+00> : vector<8xf32>
    %795 = vector.multi_reduction <add>, %794, %cst_255 [1] : vector<8x6xf32> to vector<8xf32>
    %796 = vector.shape_cast %795 : vector<8xf32> to vector<8x1xf32>
    %797 = tpu.reciprocal %796 {approx = true} : vector<8x1xf32> -> vector<8x1xf32>
    %798 = vector.broadcast %797 : vector<8x1xf32> to vector<8x6xf32>
    %799 = arith.mulf %794, %798 : vector<8x6xf32>
    %800 = vector.extract_strided_slice %763 {offsets = [0, 8], sizes = [6, 8], strides = [1, 1]} : vector<6x32xf32> to vector<6x8xf32>
    %cst_256 = arith.constant dense<0.000000e+00> : vector<8x8xf32>
    %801 = tpu.matmul %799, %800, %cst_256 {dimension_numbers = #tpu.dot_dimension_numbers<[1], [0], [0], [1], [0, 0, 1, 1], [], []>} : vector<8x6xf32>, vector<6x8xf32>, vector<8x8xf32> -> vector<8x8xf32>
    %802 = vector.extract_strided_slice %756 {offsets = [0, 16], sizes = [8, 8], strides = [1, 1]} : vector<8x32xf32> to vector<8x8xf32>
    %803 = vector.extract_strided_slice %762 {offsets = [0, 16], sizes = [6, 8], strides = [1, 1]} : vector<6x32xf32> to vector<6x8xf32>
    %cst_257 = arith.constant dense<0.000000e+00> : vector<8x6xf32>
    %804 = tpu.matmul %802, %803, %cst_257 {dimension_numbers = #tpu.dot_dimension_numbers<[1], [1], [0], [0], [0, 0, 1, 0], [], []>} : vector<8x8xf32>, vector<6x8xf32>, vector<8x6xf32> -> vector<8x6xf32>
    %cst_258 = arith.constant 0.353553385 : f32
    %805 = vector.broadcast %cst_258 : f32 to vector<8x6xf32>
    %806 = arith.mulf %804, %805 : vector<8x6xf32>
    %807 = vector.broadcast %35 : vector<1x6xf32> to vector<8x6xf32>
    %808 = arith.addf %806, %807 : vector<8x6xf32>
    %cst_259 = arith.constant dense<0xFF800000> : vector<8xf32>
    %809 = vector.multi_reduction <maximumf>, %808, %cst_259 [1] : vector<8x6xf32> to vector<8xf32>
    %810 = vector.shape_cast %809 : vector<8xf32> to vector<8x1xf32>
    %811 = vector.broadcast %810 : vector<8x1xf32> to vector<8x6xf32>
    %812 = arith.subf %808, %811 : vector<8x6xf32>
    %813 = math.exp %812 : vector<8x6xf32>
    %cst_260 = arith.constant dense<0.000000e+00> : vector<8xf32>
    %814 = vector.multi_reduction <add>, %813, %cst_260 [1] : vector<8x6xf32> to vector<8xf32>
    %815 = vector.shape_cast %814 : vector<8xf32> to vector<8x1xf32>
    %816 = tpu.reciprocal %815 {approx = true} : vector<8x1xf32> -> vector<8x1xf32>
    %817 = vector.broadcast %816 : vector<8x1xf32> to vector<8x6xf32>
    %818 = arith.mulf %813, %817 : vector<8x6xf32>
    %819 = vector.extract_strided_slice %763 {offsets = [0, 16], sizes = [6, 8], strides = [1, 1]} : vector<6x32xf32> to vector<6x8xf32>
    %cst_261 = arith.constant dense<0.000000e+00> : vector<8x8xf32>
    %820 = tpu.matmul %818, %819, %cst_261 {dimension_numbers = #tpu.dot_dimension_numbers<[1], [0], [0], [1], [0, 0, 1, 1], [], []>} : vector<8x6xf32>, vector<6x8xf32>, vector<8x8xf32> -> vector<8x8xf32>
    %821 = vector.extract_strided_slice %756 {offsets = [0, 24], sizes = [8, 8], strides = [1, 1]} : vector<8x32xf32> to vector<8x8xf32>
    %822 = vector.extract_strided_slice %762 {offsets = [0, 24], sizes = [6, 8], strides = [1, 1]} : vector<6x32xf32> to vector<6x8xf32>
    %cst_262 = arith.constant dense<0.000000e+00> : vector<8x6xf32>
    %823 = tpu.matmul %821, %822, %cst_262 {dimension_numbers = #tpu.dot_dimension_numbers<[1], [1], [0], [0], [0, 0, 1, 0], [], []>} : vector<8x8xf32>, vector<6x8xf32>, vector<8x6xf32> -> vector<8x6xf32>
    %cst_263 = arith.constant 0.353553385 : f32
    %824 = vector.broadcast %cst_263 : f32 to vector<8x6xf32>
    %825 = arith.mulf %823, %824 : vector<8x6xf32>
    %826 = vector.broadcast %35 : vector<1x6xf32> to vector<8x6xf32>
    %827 = arith.addf %825, %826 : vector<8x6xf32>
    %cst_264 = arith.constant dense<0xFF800000> : vector<8xf32>
    %828 = vector.multi_reduction <maximumf>, %827, %cst_264 [1] : vector<8x6xf32> to vector<8xf32>
    %829 = vector.shape_cast %828 : vector<8xf32> to vector<8x1xf32>
    %830 = vector.broadcast %829 : vector<8x1xf32> to vector<8x6xf32>
    %831 = arith.subf %827, %830 : vector<8x6xf32>
    %832 = math.exp %831 : vector<8x6xf32>
    %cst_265 = arith.constant dense<0.000000e+00> : vector<8xf32>
    %833 = vector.multi_reduction <add>, %832, %cst_265 [1] : vector<8x6xf32> to vector<8xf32>
    %834 = vector.shape_cast %833 : vector<8xf32> to vector<8x1xf32>
    %835 = tpu.reciprocal %834 {approx = true} : vector<8x1xf32> -> vector<8x1xf32>
    %836 = vector.broadcast %835 : vector<8x1xf32> to vector<8x6xf32>
    %837 = arith.mulf %832, %836 : vector<8x6xf32>
    %838 = vector.extract_strided_slice %763 {offsets = [0, 24], sizes = [6, 8], strides = [1, 1]} : vector<6x32xf32> to vector<6x8xf32>
    %cst_266 = arith.constant dense<0.000000e+00> : vector<8x8xf32>
    %839 = tpu.matmul %837, %838, %cst_266 {dimension_numbers = #tpu.dot_dimension_numbers<[1], [0], [0], [1], [0, 0, 1, 1], [], []>} : vector<8x6xf32>, vector<6x8xf32>, vector<8x8xf32> -> vector<8x8xf32>
    %840 = tpu.concatenate %782, %801, %820, %839 in 1 : vector<8x8xf32>, vector<8x8xf32>, vector<8x8xf32>, vector<8x8xf32> -> vector<8x32xf32>
    %c968 = arith.constant 968 : index
    %c0_267 = arith.constant 0 : index
    %841 = vector.load %arg0[%c968, %c0_267] : memref<1152x128xf32, #tpu.memory_space<vmem>>, vector<32x32xf32>
    %cst_268 = arith.constant dense<0.000000e+00> : vector<8x32xf32>
    %842 = tpu.matmul %840, %841, %cst_268 {dimension_numbers = #tpu.dot_dimension_numbers<[1], [0], [0], [1], [0, 0, 1, 1], [], []>} : vector<8x32xf32>, vector<32x32xf32>, vector<8x32xf32> -> vector<8x32xf32>
    %c1000 = arith.constant 1000 : index
    %c0_269 = arith.constant 0 : index
    %843 = vector.load %arg0[%c1000, %c0_269] : memref<1152x128xf32, #tpu.memory_space<vmem>>, vector<1x32xf32>
    %844 = vector.broadcast %843 : vector<1x32xf32> to vector<8x32xf32>
    %845 = arith.addf %842, %844 : vector<8x32xf32>
    %846 = arith.addf %727, %845 : vector<8x32xf32>
    %c1008 = arith.constant 1008 : index
    %c0_270 = arith.constant 0 : index
    %847 = vector.load %arg0[%c1008, %c0_270] : memref<1152x128xf32, #tpu.memory_space<vmem>>, vector<1x32xf32>
    %c1016 = arith.constant 1016 : index
    %c0_271 = arith.constant 0 : index
    %848 = vector.load %arg0[%c1016, %c0_271] : memref<1152x128xf32, #tpu.memory_space<vmem>>, vector<1x32xf32>
    %cst_272 = arith.constant dense<0.000000e+00> : vector<8xf32>
    %849 = vector.multi_reduction <add>, %846, %cst_272 [1] : vector<8x32xf32> to vector<8xf32>
    %850 = vector.shape_cast %849 : vector<8xf32> to vector<8x1xf32>
    %cst_273 = arith.constant 3.200000e+01 : f32
    %851 = vector.broadcast %cst_273 : f32 to vector<8x1xf32>
    %852 = arith.divf %850, %851 : vector<8x1xf32>
    %853 = vector.broadcast %852 : vector<8x1xf32> to vector<8x32xf32>
    %854 = arith.subf %846, %853 : vector<8x32xf32>
    %855 = arith.mulf %854, %854 : vector<8x32xf32>
    %cst_274 = arith.constant dense<0.000000e+00> : vector<8xf32>
    %856 = vector.multi_reduction <add>, %855, %cst_274 [1] : vector<8x32xf32> to vector<8xf32>
    %857 = vector.shape_cast %856 : vector<8xf32> to vector<8x1xf32>
    %cst_275 = arith.constant 3.200000e+01 : f32
    %858 = vector.broadcast %cst_275 : f32 to vector<8x1xf32>
    %859 = arith.divf %857, %858 : vector<8x1xf32>
    %cst_276 = arith.constant 9.99999997E-7 : f32
    %860 = vector.broadcast %cst_276 : f32 to vector<8x1xf32>
    %861 = arith.addf %859, %860 : vector<8x1xf32>
    %862 = math.rsqrt %861 : vector<8x1xf32>
    %863 = vector.broadcast %862 : vector<8x1xf32> to vector<8x32xf32>
    %864 = arith.mulf %854, %863 : vector<8x32xf32>
    %865 = vector.broadcast %847 : vector<1x32xf32> to vector<8x32xf32>
    %866 = arith.mulf %864, %865 : vector<8x32xf32>
    %867 = vector.broadcast %848 : vector<1x32xf32> to vector<8x32xf32>
    %868 = arith.addf %866, %867 : vector<8x32xf32>
    %c1024 = arith.constant 1024 : index
    %c0_277 = arith.constant 0 : index
    %869 = vector.load %arg0[%c1024, %c0_277] : memref<1152x128xf32, #tpu.memory_space<vmem>>, vector<32x64xf32>
    %cst_278 = arith.constant dense<0.000000e+00> : vector<8x64xf32>
    %870 = tpu.matmul %868, %869, %cst_278 {dimension_numbers = #tpu.dot_dimension_numbers<[1], [0], [0], [1], [0, 0, 1, 1], [], []>} : vector<8x32xf32>, vector<32x64xf32>, vector<8x64xf32> -> vector<8x64xf32>
    %c1056 = arith.constant 1056 : index
    %c0_279 = arith.constant 0 : index
    %871 = vector.load %arg0[%c1056, %c0_279] : memref<1152x128xf32, #tpu.memory_space<vmem>>, vector<1x64xf32>
    %872 = vector.broadcast %871 : vector<1x64xf32> to vector<8x64xf32>
    %873 = arith.addf %870, %872 : vector<8x64xf32>
    %cst_280 = arith.constant 0.000000e+00 : f32
    %874 = vector.broadcast %cst_280 : f32 to vector<8x64xf32>
    %875 = arith.maximumf %873, %874 : vector<8x64xf32>
    %c1064 = arith.constant 1064 : index
    %c0_281 = arith.constant 0 : index
    %876 = vector.load %arg0[%c1064, %c0_281] : memref<1152x128xf32, #tpu.memory_space<vmem>>, vector<64x32xf32>
    %cst_282 = arith.constant dense<0.000000e+00> : vector<8x32xf32>
    %877 = tpu.matmul %875, %876, %cst_282 {dimension_numbers = #tpu.dot_dimension_numbers<[1], [0], [0], [1], [0, 0, 1, 1], [], []>} : vector<8x64xf32>, vector<64x32xf32>, vector<8x32xf32> -> vector<8x32xf32>
    %c1128 = arith.constant 1128 : index
    %c0_283 = arith.constant 0 : index
    %878 = vector.load %arg0[%c1128, %c0_283] : memref<1152x128xf32, #tpu.memory_space<vmem>>, vector<1x32xf32>
    %879 = vector.broadcast %878 : vector<1x32xf32> to vector<8x32xf32>
    %880 = arith.addf %877, %879 : vector<8x32xf32>
    %881 = arith.addf %846, %880 : vector<8x32xf32>
    %c1136 = arith.constant 1136 : index
    %c0_284 = arith.constant 0 : index
    %882 = vector.load %arg0[%c1136, %c0_284] : memref<1152x128xf32, #tpu.memory_space<vmem>>, vector<1x32xf32>
    %c1144 = arith.constant 1144 : index
    %c0_285 = arith.constant 0 : index
    %883 = vector.load %arg0[%c1144, %c0_285] : memref<1152x128xf32, #tpu.memory_space<vmem>>, vector<1x32xf32>
    %cst_286 = arith.constant dense<0.000000e+00> : vector<8xf32>
    %884 = vector.multi_reduction <add>, %881, %cst_286 [1] : vector<8x32xf32> to vector<8xf32>
    %885 = vector.shape_cast %884 : vector<8xf32> to vector<8x1xf32>
    %cst_287 = arith.constant 3.200000e+01 : f32
    %886 = vector.broadcast %cst_287 : f32 to vector<8x1xf32>
    %887 = arith.divf %885, %886 : vector<8x1xf32>
    %888 = vector.broadcast %887 : vector<8x1xf32> to vector<8x32xf32>
    %889 = arith.subf %881, %888 : vector<8x32xf32>
    %890 = arith.mulf %889, %889 : vector<8x32xf32>
    %cst_288 = arith.constant dense<0.000000e+00> : vector<8xf32>
    %891 = vector.multi_reduction <add>, %890, %cst_288 [1] : vector<8x32xf32> to vector<8xf32>
    %892 = vector.shape_cast %891 : vector<8xf32> to vector<8x1xf32>
    %cst_289 = arith.constant 3.200000e+01 : f32
    %893 = vector.broadcast %cst_289 : f32 to vector<8x1xf32>
    %894 = arith.divf %892, %893 : vector<8x1xf32>
    %cst_290 = arith.constant 9.99999997E-7 : f32
    %895 = vector.broadcast %cst_290 : f32 to vector<8x1xf32>
    %896 = arith.addf %894, %895 : vector<8x1xf32>
    %897 = math.rsqrt %896 : vector<8x1xf32>
    %898 = vector.broadcast %897 : vector<8x1xf32> to vector<8x32xf32>
    %899 = arith.mulf %889, %898 : vector<8x32xf32>
    %900 = vector.broadcast %882 : vector<1x32xf32> to vector<8x32xf32>
    %901 = arith.mulf %899, %900 : vector<8x32xf32>
    %902 = vector.broadcast %883 : vector<1x32xf32> to vector<8x32xf32>
    %903 = arith.addf %901, %902 : vector<8x32xf32>
    %c0_291 = arith.constant 0 : index
    %c0_292 = arith.constant 0 : index
    %904 = vector.load %arg3[%c0_291, %c0_292] : memref<8x32xf32, #tpu.memory_space<vmem>>, vector<8x32xf32>
    tpu.vector_store %arg3[%c0_291, %c0_292], %903 {strides = array<i32>} : memref<8x32xf32, #tpu.memory_space<vmem>>, vector<8x32xf32>,
    return
  }
}

</mosaic_0001>

<bundles_post_ra>
// kernel: encoder_decoder_forward.1
= control target key start
LH: loop header
LB: loop body
LE: loop exit
PB: predicated region body
PF: predicated region fallthrough
CT: control target
= control target key end

     0   :  { %v8708_v2 = vmov 0   ;;  %vm520_vm0 = vcmask 1045504   ;;  %vm516_vm1 = vcmask 883712   ;;  %s10174_s0 = inlined_call_operand.vmem [shape: f32[1152,128], index: 0, kind: input, shape index: {}]   ;;  %s10175_s1 = inlined_call_operand.vmem [shape: bf16[108,1536], index: 1, kind: input, shape index: {}]   ;;  %s10176_s2 = inlined_call_operand.vmem [shape: f32[24,128], index: 2, kind: input, shape index: {}]   ;;  %s10177_s3 = inlined_call_operand.hbm [shape: f32[8,32], index: 3, kind: output, shape index: {}]  }
   0x1   :  { %v8437_v0 = vld [vmem:[%s10175_s1 + $0x4] ss:$48 sps:$4 sm:$0xff]   ;;  %v8439_v1 = vld [vmem:[%s10175_s1 + $0xc] ss:$48 sps:$4 sm:$0xff]   ;;  %589 = vmatprep.mubr.bf16.mxu0 %v8708_v2  ;;  %630 = vmatprep.mubr.bf16.mxu1 %v8708_v2  ;;  %v8441_v3 = vld [vmem:[%s10175_s1] ss:$48 sps:$4 sm:$0xff]  }
   0x2   :  { %557 = vmatprep.subr.bf16.mxu0 %v8437_v0  ;;  %v8442_v4 = vld [vmem:[%s10175_s1 + $0x8] ss:$48 sps:$4 sm:$0xff]   ;;  %8416 = vset.pattern.permute.xlu0 %v8708_v2  ;;  %v8443_v5 = vld [vmem:[%s10175_s1 + $0x64] ss:$48 sps:$4 sm:$0xff]   ;;  %v8445_v6 = vld [vmem:[%s10175_s1 + $0x6c] ss:$48 sps:$4 sm:$0xff]  }
   0x3   :  { %598 = vmatprep.subr.bf16.mxu1 %v8439_v1  ;;  %558 = vmatpush1.bf16.msra.mxu0 %v8441_v3  ;;  %v8447_v7 = vld [vmem:[%s10175_s1 + $0x60] ss:$48 sps:$4 sm:$0xff]   ;;  %v8448_v8 = vld [vmem:[%s10175_s1 + $0x68] ss:$48 sps:$4 sm:$0xff]   ;;  %v8449_v9 = vld [vmem:[%s10175_s1 + $0xc4] ss:$48 sps:$4 sm:$0xff]  }
   0x4   :  { %599 = vmatpush1.bf16.msra.mxu1 %v8442_v4  ;;  %559 = vmatprep.subr.bf16.mxu0 %v8443_v5  ;;  %v8451_v10 = vld [vmem:[%s10175_s1 + $0xcc] ss:$48 sps:$4 sm:$0xff]   ;;  %v8453_v11 = vld [vmem:[%s10175_s1 + $0xc0] ss:$48 sps:$4 sm:$0xff]   ;;  %v8454_v12 = vld [vmem:[%s10175_s1 + $0xc8] ss:$48 sps:$4 sm:$0xff]  }
   0x5   :  { %600 = vmatprep.subr.bf16.mxu1 %v8445_v6  ;;  %v8455_v13 = vld [vmem:[%s10175_s1 + $0x124] ss:$48 sps:$4 sm:$0xff]   ;;  %v8457_v14 = vld [vmem:[%s10175_s1 + $0x12c] ss:$48 sps:$4 sm:$0xff]   ;;  %v8459_v15 = vld [vmem:[%s10175_s1 + $0x120] ss:$48 sps:$4 sm:$0xff]  }
   0x6   :  { %v8460_v16 = vld [vmem:[%s10175_s1 + $0x128] ss:$48 sps:$4 sm:$0xff]   ;;  %v8461_v17 = vld [vmem:[%s10175_s1 + $0x184] ss:$48 sps:$4 sm:$0xff]   ;;  %v8463_v18 = vld [vmem:[%s10175_s1 + $0x18c] ss:$48 sps:$4 sm:$0xff]  }
   0x7   :  { %560 = vmatpush1.bf16.msra.mxu0 %v8447_v7  ;;  %v8465_v19 = vld [vmem:[%s10175_s1 + $0x180] ss:$48 sps:$4 sm:$0xff]   ;;  %v8466_v20 = vld [vmem:[%s10175_s1 + $0x188] ss:$48 sps:$4 sm:$0xff]   ;;  %v8467_v21 = vld [vmem:[%s10175_s1 + $0x1e4] ss:$48 sps:$4 sm:$0xff]  }
   0x8   :  { %601 = vmatpush1.bf16.msra.mxu1 %v8448_v8  ;;  %561 = vmatprep.subr.bf16.mxu0 %v8449_v9  ;;  %v8469_v22 = vld [vmem:[%s10175_s1 + $0x1ec] ss:$48 sps:$4 sm:$0xff]   ;;  %v8471_v23 = vld [vmem:[%s10175_s1 + $0x1e0] ss:$48 sps:$4 sm:$0xff]   ;;  %v8472_v24 = vld [vmem:[%s10175_s1 + $0x1e8] ss:$48 sps:$4 sm:$0xff]  }
   0x9   :  { %602 = vmatprep.subr.bf16.mxu1 %v8451_v10  ;;  %v8473_v25 = vld [vmem:[%s10175_s1 + $0x244] ss:$48 sps:$4 sm:$0x3f]   ;;  %v8475_v26 = vld [vmem:[%s10175_s1 + $0x24c] ss:$48 sps:$4 sm:$0x3f]  }
   0xa   :  { %v8477_v27 = vld [vmem:[%s10175_s1 + $0x240] ss:$48 sps:$4 sm:$0x3f]   ;;  %v8478_v28 = vld [vmem:[%s10175_s1 + $0x248] ss:$48 sps:$4 sm:$0x3f]  }
   0xb   :  { %562 = vmatpush1.bf16.msra.mxu0 %v8453_v11  ;;  %v100_v29 = vld [vmem:[%s10174_s0] sm:$0xff]  ;;  %v522_v31 = vsel %vm520_vm0, %v8477_v27, 0  ;;  %v528_v32 = vsel %vm520_vm0, %v8478_v28, 0  ;;  %v8484_v33 = vld [vmem:[%s10175_s1 + $0x1c] ss:$48 sps:$4 sm:$0xff]  }
   0xc   :  { %603 = vmatpush1.bf16.msra.mxu1 %v8454_v12  ;;  %563 = vmatprep.subr.bf16.mxu0 %v8455_v13  ;;  %v8481_v30 = vld [vmem:[%s10175_s1 + $0x14] ss:$48 sps:$4 sm:$0xff]   ;;  %v8847_v34 = vpack.c.bf16 %v100_v29, %v100_v29  ;;  %v8479_v35 = vld [vmem:[%s10175_s1 + $0x10] ss:$48 sps:$4 sm:$0xff]   ;;  %v8482_v36 = vld [vmem:[%s10175_s1 + $0x18] ss:$48 sps:$4 sm:$0xff]  }
   0xd   :  { %604 = vmatprep.subr.bf16.mxu1 %v8457_v14  ;;  %v8487_v37 = vld [vmem:[%s10175_s1 + $0x74] ss:$48 sps:$4 sm:$0xff]   ;;  %v8490_v38 = vld [vmem:[%s10175_s1 + $0x7c] ss:$48 sps:$4 sm:$0xff]   ;;  %v8485_v39 = vld [vmem:[%s10175_s1 + $0x70] ss:$48 sps:$4 sm:$0xff]  }
   0xe   :  { %v8488_v40 = vld [vmem:[%s10175_s1 + $0x78] ss:$48 sps:$4 sm:$0xff]   ;;  %v8493_v41 = vld [vmem:[%s10175_s1 + $0xd4] ss:$48 sps:$4 sm:$0xff]   ;;  %v8496_v42 = vld [vmem:[%s10175_s1 + $0xdc] ss:$48 sps:$4 sm:$0xff]  }
   0xf   :  { %564 = vmatpush1.bf16.msra.mxu0 %v8459_v15  ;;  %v8491_v43 = vld [vmem:[%s10175_s1 + $0xd0] ss:$48 sps:$4 sm:$0xff]   ;;  %v8494_v44 = vld [vmem:[%s10175_s1 + $0xd8] ss:$48 sps:$4 sm:$0xff]   ;;  %v8499_v45 = vld [vmem:[%s10175_s1 + $0x134] ss:$48 sps:$4 sm:$0xff]  }
  0x10   :  { %605 = vmatpush1.bf16.msra.mxu1 %v8460_v16  ;;  %565 = vmatprep.subr.bf16.mxu0 %v8461_v17  ;;  %v8502_v46 = vld [vmem:[%s10175_s1 + $0x13c] ss:$48 sps:$4 sm:$0xff]   ;;  %v8497_v47 = vld [vmem:[%s10175_s1 + $0x130] ss:$48 sps:$4 sm:$0xff]   ;;  %v8500_v48 = vld [vmem:[%s10175_s1 + $0x138] ss:$48 sps:$4 sm:$0xff]  }
  0x11   :  { %606 = vmatprep.subr.bf16.mxu1 %v8463_v18  ;;  %v8505_v49 = vld [vmem:[%s10175_s1 + $0x194] ss:$48 sps:$4 sm:$0xff]   ;;  %v8508_v50 = vld [vmem:[%s10175_s1 + $0x19c] ss:$48 sps:$4 sm:$0xff]   ;;  %v8503_v51 = vld [vmem:[%s10175_s1 + $0x190] ss:$48 sps:$4 sm:$0xff]  }
  0x12   :  { %v8506_v52 = vld [vmem:[%s10175_s1 + $0x198] ss:$48 sps:$4 sm:$0xff]   ;;  %v8511_v53 = vld [vmem:[%s10175_s1 + $0x1f4] ss:$48 sps:$4 sm:$0xff]   ;;  %v8514_v54 = vld [vmem:[%s10175_s1 + $0x1fc] ss:$48 sps:$4 sm:$0xff]  }
  0x13   :  { %566 = vmatpush1.bf16.msra.mxu0 %v8465_v19  ;;  %v8509_v55 = vld [vmem:[%s10175_s1 + $0x1f0] ss:$48 sps:$4 sm:$0xff]   ;;  %v8512_v56 = vld [vmem:[%s10175_s1 + $0x1f8] ss:$48 sps:$4 sm:$0xff]   ;;  %v8523_v61 = vld [vmem:[%s10175_s1 + $0x24] ss:$48 sps:$4 sm:$0xff]  }
  0x14   :  { %607 = vmatpush1.bf16.msra.mxu1 %v8466_v20  ;;  %567 = vmatprep.subr.bf16.mxu0 %v8467_v21  ;;  %v8515_v57 = vld [vmem:[%s10175_s1 + $0x254] ss:$48 sps:$4 sm:$0x3f]   ;;  %v8517_v58 = vld [vmem:[%s10175_s1 + $0x25c] ss:$48 sps:$4 sm:$0x3f]  }
  0x15   :  { %608 = vmatprep.subr.bf16.mxu1 %v8469_v22  ;;  %v8519_v59 = vld [vmem:[%s10175_s1 + $0x250] ss:$48 sps:$4 sm:$0x3f]   ;;  %v8520_v60 = vld [vmem:[%s10175_s1 + $0x258] ss:$48 sps:$4 sm:$0x3f]  }
  0x16   :  { %v534_v62 = vsel %vm520_vm0, %v8519_v59, 0  ;;  %v540_v63 = vsel %vm520_vm0, %v8520_v60, 0  ;;  %v8526_v0 = vld [vmem:[%s10175_s1 + $0x2c] ss:$48 sps:$4 sm:$0xff]   ;;  %v8521_v1 = vld [vmem:[%s10175_s1 + $0x20] ss:$48 sps:$4 sm:$0xff]  }
  0x17   :  { %568 = vmatpush1.bf16.msra.mxu0 %v8471_v23  ;;  %v8524_v3 = vld [vmem:[%s10175_s1 + $0x28] ss:$48 sps:$4 sm:$0xff]   ;;  %v8529_v5 = vld [vmem:[%s10175_s1 + $0x84] ss:$48 sps:$4 sm:$0xff]   ;;  %v8532_v6 = vld [vmem:[%s10175_s1 + $0x8c] ss:$48 sps:$4 sm:$0xff]  }
  0x18   :  { %609 = vmatpush1.bf16.msra.mxu1 %v8472_v24  ;;  %7329 = vmatprep.subr.msk.bf16.mxu0 %vm520_vm0, %v8473_v25  ;;  %v102_v4 = vld [vmem:[%s10174_s0 + $0x8] sm:$0xff] }
  0x19   :  { %7331 = vmatprep.subr.msk.bf16.mxu1 %vm520_vm0, %v8475_v26  ;;  %105 = vperm.xlu0 %8416, %v102_v4  }
  0x1b   :  { %570 = vmatpush1.bf16.msra.mxu0 %v522_v31 }
  0x1c   :  { %611 = vmatpush1.bf16.msra.mxu1 %v528_v32  ;;  %639 = vmatprep.subr.bf16.mxu0 %v8481_v30 }
  0x1d   :  { %680 = vmatprep.subr.bf16.mxu1 %v8484_v33 }
  0x1e   :  { %7330 = vmatmul.mubr.msk.bf16.vlgmr.msra.gmra.mrb[0].mxu0 %vm516_vm1, %v8847_v34 }
  0x1f   :  { %7332 = vmatmul.mubr.msk.bf16.vlgmr.msra.gmra.mrb[0].mxu1 %vm516_vm1, %v8847_v34  ;;  %640 = vmatpush1.bf16.msra.mxu0 %v8479_v35 }
  0x20   :  { %681 = vmatpush1.bf16.msra.mxu1 %v8482_v36  ;;  %641 = vmatprep.subr.bf16.mxu0 %v8487_v37 }
  0x21   :  { %682 = vmatprep.subr.bf16.mxu1 %v8490_v38  ;;  %671 = vmatprep.mubr.bf16.mxu0 %v8708_v2 }
  0x22   :  { %712 = vmatprep.mubr.bf16.mxu1 %v8708_v2 }
  0x23   :  { %642 = vmatpush1.bf16.msra.mxu0 %v8485_v39 }
  0x24   :  { %683 = vmatpush1.bf16.msra.mxu1 %v8488_v40  ;;  %643 = vmatprep.subr.bf16.mxu0 %v8493_v41 }
  0x25   :  { %684 = vmatprep.subr.bf16.mxu1 %v8496_v42 }
  0x27   :  { %644 = vmatpush1.bf16.msra.mxu0 %v8491_v43 }
  0x28   :  { %685 = vmatpush1.bf16.msra.mxu1 %v8494_v44  ;;  %645 = vmatprep.subr.bf16.mxu0 %v8499_v45 }
  0x29   :  { %686 = vmatprep.subr.bf16.mxu1 %v8502_v46 }
  0x2b   :  { %646 = vmatpush1.bf16.msra.mxu0 %v8497_v47 }
  0x2c   :  { %687 = vmatpush1.bf16.msra.mxu1 %v8500_v48  ;;  %647 = vmatprep.subr.bf16.mxu0 %v8505_v49 }
  0x2d   :  { %688 = vmatprep.subr.bf16.mxu1 %v8508_v50 }
  0x2f   :  { %648 = vmatpush1.bf16.msra.mxu0 %v8503_v51 }
  0x30   :  { %689 = vmatpush1.bf16.msra.mxu1 %v8506_v52  ;;  %649 = vmatprep.subr.bf16.mxu0 %v8511_v53 }
  0x31   :  { %690 = vmatprep.subr.bf16.mxu1 %v8514_v54 }
  0x33   :  { %650 = vmatpush1.bf16.msra.mxu0 %v8509_v55 }
  0x34   :  { %691 = vmatpush1.bf16.msra.mxu1 %v8512_v56  ;;  %7333 = vmatprep.subr.msk.bf16.mxu0 %vm520_vm0, %v8515_v57 }
  0x35   :  { %7335 = vmatprep.subr.msk.bf16.mxu1 %vm520_vm0, %v8517_v58 }
  0x37   :  { %652 = vmatpush1.bf16.msra.mxu0 %v534_v62 }
  0x38   :  { %693 = vmatpush1.bf16.msra.mxu1 %v540_v63  ;;  %721 = vmatprep.subr.bf16.mxu0 %v8523_v61 }
  0x39   :  { %762 = vmatprep.subr.bf16.mxu1 %v8526_v0 }
  0x3a   :  { %8 = vsyncpa [#allocation3], 0  ;;  %7334 = vmatmul.mubr.msk.bf16.vlgmr.msra.gmra.mrb[4].mxu0 %vm516_vm1, %v8847_v34  ;;  %v8527_v7 = vld [vmem:[%s10175_s1 + $0x80] ss:$48 sps:$4 sm:$0xff]   ;;  %v8530_v8 = vld [vmem:[%s10175_s1 + $0x88] ss:$48 sps:$4 sm:$0xff]  }
  0x3b   :  { %7336 = vmatmul.mubr.msk.bf16.vlgmr.msra.gmra.mrb[4].mxu1 %vm516_vm1, %v8847_v34  ;;  %722 = vmatpush1.bf16.msra.mxu0 %v8521_v1  ;;  %v8535_v9 = vld [vmem:[%s10175_s1 + $0xe4] ss:$48 sps:$4 sm:$0xff]   ;;  %v8538_v10 = vld [vmem:[%s10175_s1 + $0xec] ss:$48 sps:$4 sm:$0xff]   ;;  %v8533_v11 = vld [vmem:[%s10175_s1 + $0xe0] ss:$48 sps:$4 sm:$0xff]  }
  0x3c   :  { %763 = vmatpush1.bf16.msra.mxu1 %v8524_v3  ;;  %723 = vmatprep.subr.bf16.mxu0 %v8529_v5  ;;  %v8536_v12 = vld [vmem:[%s10175_s1 + $0xe8] ss:$48 sps:$4 sm:$0xff]   ;;  %v8541_v13 = vld [vmem:[%s10175_s1 + $0x144] ss:$48 sps:$4 sm:$0xff]   ;;  %v8539_v14 = vld [vmem:[%s10175_s1 + $0x140] ss:$48 sps:$4 sm:$0xff]  }
  0x3d   :  { %764 = vmatprep.subr.bf16.mxu1 %v8532_v6  ;;  %753 = vmatprep.mubr.bf16.mxu0 %v8708_v2  ;;  %v8542_v15 = vld [vmem:[%s10175_s1 + $0x148] ss:$48 sps:$4 sm:$0xff]   ;;  %v8547_v16 = vld [vmem:[%s10175_s1 + $0x1a4] ss:$48 sps:$4 sm:$0xff]   ;;  %v8550_v17 = vld [vmem:[%s10175_s1 + $0x1ac] ss:$48 sps:$4 sm:$0xff]  }
  0x3e   :  { %794 = vmatprep.mubr.bf16.mxu1 %v8708_v2  ;;  %v8544_v2 = vld [vmem:[%s10175_s1 + $0x14c] ss:$48 sps:$4 sm:$0xff]   ;;  %v8545_v18 = vld [vmem:[%s10175_s1 + $0x1a0] ss:$48 sps:$4 sm:$0xff]   ;;  %v8548_v19 = vld [vmem:[%s10175_s1 + $0x1a8] ss:$48 sps:$4 sm:$0xff]  }
  0x3f   :  { %724 = vmatpush1.bf16.msra.mxu0 %v8527_v7  ;;  %v8553_v20 = vld [vmem:[%s10175_s1 + $0x204] ss:$48 sps:$4 sm:$0xff]   ;;  %v8556_v21 = vld [vmem:[%s10175_s1 + $0x20c] ss:$48 sps:$4 sm:$0xff]   ;;  %v8551_v22 = vld [vmem:[%s10175_s1 + $0x200] ss:$48 sps:$4 sm:$0xff]  }
  0x40   :  { %765 = vmatpush1.bf16.msra.mxu1 %v8530_v8  ;;  %725 = vmatprep.subr.bf16.mxu0 %v8535_v9  ;;  %v8554_v23 = vld [vmem:[%s10175_s1 + $0x208] ss:$48 sps:$4 sm:$0xff]   ;;  %v8557_v24 = vld [vmem:[%s10175_s1 + $0x264] ss:$48 sps:$4 sm:$0x3f]   ;;  %vm8710_vm2 = vmmov 0  }
  0x41   :  { %766 = vmatprep.subr.bf16.mxu1 %v8538_v10  ;;  %v8559_v25 = vld [vmem:[%s10175_s1 + $0x26c] ss:$48 sps:$4 sm:$0x3f]   ;;  %v8561_v26 = vld [vmem:[%s10175_s1 + $0x260] ss:$48 sps:$4 sm:$0x3f]  }
  0x42   :  { %v8562_v27 = vld [vmem:[%s10175_s1 + $0x268] ss:$48 sps:$4 sm:$0x3f]   ;;  %v546_v28 = vsel %vm520_vm0, %v8561_v26, 0  ;;  %vm833_vm3 = vcmask 7168   ;;  %vm835_vm4 = vcmask 15360  }
  0x43   :  { %726 = vmatpush1.bf16.msra.mxu0 %v8533_v11  ;;  %v552_v29 = vsel %vm520_vm0, %v8562_v27, 0  ;;  %vm837_vm5 = vcmask 23552   ;;  %vm839_vm6 = vcmask 31744   ;;  %vm841_vm7 = vcmask 39936   ;;  %s8712_s12 = smov 80   ;;  %s8713_s13 = smov 96  }
  0x44   :  { %767 = vmatpush1.bf16.msra.mxu1 %v8536_v12  ;;  %727 = vmatprep.subr.bf16.mxu0 %v8541_v13  ;;  %vm882_vm8 = vcmask 64512   ;;  %vm959_vm9 = vcmask 259072   ;;  %vm993_vm10 = vcmask 261120   ;;  %s8714_s14 = smov 88   ;;  %s8715_s15 = smov 120   ;;  %vm1150_vm11 = vcmask 46080  }
  0x45   :  { %768 = vmatprep.subr.bf16.mxu1 %v8544_v2  ;;  %s8716_s16 = smov 112   ;;  %s8717_s17 = smov 72   ;;  %vm1164_vm12 = vcmask 48128   ;;  %vm1757_vm13 = vcmask 130048   ;;  %vm1759_vm14 = vcmask 195584   ;;  %vm1965_vm15 = vcmask 523264  }
  0x46   :  { %s8718_s18 = smov 104   ;;  %s8719_s21 = smov 64  }
  0x47   :  { %728 = vmatpush1.bf16.msra.mxu0 %v8539_v14  ;;  %s8720_s1 = smov 48   ;;  %s8721_s22 = smov 40  }
  0x48   :  { %769 = vmatpush1.bf16.msra.mxu1 %v8542_v15  ;;  %729 = vmatprep.subr.bf16.mxu0 %v8547_v16  ;;  %s8722_s23 = smov 56   ;;  %s8723_s5 = smov 8  }
  0x49   :  { %770 = vmatprep.subr.bf16.mxu1 %v8550_v17  ;;  %s8724_s6 = smov 16   ;;  %s8725_s7 = smov 24  }
  0x4a   :  { %s8726_s9 = smov [#allocation2]  }
  0x4b   :  { %730 = vmatpush1.bf16.msra.mxu0 %v8545_v18  ;;  %s7237_s10 = sshll.u32 %s8726_s9, 4  ;;  %s7238_s10 = int_to_ptr.vmem [resolvable:$true] %s7237_s10 }
  0x4c   :  { %771 = vmatpush1.bf16.msra.mxu1 %v8548_v19  ;;  %731 = vmatprep.subr.bf16.mxu0 %v8553_v20  ;;  %s8684_s11 = scalar_lea.vmem %s7238_s10, 128  ;;  %p8689_p1 = scmp.lt.s32.totalorder %s7238_s10, %s7238_s10 }
  0x4d   :  { %772 = vmatprep.subr.bf16.mxu1 %v8556_v21  ;;  %v844_v21 = vld [vmem:[%s10174_s0 + $0x10] sm:$0xff]  ;;  %p8685_p0 = scmp.ne.s32.totalorder %s7238_s10, %s8684_s11  ;;  %p8690_p2 = scmp.lt.s32.totalorder %s8684_s11, %s8684_s11 }
  0x4f   :  { %732 = vmatpush1.bf16.msra.mxu0 %v8551_v22  ;;  %v8709_v22 = vmov 0.0   ;;  %p8691_p3 = por %p8690_p2, %p8689_p1 }
  0x50   :  { %773 = vmatpush1.bf16.msra.mxu1 %v8554_v23  ;;  %7337 = vmatprep.subr.msk.bf16.mxu0 %vm520_vm0, %v8557_v24 }
  0x51   :  { %7339 = vmatprep.subr.msk.bf16.mxu1 %vm520_vm0, %v8559_v25  ;;  %p8692_p4 = pnand %p8691_p3, %p8685_p0 }
  0x53   :  { %734 = vmatpush1.bf16.msra.mxu0 %v546_v28 }
  0x54   :  { %775 = vmatpush1.bf16.msra.mxu1 %v552_v29  ;;  %7722 = vmatprep.subr.mxu0 %v8709_v22 }
  0x56   :  { %7338 = vmatmul.mubr.msk.bf16.vlgmr.msra.gmra.mrb[8].mxu0 %vm516_vm1, %v8847_v34 }
  0x57   :  { %7340 = vmatmul.mubr.msk.bf16.vlgmr.msra.gmra.mrb[8].mxu1 %vm516_vm1, %v8847_v34  ;;  %7724 = vmatprep.mubr.msk.f32.mxu0 %vm8710_vm2, %v8709_v22 }
  0x58   :  { %7723 = vmatpush3.msra.mxu0 %v844_v21  ;;  %7735 = vmatprep.mubr.msk.f32.mxu1 %vm8710_vm2, %v8709_v22 }
  0x59   :  { %7738 = vmatprep.subr.mxu0 %v8709_v22 }
  0x98   :  { %v106_v30 = vpop.permute.xlu0 %105 }
  0xf1   :  { %v591_v31 = vpop.f32.mrb[0].mxu0 }
  0xf2   :  { %v632_v32 = vpop.f32.mrb[0].mxu1  ;;  %v593_v33 = vpop.f32.mrb[1].mxu0  ;;  %v592_v37 = vadd.f32 %v591_v31, %v106_v30 }
  0xf3   :  { %v634_v35 = vpop.f32.mrb[1].mxu1  ;;  %v633_v36 = vadd.f32 %v632_v32, %v106_v30  ;;  %v594_v38 = vadd.f32 %v593_v33, %v106_v30  ;;  %v595_v40 = vpop.f32.mrb[2].mxu0 }
  0xf4   :  { %v635_v39 = vadd.f32 %v634_v35, %v106_v30  ;;  %v636_v41 = vpop.f32.mrb[2].mxu1  ;;  %v596_v42 = vpop.f32.mrb[3].mxu0  ;;  %v803_v45 = vmax.f32 %v592_v37, 0.0  ;;  %v7341_v37 = vld [vmem:[%s10174_s0 + $0x18] ss:$0 sm:$0xff] }
  0xf5   :  { %v637_v43 = vpop.f32.mrb[3].mxu1  ;;  %v805_v44 = vmax.f32 %v633_v36, 0.0  ;;  %v804_v46 = vmax.f32 %v594_v38, 0.0 }
  0xf6   :  { %v806_v47 = vmax.f32 %v635_v39, 0.0 }
  0xf7   :  { %v815_v49 = vadd.f32 %v804_v46, %v803_v45 }
  0xf8   :  { %v818_v48 = vadd.f32 %v806_v47, %v805_v44  ;;  %v984_v47 = vld [vmem:[%s10174_s0 + $0x30] sm:$0xff] }
  0xf9   :  { %816 = vadd.xlane.f32.xlu0 %v815_v49 }
  0xfa   :  { %819 = vadd.xlane.f32.xlu1 %v818_v48  ;;  %v985_v48 = vld [vmem:[%s10174_s0 + $0x38] sm:$0xff] }
  0xfb   :  { %v8242_v49 = vpack.c.bf16 %v985_v48, %v984_v47 }
 0x10d   :  { %v673_v34 = vpop.f32.mrb[4].mxu0 }
 0x10e   :  { %v714_v50 = vpop.f32.mrb[4].mxu1  ;;  %v674_v51 = vadd.f32 %v673_v34, %v106_v30  ;;  %v675_v52 = vpop.f32.mrb[5].mxu0  ;;  %v8711_v34 = vmov 0.0|0.0  }
 0x10f   :  { %v715_v53 = vadd.f32 %v714_v50, %v106_v30  ;;  %v716_v54 = vpop.f32.mrb[5].mxu1  ;;  %v676_v55 = vadd.f32 %v675_v52, %v106_v30  ;;  %v677_v56 = vpop.f32.mrb[6].mxu0  ;;  %8241 = vmatprep.subr.bf16.mxu1 %v8711_v34  ;;  %v986_v50 = vld [vmem:[%s10174_s0 + $0x40] sm:$0xff] }
 0x110   :  { %v717_v57 = vadd.f32 %v716_v54, %v106_v30  ;;  %v718_v58 = vpop.f32.mrb[6].mxu1  ;;  %v807_v59 = vmax.f32 %v674_v51, 0.0  ;;  %v678_v61 = vpop.f32.mrb[7].mxu0  ;;  %8243 = vmatpush3.bf16.msra.mxu1 %v8242_v49  ;;  %v987_v51 = vld [vmem:[%s10174_s0 + $0x48] sm:$0xff] }
 0x111   :  { %v809_v60 = vmax.f32 %v715_v53, 0.0  ;;  %v719_v62 = vpop.f32.mrb[7].mxu1  ;;  %v808_v63 = vmax.f32 %v676_v55, 0.0  ;;  %8244 = vmatprep.subr.bf16.mxu1 %v8711_v34  ;;  %v8245_v52 = vpack.c.bf16 %v987_v51, %v986_v50 }
 0x112   :  { %v810_v0 = vmax.f32 %v717_v57, 0.0  ;;  %v7343_v57 = vld [vmem:[%s10174_s0 + $0x20] ss:$0 sm:$0xff]  ;;  %v7345_v62 = vld [vmem:[%s10174_s0 + $0x50] ss:$0 sm:$0xff] }
 0x113   :  { %v821_v1 = vadd.f32 %v808_v63, %v807_v59  ;;  %v7344_v59 = vld [vmem:[%s10174_s0 + $0x28] ss:$0 sm:$0xff] }
 0x114   :  { %v824_v3 = vadd.f32 %v810_v0, %v809_v60  ;;  %8246 = vmatpush3.bf16.msra.mxu1 %v8245_v52 }
 0x115   :  { %822 = vadd.xlane.f32.xlu1 %v821_v1  ;;  %7743 = vmatprep.subr.mxu1 %v8709_v22 }
 0x119   :  { %825 = vadd.xlane.f32.xlu1 %v824_v3 }
 0x129   :  { %v755_v4 = vpop.f32.mrb[8].mxu0 }
 0x12a   :  { %v796_v5 = vpop.f32.mrb[8].mxu1  ;;  %v756_v6 = vadd.f32 %v755_v4, %v106_v30  ;;  %v757_v8 = vpop.f32.mrb[9].mxu0 }
 0x12b   :  { %v797_v7 = vadd.f32 %v796_v5, %v106_v30  ;;  %v798_v9 = vpop.f32.mrb[9].mxu1  ;;  %v758_v10 = vadd.f32 %v757_v8, %v106_v30  ;;  %v759_v12 = vpop.f32.mrb[10].mxu0 }
 0x12c   :  { %v799_v11 = vadd.f32 %v798_v9, %v106_v30  ;;  %v800_v13 = vpop.f32.mrb[10].mxu1  ;;  %v811_v2 = vmax.f32 %v756_v6, 0.0  ;;  %v760_v15 = vpop.f32.mrb[11].mxu0 }
 0x12d   :  { %v813_v14 = vmax.f32 %v797_v7, 0.0  ;;  %v801_v16 = vpop.f32.mrb[11].mxu1  ;;  %v812_v17 = vmax.f32 %v758_v10, 0.0 }
 0x12e   :  { %v814_v18 = vmax.f32 %v799_v11, 0.0  ;;  %v9126_v11 = vld [vmem:[%s10176_s2 + $0x8] ss:$0 sm:$0xff] }
 0x12f   :  { %v827_v19 = vadd.f32 %v812_v17, %v811_v2 }
 0x130   :  { %v830_v20 = vadd.f32 %v814_v18, %v813_v14 }
 0x131   :  { %828 = vadd.xlane.f32.xlu1 %v827_v19 }
 0x135   :  { %831 = vadd.xlane.f32.xlu1 %v830_v20 }
 0x186   :  { %v817_v26 = vpop.xlane.xlu0 %816 }
 0x187   :  { %v820_v23 = vpop.xlane.xlu1 %819 }
 0x188   :  { %v834_v28 = vsel %vm833_vm3, %v817_v26, %v820_v23 }
 0x1a2   :  { %v823_v24 = vpop.xlane.xlu1 %822 }
 0x1a3   :  { %v836_v29 = vsel %vm835_vm4, %v834_v28, %v823_v24 }
 0x1a6   :  { %v826_v25 = vpop.xlane.xlu1 %825 }
 0x1a7   :  { %v838_v30 = vsel %vm837_vm5, %v836_v29, %v826_v25 }
 0x1be   :  { %v829_v27 = vpop.xlane.xlu1 %828 }
 0x1bf   :  { %v840_v31 = vsel %vm839_vm6, %v838_v30, %v829_v27 }
 0x1c2   :  { %v832_v32 = vpop.xlane.xlu1 %831 }
 0x1c3   :  { %v842_v33 = vsel %vm841_vm7, %v840_v31, %v832_v32 }
 0x1c4   :  { %v843_v35 = vmul.f32 0.00390625, %v842_v33 }
 0x1c6   :  { %850 = vxpose.xlu1.b32.start.end [1/1] (short) (narrow) %v843_v35, 8 }
 0x246   :  { %v866_v36 = vpop.trf.xlu1 }
 0x247   :  { %7725 = vmatmul.mubr.msk.f32.vlgmr.msra.gmra.mrb[12].mxu0 %vm882_vm8, %v866_v36 }
 0x248   :  { %7740 = vmatprep.mubr.msk.f32.mxu0 %vm8710_vm2, %v8709_v22 }
 0x31a   :  { %v952_v38 = vpop.f32.mrb[12].mxu0 }
 0x31b   :  { %v9053_v39 = vadd.f32 %v7341_v37, %v952_v38  ;;  %v7726_v40 = vpop.f32.mrb[13].mxu0 }
 0x31d   :  { %v960_v41 = vsel %vm959_vm9, %v9053_v39, 0.0 }
 0x31e   :  { %961 = vadd.xlane.f32.xlu0 %v960_v41 }
 0x3ab   :  { %v962_v42 = vpop.xlane.xlu0 %961 }
 0x3ac   :  { %v964_v43 = vmul.f32 0.03125, %v962_v42 }
 0x3ae   :  { %v965_v44 = vsub.f32 %v9053_v39, %v964_v43 }
 0x3b0   :  { %v966_v45 = vmul.f32 %v965_v44, %v965_v44 }
 0x3b2   :  { %v967_v46 = vsel %vm959_vm9, %v966_v45, 0.0 }
 0x3b3   :  { %968 = vadd.xlane.f32.xlu0 %v967_v46 }
 0x440   :  { %v969_v53 = vpop.xlane.xlu0 %968 }
 0x441   :  { %v970_v54 = vmul.f32 0.03125, %v969_v53 }
 0x443   :  { %v971_v55 = vadd.f32 1e-06, %v970_v54 }
 0x445   :  { %8563 = vrsqrt.f32 %v971_v55 }
 0x44f   :  { %v8564_v56 = vpop.eup %8563 }
 0x450   :  { %v973_v58 = vmul.f32 %v8564_v56, %v965_v44 }
 0x452   :  { %v978_v60 = vmul.f32 %v7343_v57, %v973_v58 }
 0x454   :  { %v983_v61 = vadd.f32 %v7344_v59, %v978_v60 }
 0x456   :  { %7736 = vmatmul.mubr.msk.f32.vlgmr.msra.gmra.mrb[12].mxu1 %vm993_vm10, %v983_v61 }
 0x457   :  { %7745 = vmatprep.mubr.msk.f32.mxu1 %vm8710_vm2, %v8709_v22 }
 0x529   :  { %v1063_v63 = vpop.f32.mrb[12].mxu1 }
 0x52a   :  { %v9086_v0 = vadd.f32 %v7345_v62, %v1063_v63  ;;  %v7737_v1 = vpop.f32.mrb[13].mxu1 }
 0x52c   :  { %1410 = vrot.lane.b32.xlu1 %v9086_v0, %s8712_s12  ;;  %1068 = vrot.lane.b32.xlu0 %v9086_v0, %s8713_s13 }
 0x530   :  { %1242 = vrot.lane.b32.xlu0 %v9086_v0, %s8714_s14 }
 0x534   :  { %1240 = vrot.lane.b32.xlu0 %v9086_v0, %s8715_s15 }
 0x538   :  { %1408 = vrot.lane.b32.xlu0 %v9086_v0, %s8716_s16 }
 0x53c   :  { %1578 = vrot.lane.b32.xlu0 %v9086_v0, %s8717_s17 }
 0x540   :  { %1576 = vrot.lane.b32.xlu0 %v9086_v0, %s8718_s18 }
 0x59e   :  { %v1069_v3 = vpop.permute.xlu0 %1068  ;;  %v1411_v6 = vpop.permute.xlu1 %1410 }
 0x59f   :  { %7739 = vmatpush3.xpose.msk.msra.mxu0 %vm882_vm8, %v1069_v3 }
 0x5a0   :  { %7748 = vmatprep.subr.mxu0 %v8709_v22 }
 0x5a2   :  { %7741 = vmatmul.mubr.msk.f32.vlgmr.msra.gmra.mrb[14].mxu0 %vm882_vm8, %v9086_v0  ;;  %v1243_v4 = vpop.permute.xlu0 %1242 }
 0x5a3   :  { %7749 = vmatpush3.xpose.msk.msra.mxu0 %vm882_vm8, %v1243_v4  ;;  %7750 = vmatprep.mubr.msk.f32.mxu0 %vm8710_vm2, %v8709_v22 }
 0x5a4   :  { %7758 = vmatprep.subr.mxu0 %v8709_v22 }
 0x5a6   :  { %v1241_v5 = vpop.permute.xlu0 %1240 }
 0x5a7   :  { %7751 = vmatmul.mubr.msk.f32.vlgmr.msra.gmra.mrb[16].mxu0 %vm882_vm8, %v1241_v5 }
 0x5a8   :  { %7759 = vmatpush3.xpose.msk.msra.mxu0 %vm882_vm8, %v1411_v6  ;;  %7760 = vmatprep.mubr.msk.f32.mxu0 %vm8710_vm2, %v8709_v22  ;;  %v1761_v6 = vld [vmem:[%s10174_s0 + $0x58] sm:$0xff] }
 0x5a9   :  { %7768 = vmatprep.subr.mxu0 %v8709_v22 }
 0x5aa   :  { %v1409_v7 = vpop.permute.xlu0 %1408 }
 0x5ab   :  { %7761 = vmatmul.mubr.msk.f32.vlgmr.msra.gmra.mrb[18].mxu0 %vm882_vm8, %v1409_v7  ;;  %v1762_v7 = vld [vmem:[%s10174_s0 + $0x60] sm:$0xff] }
 0x5ac   :  { %7770 = vmatprep.mubr.msk.f32.mxu0 %vm8710_vm2, %v8709_v22 }
 0x5ae   :  { %v1579_v8 = vpop.permute.xlu0 %1578 }
 0x5af   :  { %7769 = vmatpush3.xpose.msk.msra.mxu0 %vm882_vm8, %v1579_v8  ;;  %v8248_v8 = vpack.c.bf16 %v1762_v7, %v1761_v6 }
 0x5b0   :  { %8259 = vmatprep.subr.bf16.mxu0 %v8711_v34 }
 0x5b2   :  { %v1577_v9 = vpop.permute.xlu0 %1576 }
 0x5b3   :  { %7771 = vmatmul.mubr.msk.f32.vlgmr.msra.gmra.mrb[20].mxu0 %vm882_vm8, %v1577_v9 }
 0x5b4   :  { %7816 = vmatprep.mubr.msk.f32.mxu0 %vm8710_vm2, %v8709_v22 }
 0x675   :  { %v1140_v10 = vpop.f32.mrb[14].mxu0 }
 0x676   :  { %v1144_v12 = vmul.f32 0.35355338, %v1140_v10  ;;  %v7742_v13 = vpop.f32.mrb[15].mxu0 }
 0x677   :  { %v1764_v13 = vld [vmem:[%s10174_s0 + $0x70] sm:$0xff] }
 0x678   :  { %v1149_v2 = vadd.f32 %v9126_v11, %v1144_v12  ;;  %v1763_v12 = vld [vmem:[%s10174_s0 + $0x68] sm:$0xff] }
 0x67a   :  { %v1314_v14 = vpop.f32.mrb[16].mxu0  ;;  %v1151_v15 = vsel %vm1150_vm11, %v1149_v2, -inf }
 0x67b   :  { %v1318_v16 = vmul.f32 0.35355338, %v1314_v14  ;;  %1152 = vmax.xlane.f32.xlu0 %v1151_v15  ;;  %v7752_v17 = vpop.f32.mrb[17].mxu0 }
 0x67d   :  { %v1319_v18 = vadd.f32 %v9126_v11, %v1318_v16 }
 0x67e   :  { %v1482_v19 = vpop.f32.mrb[18].mxu0 }
 0x67f   :  { %v1486_v20 = vmul.f32 0.35355338, %v1482_v19  ;;  %v7762_v21 = vpop.f32.mrb[19].mxu0  ;;  %v1320_v23 = vsel %vm1150_vm11, %v1319_v18, -inf }
 0x680   :  { %1321 = vmax.xlane.f32.xlu1 %v1320_v23 }
 0x681   :  { %v1487_v24 = vadd.f32 %v9126_v11, %v1486_v20 }
 0x683   :  { %v1488_v25 = vsel %vm1150_vm11, %v1487_v24, -inf }
 0x684   :  { %1489 = vmax.xlane.f32.xlu0 %v1488_v25 }
 0x686   :  { %v1650_v26 = vpop.f32.mrb[20].mxu0 }
 0x687   :  { %v1654_v27 = vmul.f32 0.35355338, %v1650_v26  ;;  %v7772_v28 = vpop.f32.mrb[21].mxu0 }
 0x689   :  { %v1655_v29 = vadd.f32 %v9126_v11, %v1654_v27  ;;  %v7364_v27 = vld [vmem:[%s10174_s0 + $0x78] ss:$0 sm:$0xff] }
 0x68b   :  { %v1656_v30 = vsel %vm1150_vm11, %v1655_v29, -inf }
 0x68c   :  { %1657 = vmax.xlane.f32.xlu0 %v1656_v30 }
 0x691   :  { %1162 = vrot.lane.b32.xlu1 %v9086_v0, %s8719_s21 }
 0x695   :  { %1499 = vrot.lane.b32.xlu1 %v9086_v0, %s8720_s1 }
 0x699   :  { %1667 = vrot.lane.b32.xlu1 %v9086_v0, %s8721_s22 }
 0x708   :  { %v1153_v31 = vpop.xlane.xlu0 %1152 }
 0x709   :  { %v1154_v32 = vsub.f32 %v1149_v2, %v1153_v31  ;;  %v8251_v2 = vpack.c.bf16 %v1764_v13, %v1763_v12 }
 0x70b   :  { %v1155_v33 = vmul.f32 1.442695, %v1154_v32 }
 0x70d   :  { %8565 = vpow2.f32 %v1155_v33  ;;  %v1322_v35 = vpop.xlane.xlu1 %1321 }
 0x70e   :  { %v1323_v36 = vsub.f32 %v1319_v18, %v1322_v35 }
 0x710   :  { %v1324_v37 = vmul.f32 1.442695, %v1323_v36 }
 0x711   :  { %v1163_v38 = vpop.permute.xlu1 %1162  ;;  %v1490_v40 = vpop.xlane.xlu0 %1489 }
 0x712   :  { %8567 = vpow2.f32 %v1324_v37  ;;  %v1491_v41 = vsub.f32 %v1487_v24, %v1490_v40  ;;  %7744 = vmatpush3.msk.msra.mxu1 %vm520_vm0, %v1163_v38  ;;  %v1869_v40 = vld [vmem:[%s10174_s0 + $0x90] sm:$0xff] }
 0x713   :  { %7753 = vmatprep.subr.mxu1 %v8709_v22 }
 0x714   :  { %v1492_v42 = vmul.f32 1.442695, %v1491_v41 }
 0x715   :  { %v1500_v61 = vpop.permute.xlu1 %1499 }
 0x716   :  { %8569 = vpow2.f32 %v1492_v42  ;;  %v1871_v42 = vld [vmem:[%s10174_s0 + $0xa0] sm:$0xff] }
 0x717   :  { %v8566_v43 = vpop.eup %8565 }
 0x718   :  { %v1157_v44 = vsel %vm1150_vm11, %v8566_v43, 0.0 }
 0x719   :  { %1158 = vadd.xlane.f32.xlu0 %v1157_v44  ;;  %v1658_v45 = vpop.xlane.xlu0 %1657  ;;  %v1668_v3 = vpop.permute.xlu1 %1667 }
 0x71a   :  { %v1659_v46 = vsub.f32 %v1655_v29, %v1658_v45  ;;  %v1952_v45 = vld [vmem:[%s10174_s0 + $0xb8] sm:$0xff] }
 0x71c   :  { %v8568_v47 = vpop.eup %8567  ;;  %v1660_v48 = vmul.f32 1.442695, %v1659_v46  ;;  %v1953_v46 = vld [vmem:[%s10174_s0 + $0xc0] sm:$0xff] }
 0x71d   :  { %v1326_v49 = vsel %vm1150_vm11, %v8568_v47, 0.0 }
 0x71e   :  { %8571 = vpow2.f32 %v1660_v48  ;;  %1327 = vadd.xlane.f32.xlu0 %v1326_v49  ;;  %v8260_v48 = vpack.c.bf16 %v1953_v46, %v1952_v45  ;;  %v1955_v49 = vld [vmem:[%s10174_s0 + $0xd0] sm:$0xff] }
 0x720   :  { %v8570_v50 = vpop.eup %8569  ;;  %8261 = vmatpush3.bf16.msra.mxu0 %v8260_v48 }
 0x721   :  { %v1494_v51 = vsel %vm1150_vm11, %v8570_v50, 0.0  ;;  %8262 = vmatprep.subr.bf16.mxu0 %v8711_v34 }
 0x722   :  { %1495 = vadd.xlane.f32.xlu0 %v1494_v51  ;;  %v1956_v51 = vld [vmem:[%s10174_s0 + $0xd8] sm:$0xff] }
 0x728   :  { %v8572_v52 = vpop.eup %8571 }
 0x729   :  { %v1662_v53 = vsel %vm1150_vm11, %v8572_v52, 0.0 }
 0x72a   :  { %1663 = vadd.xlane.f32.xlu0 %v1662_v53 }
 0x740   :  { %1331 = vrot.lane.b32.xlu0 %v9086_v0, %s8722_s23 }
 0x7a6   :  { %v1159_v54 = vpop.xlane.xlu0 %1158 }
 0x7a7   :  { %8573 = vrcp.f32 %v1159_v54 }
 0x7ab   :  { %v1328_v55 = vpop.xlane.xlu0 %1327 }
 0x7ac   :  { %8575 = vrcp.f32 %v1328_v55 }
 0x7af   :  { %v1496_v56 = vpop.xlane.xlu0 %1495 }
 0x7b0   :  { %8577 = vrcp.f32 %v1496_v56 }
 0x7b1   :  { %v8574_v57 = vpop.eup %8573 }
 0x7b2   :  { %v1161_v58 = vmul.f32 %v8574_v57, %v8566_v43  ;;  %v1872_v43 = vld [vmem:[%s10174_s0 + $0xa8] sm:$0xff] }
 0x7b3   :  { %v8257_v44 = vpack.c.bf16 %v1872_v43, %v1871_v42 }
 0x7b4   :  { %7746 = vmatmul.mubr.msk.f32.vlgmr.msra.gmra.mrb[14].mxu1 %vm1164_vm12, %v1161_v58  ;;  %v7366_v58 = vld [vmem:[%s10174_s0 + $0x80] ss:$0 sm:$0xff] }
 0x7b5   :  { %7755 = vmatprep.mubr.msk.f32.mxu1 %vm8710_vm2, %v8709_v22 }
 0x7b6   :  { %v8576_v60 = vpop.eup %8575 }
 0x7b7   :  { %v1664_v59 = vpop.xlane.xlu0 %1663  ;;  %v1330_v63 = vmul.f32 %v8576_v60, %v8568_v47  ;;  %v1954_v47 = vld [vmem:[%s10174_s0 + $0xc8] sm:$0xff] }
 0x7b8   :  { %8579 = vrcp.f32 %v1664_v59  ;;  %v7367_v60 = vld [vmem:[%s10174_s0 + $0x88] ss:$0 sm:$0xff] }
 0x7ba   :  { %v8578_v0 = vpop.eup %8577 }
 0x7bb   :  { %v1332_v62 = vpop.permute.xlu0 %1331  ;;  %v1498_v1 = vmul.f32 %v8578_v0, %v8570_v50  ;;  %v8263_v50 = vpack.c.bf16 %v1955_v49, %v1954_v47  ;;  %v1959_v0 = vld [vmem:[%s10174_s0 + $0xf0] sm:$0xff] }
 0x7bc   :  { %7754 = vmatpush3.msk.msra.mxu1 %vm520_vm0, %v1332_v62 }
 0x7bd   :  { %7756 = vmatmul.mubr.msk.f32.vlgmr.msra.gmra.mrb[16].mxu1 %vm1164_vm12, %v1330_v63  ;;  %7763 = vmatprep.subr.mxu1 %v8709_v22  ;;  %v1958_v63 = vld [vmem:[%s10174_s0 + $0xe8] sm:$0xff] }
 0x7be   :  { %7764 = vmatpush3.msk.msra.mxu1 %vm520_vm0, %v1500_v61  ;;  %7765 = vmatprep.mubr.msk.f32.mxu1 %vm8710_vm2, %v8709_v22 }
 0x7bf   :  { %7773 = vmatprep.subr.mxu1 %v8709_v22  ;;  %8264 = vmatpush3.bf16.msra.mxu0 %v8263_v50 }
 0x7c0   :  { %8265 = vmatprep.subr.bf16.mxu0 %v8711_v34 }
 0x7c1   :  { %7766 = vmatmul.mubr.msk.f32.vlgmr.msra.gmra.mrb[18].mxu1 %vm1164_vm12, %v1498_v1  ;;  %v8269_v1 = vpack.c.bf16 %v1959_v0, %v1958_v63 }
 0x7c2   :  { %v8580_v4 = vpop.eup %8579  ;;  %7774 = vmatpush3.msk.msra.mxu1 %vm520_vm0, %v1668_v3  ;;  %7775 = vmatprep.mubr.msk.f32.mxu1 %vm8710_vm2, %v8709_v22  ;;  %v7368_v3 = vld [vmem:[%s10174_s0 + $0xb0] ss:$0 sm:$0xff] }
 0x7c3   :  { %v1666_v5 = vmul.f32 %v8580_v4, %v8572_v52  ;;  %8247 = vmatprep.subr.bf16.mxu1 %v8711_v34  ;;  %v1957_v52 = vld [vmem:[%s10174_s0 + $0xe0] sm:$0xff] }
 0x7c4   :  { %v8266_v53 = vpack.c.bf16 %v1957_v52, %v1956_v51 }
 0x7c5   :  { %7776 = vmatmul.mubr.msk.f32.vlgmr.msra.gmra.mrb[20].mxu1 %vm1164_vm12, %v1666_v5 }
 0x7c6   :  { %7786 = vmatprep.mubr.msk.f32.mxu1 %vm8710_vm2, %v8709_v22  ;;  %8249 = vmatpush3.bf16.msra.mxu1 %v8248_v8  ;;  %v7370_v8 = vld [vmem:[%s10174_s0 + $0xf8] ss:$0 sm:$0xff] }
 0x7c7   :  { %8250 = vmatprep.subr.bf16.mxu1 %v8711_v34  ;;  %8267 = vmatpush3.bf16.msra.mxu0 %v8266_v53 }
 0x7c8   :  { %8268 = vmatprep.subr.bf16.mxu0 %v8711_v34 }
 0x7ca   :  { %8252 = vmatpush3.bf16.msra.mxu1 %v8251_v2 }
 0x7cb   :  { %8253 = vmatprep.subr.bf16.mxu1 %v8711_v34  ;;  %8270 = vmatpush3.bf16.msra.mxu0 %v8269_v1 }
 0x7cc   :  { %7840 = vmatprep.subr.mxu0 %v8709_v22 }
 0x887   :  { %v1236_v9 = vpop.f32.mrb[14].mxu1 }
 0x888   :  { %v7747_v10 = vpop.f32.mrb[15].mxu1 }
 0x890   :  { %v1404_v14 = vpop.f32.mrb[16].mxu1 }
 0x891   :  { %1745 = vrot.lane.b32.xlu0 %v1404_v14, %s8723_s5  ;;  %v7757_v15 = vpop.f32.mrb[17].mxu1 }
 0x894   :  { %v1572_v16 = vpop.f32.mrb[18].mxu1 }
 0x895   :  { %1749 = vrot.lane.b32.xlu1 %v1572_v16, %s8724_s6  ;;  %v7767_v17 = vpop.f32.mrb[19].mxu1 }
 0x898   :  { %v1740_v18 = vpop.f32.mrb[20].mxu1 }
 0x899   :  { %1753 = vrot.lane.b32.xlu0 %v1740_v18, %s8725_s7  ;;  %v7777_v19 = vpop.f32.mrb[21].mxu1 }
 0x89a   :  { %v2065_v19 = vld [vmem:[%s10174_s0 + $0x110] sm:$0xff] }
 0x903   :  { %v1746_v20 = vpop.permute.xlu0 %1745 }
 0x904   :  { %v1756_v23 = vsel %vm882_vm8, %v1236_v9, %v1746_v20  ;;  %v2066_v20 = vld [vmem:[%s10174_s0 + $0x118] sm:$0xff] }
 0x907   :  { %v1750_v21 = vpop.permute.xlu1 %1749 }
 0x908   :  { %v1758_v24 = vsel %vm1757_vm13, %v1756_v23, %v1750_v21  ;;  %v8272_v21 = vpack.c.bf16 %v2066_v20, %v2065_v19  ;;  %v2067_v23 = vld [vmem:[%s10174_s0 + $0x120] sm:$0xff] }
 0x90b   :  { %v1754_v25 = vpop.permute.xlu0 %1753 }
 0x90c   :  { %v1760_v26 = vsel %vm1759_vm14, %v1758_v24, %v1754_v25  ;;  %v2068_v24 = vld [vmem:[%s10174_s0 + $0x128] sm:$0xff] }
 0x90d   :  { %7787 = vmatmul.mubr.msk.f32.vlgmr.msra.gmra.mrb[22].mxu1 %vm993_vm10, %v1760_v26  ;;  %v8275_v25 = vpack.c.bf16 %v2068_v24, %v2067_v23 }
 0x90e   :  { %7797 = vmatprep.mubr.msk.f32.mxu1 %vm8710_vm2, %v8709_v22 }
 0x9e0   :  { %v1839_v28 = vpop.f32.mrb[22].mxu1 }
 0x9e1   :  { %v1840_v29 = vadd.f32 %v7364_v27, %v1839_v28  ;;  %v7788_v30 = vpop.f32.mrb[23].mxu1 }
 0x9e2   :  { %v7372_v30 = vld [vmem:[%s10174_s0 + $0x100] ss:$0 sm:$0xff] }
 0x9e3   :  { %v9195_v31 = vadd.f32 %v1840_v29, %v9053_v39  ;;  %v1870_v39 = vld [vmem:[%s10174_s0 + $0x98] sm:$0xff] }
 0x9e4   :  { %v8254_v41 = vpack.c.bf16 %v1870_v39, %v1869_v40 }
 0x9e5   :  { %v1846_v32 = vsel %vm959_vm9, %v9195_v31, 0.0 }
 0x9e6   :  { %1847 = vadd.xlane.f32.xlu1 %v1846_v32  ;;  %8255 = vmatpush3.bf16.msra.mxu1 %v8254_v41  ;;  %v7373_v32 = vld [vmem:[%s10174_s0 + $0x108] ss:$0 sm:$0xff] }
 0x9e7   :  { %8256 = vmatprep.subr.bf16.mxu1 %v8711_v34 }
 0x9ea   :  { %8258 = vmatpush3.bf16.msra.mxu1 %v8257_v44 }
 0x9eb   :  { %8271 = vmatprep.subr.bf16.mxu1 %v8711_v34 }
 0xa73   :  { %v1848_v33 = vpop.xlane.xlu1 %1847 }
 0xa74   :  { %v1849_v35 = vmul.f32 0.03125, %v1848_v33 }
 0xa76   :  { %v1850_v36 = vsub.f32 %v9195_v31, %v1849_v35 }
 0xa78   :  { %v1851_v37 = vmul.f32 %v1850_v36, %v1850_v36 }
 0xa7a   :  { %v1852_v38 = vsel %vm959_vm9, %v1851_v37, 0.0 }
 0xa7b   :  { %1853 = vadd.xlane.f32.xlu0 %v1852_v38 }
 0xb08   :  { %v1854_v54 = vpop.xlane.xlu0 %1853 }
 0xb09   :  { %v1855_v55 = vmul.f32 0.03125, %v1854_v54 }
 0xb0b   :  { %v1856_v56 = vadd.f32 1e-06, %v1855_v55 }
 0xb0d   :  { %8581 = vrsqrt.f32 %v1856_v56 }
 0xb17   :  { %v8582_v57 = vpop.eup %8581 }
 0xb18   :  { %v1858_v59 = vmul.f32 %v8582_v57, %v1850_v36  ;;  %v7374_v36 = vld [vmem:[%s10174_s0 + $0x130] ss:$0 sm:$0xff] }
 0xb1a   :  { %v1863_v61 = vmul.f32 %v7366_v58, %v1858_v59 }
 0xb1c   :  { %v1868_v62 = vadd.f32 %v7367_v60, %v1863_v61 }
 0xb1e   :  { %7798 = vmatmul.mubr.msk.f32.vlgmr.msra.gmra.mrb[24].mxu1 %vm993_vm10, %v1868_v62 }
 0xb1f   :  { %7827 = vmatprep.mubr.msk.f32.mxu1 %vm8710_vm2, %v8709_v22  ;;  %8273 = vmatpush3.bf16.msra.mxu1 %v8272_v21 }
 0xb20   :  { %8274 = vmatprep.subr.bf16.mxu1 %v8711_v34 }
 0xb23   :  { %8276 = vmatpush3.bf16.msra.mxu1 %v8275_v25 }
 0xb24   :  { %7830 = vmatprep.subr.mxu1 %v8709_v22 }
 0xbf1   :  { %v1947_v4 = vpop.f32.mrb[24].mxu1 }
 0xbf2   :  { %v1948_v5 = vadd.f32 %v7368_v3, %v1947_v4  ;;  %v7799_v6 = vpop.f32.mrb[25].mxu1 }
 0xbf4   :  { %v1951_v7 = vmax.f32 %v1948_v5, 0.0 }
 0xbf6   :  { %7817 = vmatmul.mubr.msk.f32.vlgmr.msra.gmra.mrb[22].mxu0 %vm1965_vm15, %v1951_v7 }
 0xbf7   :  { %7842 = vmatprep.mubr.msk.f32.mxu0 %vm8710_vm2, %v8709_v22 }
 0xcc9   :  { %v2035_v9 = vpop.f32.mrb[22].mxu0 }
 0xcca   :  { %v2036_v10 = vadd.f32 %v7370_v8, %v2035_v9  ;;  %v7818_v12 = vpop.f32.mrb[23].mxu0 }
 0xccc   :  { %v9262_v13 = vadd.f32 %v2036_v10, %v9195_v31 }
 0xcce   :  { %v2042_v2 = vsel %vm959_vm9, %v9262_v13, 0.0 }
 0xccf   :  { %2043 = vadd.xlane.f32.xlu0 %v2042_v2 }
 0xd5c   :  { %v2044_v14 = vpop.xlane.xlu0 %2043 }
 0xd5d   :  { %v2045_v15 = vmul.f32 0.03125, %v2044_v14 }
 0xd5f   :  { %v2046_v16 = vsub.f32 %v9262_v13, %v2045_v15 }
 0xd61   :  { %v2047_v17 = vmul.f32 %v2046_v16, %v2046_v16 }
 0xd63   :  { %v2048_v18 = vsel %vm959_vm9, %v2047_v17, 0.0 }
 0xd64   :  { %2049 = vadd.xlane.f32.xlu1 %v2048_v18 }
 0xdf1   :  { %v2050_v26 = vpop.xlane.xlu1 %2049 }
 0xdf2   :  { %v2051_v27 = vmul.f32 0.03125, %v2050_v26 }
 0xdf4   :  { %v2052_v28 = vadd.f32 1e-06, %v2051_v27 }
 0xdf6   :  { %8583 = vrsqrt.f32 %v2052_v28 }
 0xe00   :  { %v8584_v29 = vpop.eup %8583 }
 0xe01   :  { %v2054_v31 = vmul.f32 %v8584_v29, %v2046_v16 }
 0xe03   :  { %v2059_v33 = vmul.f32 %v7372_v30, %v2054_v31 }
 0xe05   :  { %v2064_v35 = vadd.f32 %v7373_v32, %v2059_v33 }
 0xe07   :  { %7828 = vmatmul.mubr.msk.f32.vlgmr.msra.gmra.mrb[26].mxu1 %vm993_vm10, %v2064_v35 }
 0xe08   :  { %7832 = vmatprep.mubr.msk.f32.mxu1 %vm8710_vm2, %v8709_v22 }
 0xeda   :  { %v2143_v37 = vpop.f32.mrb[26].mxu1 }
 0xedb   :  { %v9294_v38 = vadd.f32 %v7374_v36, %v2143_v37  ;;  %v7829_v40 = vpop.f32.mrb[27].mxu1 }
 0xedd   :  { %2316 = vrot.lane.b32.xlu1 %v9294_v38, %s8714_s14  ;;  %2148 = vrot.lane.b32.xlu0 %v9294_v38, %s8713_s13 }
 0xee1   :  { %2314 = vrot.lane.b32.xlu1 %v9294_v38, %s8715_s15  ;;  %2484 = vrot.lane.b32.xlu0 %v9294_v38, %s8712_s12 }
 0xee5   :  { %2482 = vrot.lane.b32.xlu1 %v9294_v38, %s8716_s16  ;;  %2652 = vrot.lane.b32.xlu0 %v9294_v38, %s8717_s17 }
 0xee9   :  { %2650 = vrot.lane.b32.xlu1 %v9294_v38, %s8718_s18 }
 0xf4f   :  { %v2317_v39 = vpop.permute.xlu1 %2316  ;;  %v2149_v41 = vpop.permute.xlu0 %2148 }
 0xf50   :  { %7831 = vmatpush3.xpose.msk.msra.mxu1 %vm882_vm8, %v2149_v41  ;;  %7841 = vmatpush3.xpose.msk.msra.mxu0 %vm882_vm8, %v2317_v39 }
 0xf51   :  { %7850 = vmatprep.subr.mxu0 %v8709_v22  ;;  %7835 = vmatprep.subr.mxu1 %v8709_v22 }
 0xf53   :  { %v2315_v42 = vpop.permute.xlu1 %2314  ;;  %7833 = vmatmul.mubr.msk.f32.vlgmr.msra.gmra.mrb[28].mxu1 %vm882_vm8, %v9294_v38  ;;  %v2485_v43 = vpop.permute.xlu0 %2484 }
 0xf54   :  { %7843 = vmatmul.mubr.msk.f32.vlgmr.msra.gmra.mrb[24].mxu0 %vm882_vm8, %v2315_v42  ;;  %7837 = vmatprep.mubr.msk.f32.mxu1 %vm8710_vm2, %v8709_v22  ;;  %v2833_v42 = vld [vmem:[%s10174_s0 + $0x138] sm:$0xff] }
 0xf55   :  { %7851 = vmatpush3.xpose.msk.msra.mxu0 %vm882_vm8, %v2485_v43  ;;  %7852 = vmatprep.mubr.msk.f32.mxu0 %vm8710_vm2, %v8709_v22  ;;  %v2834_v43 = vld [vmem:[%s10174_s0 + $0x140] sm:$0xff] }
 0xf56   :  { %7860 = vmatprep.subr.mxu0 %v8709_v22 }
 0xf57   :  { %v2483_v44 = vpop.permute.xlu1 %2482  ;;  %v2653_v45 = vpop.permute.xlu0 %2652 }
 0xf58   :  { %7853 = vmatmul.mubr.msk.f32.vlgmr.msra.gmra.mrb[26].mxu0 %vm882_vm8, %v2483_v44  ;;  %v8278_v44 = vpack.c.bf16 %v2834_v43, %v2833_v42  ;;  %v3163_v42 = vld [vmem:[%s10174_s0 + $0x200] sm:$0xff]  ;;  %v3164_v43 = vld [vmem:[%s10174_s0 + $0x208] sm:$0xff] }
 0xf59   :  { %7861 = vmatpush3.xpose.msk.msra.mxu0 %vm882_vm8, %v2653_v45  ;;  %7862 = vmatprep.mubr.msk.f32.mxu0 %vm8710_vm2, %v8709_v22  ;;  %v2835_v45 = vld [vmem:[%s10174_s0 + $0x148] sm:$0xff] }
 0xf5a   :  { %8277 = vmatprep.subr.bf16.mxu0 %v8711_v34 }
 0xf5b   :  { %v2651_v46 = vpop.permute.xlu1 %2650 }
 0xf5c   :  { %7863 = vmatmul.mubr.msk.f32.vlgmr.msra.gmra.mrb[28].mxu0 %vm882_vm8, %v2651_v46  ;;  %v2836_v46 = vld [vmem:[%s10174_s0 + $0x150] sm:$0xff] }
 0xf5d   :  { %7878 = vmatprep.mubr.msk.f32.mxu0 %vm8710_vm2, %v8709_v22  ;;  %8279 = vmatpush3.bf16.msra.mxu0 %v8278_v44 }
 0xf5e   :  { %8280 = vmatprep.subr.bf16.mxu0 %v8711_v34 }
0x1026   :  { %v2220_v47 = vpop.f32.mrb[28].mxu1 }
0x1027   :  { %v2224_v48 = vmul.f32 0.35355338, %v2220_v47  ;;  %v7834_v49 = vpop.f32.mrb[29].mxu1  ;;  %v2388_v50 = vpop.f32.mrb[24].mxu0  ;;  %v8281_v47 = vpack.c.bf16 %v2836_v46, %v2835_v45  ;;  %v7395_v45 = vld [vmem:[%s10174_s0 + $0x168] ss:$0 sm:$0xff] }
0x1028   :  { %v2392_v51 = vmul.f32 0.35355338, %v2388_v50  ;;  %v7844_v52 = vpop.f32.mrb[25].mxu0 }
0x1029   :  { %v2225_v53 = vadd.f32 %v9126_v11, %v2224_v48  ;;  %8282 = vmatpush3.bf16.msra.mxu0 %v8281_v47  ;;  %v8302_v47 = vpack.c.bf16 %v3164_v43, %v3163_v42 }
0x102a   :  { %v2393_v54 = vadd.f32 %v9126_v11, %v2392_v51  ;;  %8289 = vmatprep.subr.bf16.mxu0 %v8711_v34 }
0x102b   :  { %v2556_v55 = vpop.f32.mrb[26].mxu0  ;;  %v2226_v56 = vsel %vm1150_vm11, %v2225_v53, -inf }
0x102c   :  { %v2560_v57 = vmul.f32 0.35355338, %v2556_v55  ;;  %2227 = vmax.xlane.f32.xlu0 %v2226_v56  ;;  %v7854_v58 = vpop.f32.mrb[27].mxu0  ;;  %v2394_v59 = vsel %vm1150_vm11, %v2393_v54, -inf  ;;  %v9391_v56 = vld [vmem:[%s10176_s2] sm:$0xff] }
0x102d   :  { %2395 = vmax.xlane.f32.xlu1 %v2394_v59 }
0x102e   :  { %v2561_v60 = vadd.f32 %v9126_v11, %v2560_v57  ;;  %v3140_v57 = vsel %vm993_vm10, %v9391_v56, 0.0 }
0x102f   :  { %v2724_v61 = vpop.f32.mrb[28].mxu0 }
0x1030   :  { %v2728_v62 = vmul.f32 0.35355338, %v2724_v61  ;;  %v7864_v63 = vpop.f32.mrb[29].mxu0  ;;  %v2562_v0 = vsel %vm1150_vm11, %v2561_v60, -inf }
0x1031   :  { %2563 = vmax.xlane.f32.xlu0 %v2562_v0 }
0x1032   :  { %v2729_v1 = vadd.f32 %v9126_v11, %v2728_v62 }
0x1034   :  { %v2730_v3 = vsel %vm1150_vm11, %v2729_v1, -inf }
0x1035   :  { %2731 = vmax.xlane.f32.xlu0 %v2730_v3  ;;  %v7392_v3 = vld [vmem:[%s10174_s0 + $0x158] ss:$0 sm:$0xff] }
0x103e   :  { %2237 = vrot.lane.b32.xlu1 %v9294_v38, %s8719_s21 }
0x10b9   :  { %v2228_v4 = vpop.xlane.xlu0 %2227 }
0x10ba   :  { %v2229_v5 = vsub.f32 %v2225_v53, %v2228_v4  ;;  %v2396_v6 = vpop.xlane.xlu1 %2395 }
0x10bb   :  { %v2397_v7 = vsub.f32 %v2393_v54, %v2396_v6 }
0x10bc   :  { %v2230_v8 = vmul.f32 1.442695, %v2229_v5 }
0x10bd   :  { %v2398_v9 = vmul.f32 1.442695, %v2397_v7 }
0x10be   :  { %8585 = vpow2.f32 %v2230_v8  ;;  %v2238_v10 = vpop.permute.xlu1 %2237  ;;  %v2564_v12 = vpop.xlane.xlu0 %2563 }
0x10bf   :  { %8587 = vpow2.f32 %v2398_v9  ;;  %v2565_v2 = vsub.f32 %v2561_v60, %v2564_v12  ;;  %7836 = vmatpush3.msk.msra.mxu1 %vm520_vm0, %v2238_v10 }
0x10c0   :  { %7845 = vmatprep.subr.mxu1 %v8709_v22 }
0x10c1   :  { %v2566_v11 = vmul.f32 1.442695, %v2565_v2 }
0x10c2   :  { %v2732_v14 = vpop.xlane.xlu0 %2731 }
0x10c3   :  { %8589 = vpow2.f32 %v2566_v11  ;;  %v2733_v15 = vsub.f32 %v2729_v1, %v2732_v14 }
0x10c5   :  { %v2734_v16 = vmul.f32 1.442695, %v2733_v15 }
0x10c7   :  { %8591 = vpow2.f32 %v2734_v16 }
0x10c8   :  { %v8586_v17 = vpop.eup %8585 }
0x10c9   :  { %v8588_v18 = vpop.eup %8587  ;;  %v2232_v19 = vsel %vm1150_vm11, %v8586_v17, 0.0 }
0x10ca   :  { %2233 = vadd.xlane.f32.xlu1 %v2232_v19  ;;  %v2400_v20 = vsel %vm1150_vm11, %v8588_v18, 0.0  ;;  %v2943_v19 = vld [vmem:[%s10174_s0 + $0x180] sm:$0xff] }
0x10cb   :  { %2401 = vadd.xlane.f32.xlu0 %v2400_v20  ;;  %v2944_v20 = vld [vmem:[%s10174_s0 + $0x188] sm:$0xff] }
0x10cd   :  { %v8590_v21 = vpop.eup %8589 }
0x10ce   :  { %v2568_v23 = vsel %vm1150_vm11, %v8590_v21, 0.0 }
0x10cf   :  { %2569 = vadd.xlane.f32.xlu1 %v2568_v23  ;;  %v3024_v23 = vld [vmem:[%s10174_s0 + $0x198] sm:$0xff] }
0x10d1   :  { %v8592_v24 = vpop.eup %8591 }
0x10d2   :  { %v2736_v25 = vsel %vm1150_vm11, %v8592_v24, 0.0 }
0x10d3   :  { %2737 = vadd.xlane.f32.xlu0 %v2736_v25  ;;  %v3026_v25 = vld [vmem:[%s10174_s0 + $0x1a8] sm:$0xff] }
0x10e0   :  { %2573 = vrot.lane.b32.xlu1 %v9294_v38, %s8720_s1 }
0x10e4   :  { %2741 = vrot.lane.b32.xlu1 %v9294_v38, %s8721_s22 }
0x10e9   :  { %2405 = vrot.lane.b32.xlu0 %v9294_v38, %s8722_s23 }
0x1157   :  { %v2234_v26 = vpop.xlane.xlu1 %2233 }
0x1158   :  { %8593 = vrcp.f32 %v2234_v26  ;;  %v2402_v27 = vpop.xlane.xlu0 %2401 }
0x1159   :  { %8595 = vrcp.f32 %v2402_v27  ;;  %v3027_v27 = vld [vmem:[%s10174_s0 + $0x1b0] sm:$0xff] }
0x115c   :  { %v2570_v28 = vpop.xlane.xlu1 %2569 }
0x115d   :  { %8597 = vrcp.f32 %v2570_v28  ;;  %v8293_v28 = vpack.c.bf16 %v3027_v27, %v3026_v25 }
0x1160   :  { %v2738_v29 = vpop.xlane.xlu0 %2737  ;;  %v2574_v35 = vpop.permute.xlu1 %2573 }
0x1161   :  { %8599 = vrcp.f32 %v2738_v29  ;;  %v3028_v29 = vld [vmem:[%s10174_s0 + $0x1b8] sm:$0xff] }
0x1162   :  { %v8594_v30 = vpop.eup %8593 }
0x1163   :  { %v2236_v31 = vmul.f32 %v8594_v30, %v8586_v17  ;;  %v8596_v32 = vpop.eup %8595  ;;  %v2942_v17 = vld [vmem:[%s10174_s0 + $0x178] sm:$0xff]  ;;  %v3029_v30 = vld [vmem:[%s10174_s0 + $0x1c0] sm:$0xff] }
0x1164   :  { %v2406_v33 = vpop.permute.xlu0 %2405  ;;  %v2404_v36 = vmul.f32 %v8596_v32, %v8588_v18  ;;  %v2742_v39 = vpop.permute.xlu1 %2741 }
0x1165   :  { %7838 = vmatmul.mubr.msk.f32.vlgmr.msra.gmra.mrb[30].mxu1 %vm1164_vm12, %v2236_v31  ;;  %v8296_v31 = vpack.c.bf16 %v3029_v30, %v3028_v29 }
0x1166   :  { %7846 = vmatpush3.msk.msra.mxu1 %vm520_vm0, %v2406_v33  ;;  %7847 = vmatprep.mubr.msk.f32.mxu1 %vm8710_vm2, %v8709_v22 }
0x1167   :  { %7855 = vmatprep.subr.mxu1 %v8709_v22  ;;  %v8598_v37 = vpop.eup %8597 }
0x1168   :  { %v2572_v38 = vmul.f32 %v8598_v37, %v8590_v21  ;;  %v8287_v21 = vpack.c.bf16 %v2944_v20, %v2943_v19 }
0x1169   :  { %7848 = vmatmul.mubr.msk.f32.vlgmr.msra.gmra.mrb[32].mxu1 %vm1164_vm12, %v2404_v36 }
0x116a   :  { %7856 = vmatpush3.msk.msra.mxu1 %vm520_vm0, %v2574_v35  ;;  %7857 = vmatprep.mubr.msk.f32.mxu1 %vm8710_vm2, %v8709_v22 }
0x116b   :  { %7865 = vmatprep.subr.mxu1 %v8709_v22  ;;  %v8600_v40 = vpop.eup %8599 }
0x116c   :  { %v2740_v41 = vmul.f32 %v8600_v40, %v8592_v24  ;;  %v3025_v24 = vld [vmem:[%s10174_s0 + $0x1a0] sm:$0xff] }
0x116d   :  { %7858 = vmatmul.mubr.msk.f32.vlgmr.msra.gmra.mrb[34].mxu1 %vm1164_vm12, %v2572_v38  ;;  %v8290_v26 = vpack.c.bf16 %v3025_v24, %v3024_v23 }
0x116e   :  { %7866 = vmatpush3.msk.msra.mxu1 %vm520_vm0, %v2742_v39  ;;  %7867 = vmatprep.mubr.msk.f32.mxu1 %vm8710_vm2, %v8709_v22  ;;  %v7394_v39 = vld [vmem:[%s10174_s0 + $0x160] ss:$0 sm:$0xff] }
0x116f   :  { %8283 = vmatprep.subr.bf16.mxu1 %v8711_v34 }
0x1171   :  { %7868 = vmatmul.mubr.msk.f32.vlgmr.msra.gmra.mrb[36].mxu1 %vm1164_vm12, %v2740_v41 }
0x1172   :  { %7889 = vmatprep.mubr.msk.f32.mxu1 %vm8710_vm2, %v8709_v22 }
0x1238   :  { %v2310_v48 = vpop.f32.mrb[30].mxu1 }
0x1239   :  { %v7839_v49 = vpop.f32.mrb[31].mxu1 }
0x123c   :  { %v2478_v50 = vpop.f32.mrb[32].mxu1 }
0x123d   :  { %2819 = vrot.lane.b32.xlu0 %v2478_v50, %s8723_s5  ;;  %v7849_v51 = vpop.f32.mrb[33].mxu1  ;;  %v3165_v50 = vld [vmem:[%s10174_s0 + $0x210] sm:$0xff] }
0x123e   :  { %v3166_v51 = vld [vmem:[%s10174_s0 + $0x218] sm:$0xff] }
0x1240   :  { %v2646_v52 = vpop.f32.mrb[34].mxu1 }
0x1241   :  { %2823 = vrot.lane.b32.xlu1 %v2646_v52, %s8724_s6  ;;  %v7859_v53 = vpop.f32.mrb[35].mxu1  ;;  %v7402_v52 = vld [vmem:[%s10174_s0 + $0x1f0] ss:$0 sm:$0xff] }
0x1242   :  { %v8305_v53 = vpack.c.bf16 %v3166_v51, %v3165_v50 }
0x1244   :  { %v2814_v54 = vpop.f32.mrb[36].mxu1 }
0x1245   :  { %2827 = vrot.lane.b32.xlu0 %v2814_v54, %s8725_s7  ;;  %v7869_v55 = vpop.f32.mrb[37].mxu1 }
0x1246   :  { %v7403_v55 = vld [vmem:[%s10174_s0 + $0x1f8] ss:$0 sm:$0xff] }
0x1264   :  { %3141 = vadd.xlane.f32.xlu0 %v3140_v57 }
0x12af   :  { %v2820_v58 = vpop.permute.xlu0 %2819 }
0x12b0   :  { %v2830_v60 = vsel %vm882_vm8, %v2310_v48, %v2820_v58  ;;  %v3030_v58 = vld [vmem:[%s10174_s0 + $0x1c8] sm:$0xff] }
0x12b3   :  { %v2824_v59 = vpop.permute.xlu1 %2823 }
0x12b4   :  { %v2831_v61 = vsel %vm1757_vm13, %v2830_v60, %v2824_v59  ;;  %v3031_v59 = vld [vmem:[%s10174_s0 + $0x1d0] sm:$0xff] }
0x12b5   :  { %v8299_v60 = vpack.c.bf16 %v3031_v59, %v3030_v58 }
0x12b7   :  { %v2828_v62 = vpop.permute.xlu0 %2827 }
0x12b8   :  { %v2832_v63 = vsel %vm1759_vm14, %v2831_v61, %v2828_v62  ;;  %v7396_v61 = vld [vmem:[%s10174_s0 + $0x190] ss:$0 sm:$0xff] }
0x12b9   :  { %7879 = vmatmul.mubr.msk.f32.vlgmr.msra.gmra.mrb[30].mxu0 %vm993_vm10, %v2832_v63 }
0x12ba   :  { %7908 = vmatprep.mubr.msk.f32.mxu0 %vm8710_vm2, %v8709_v22  ;;  %8291 = vmatpush3.bf16.msra.mxu0 %v8290_v26 }
0x12bb   :  { %8292 = vmatprep.subr.bf16.mxu0 %v8711_v34 }
0x12be   :  { %8294 = vmatpush3.bf16.msra.mxu0 %v8293_v28 }
0x12bf   :  { %8295 = vmatprep.subr.bf16.mxu0 %v8711_v34 }
0x12c2   :  { %8297 = vmatpush3.bf16.msra.mxu0 %v8296_v31 }
0x12c3   :  { %8298 = vmatprep.subr.bf16.mxu0 %v8711_v34 }
0x12c6   :  { %8300 = vmatpush3.bf16.msra.mxu0 %v8299_v60 }
0x12c7   :  { %7932 = vmatprep.subr.mxu0 %v8709_v22 }
0x12f1   :  { %v3142_v0 = vpop.xlane.xlu0 %3141 }
0x12f2   :  { %v3143_v1 = vmul.f32 0.03125, %v3142_v0 }
0x12f4   :  { %v3144_v4 = vsub.f32 %v9391_v56, %v3143_v1 }
0x12f6   :  { %v3145_v9 = vmul.f32 %v3144_v4, %v3144_v4 }
0x12f8   :  { %v3146_v12 = vsel %vm993_vm10, %v3145_v9, 0.0 }
0x138c   :  { %v2911_v5 = vpop.f32.mrb[30].mxu0 }
0x138d   :  { %v2912_v6 = vadd.f32 %v7392_v3, %v2911_v5  ;;  %v7880_v7 = vpop.f32.mrb[31].mxu0  ;;  %v7404_v3 = vld [vmem:[%s10174_s0 + $0x220] ss:$0 sm:$0xff] }
0x138f   :  { %v9406_v8 = vadd.f32 %v2912_v6, %v9262_v13  ;;  %v2941_v13 = vld [vmem:[%s10174_s0 + $0x170] sm:$0xff] }
0x1390   :  { %v8284_v18 = vpack.c.bf16 %v2942_v17, %v2941_v13  ;;  %v9538_v17 = vld [vmem:[%s10176_s2 + $0x10] sm:$0xff] }
0x1391   :  { %v2918_v10 = vsel %vm959_vm9, %v9406_v8, 0.0 }
0x1392   :  { %2919 = vadd.xlane.f32.xlu1 %v2918_v10  ;;  %8285 = vmatpush3.bf16.msra.mxu1 %v8284_v18 }
0x1393   :  { %8286 = vmatprep.subr.bf16.mxu1 %v8711_v34 }
0x1396   :  { %3147 = vadd.xlane.f32.xlu1 %v3146_v12  ;;  %8288 = vmatpush3.bf16.msra.mxu1 %v8287_v21 }
0x1397   :  { %8301 = vmatprep.subr.bf16.mxu1 %v8711_v34 }
0x141f   :  { %v2920_v2 = vpop.xlane.xlu1 %2919 }
0x1420   :  { %v2921_v11 = vmul.f32 0.03125, %v2920_v2 }
0x1422   :  { %v2922_v14 = vsub.f32 %v9406_v8, %v2921_v11 }
0x1423   :  { %v3148_v32 = vpop.xlane.xlu1 %3147 }
0x1424   :  { %v2923_v15 = vmul.f32 %v2922_v14, %v2922_v14  ;;  %v3149_v33 = vmul.f32 0.03125, %v3148_v32 }
0x1426   :  { %v2924_v16 = vsel %vm959_vm9, %v2923_v15, 0.0  ;;  %v3150_v37 = vadd.f32 1e-06, %v3149_v33 }
0x1427   :  { %2925 = vadd.xlane.f32.xlu0 %v2924_v16 }
0x14b4   :  { %v2926_v35 = vpop.xlane.xlu0 %2925 }
0x14b5   :  { %v2927_v36 = vmul.f32 0.03125, %v2926_v35 }
0x14b7   :  { %v2928_v38 = vadd.f32 1e-06, %v2927_v36 }
0x14b9   :  { %8601 = vrsqrt.f32 %v2928_v38 }
0x14ba   :  { %8603 = vrsqrt.f32 %v3150_v37 }
0x14c3   :  { %v8602_v40 = vpop.eup %8601 }
0x14c4   :  { %v2930_v41 = vmul.f32 %v8602_v40, %v2922_v14  ;;  %v8604_v44 = vpop.eup %8603 }
0x14c5   :  { %v3152_v48 = vmul.f32 %v8604_v44, %v3144_v4 }
0x14c6   :  { %v2935_v46 = vmul.f32 %v7394_v39, %v2930_v41 }
0x14c7   :  { %v3157_v54 = vmul.f32 %v7402_v52, %v3152_v48 }
0x14c8   :  { %v2940_v49 = vadd.f32 %v7395_v45, %v2935_v46 }
0x14c9   :  { %v3162_v57 = vadd.f32 %v7403_v55, %v3157_v54 }
0x14ca   :  { %7890 = vmatmul.mubr.msk.f32.vlgmr.msra.gmra.mrb[38].mxu1 %vm993_vm10, %v2940_v49 }
0x14cb   :  { %8303 = vmatpush3.bf16.msra.mxu1 %v8302_v47  ;;  %7919 = vmatprep.mubr.msk.f32.mxu1 %vm8710_vm2, %v8709_v22 }
0x14cc   :  { %8304 = vmatprep.subr.bf16.mxu1 %v8711_v34 }
0x14cf   :  { %8306 = vmatpush3.bf16.msra.mxu1 %v8305_v53 }
0x14d0   :  { %7922 = vmatprep.subr.mxu1 %v8709_v22 }
0x14d2   :  { %7920 = vmatmul.mubr.msk.f32.vlgmr.msra.gmra.mrb[40].mxu1 %vm993_vm10, %v3162_v57 }
0x14d3   :  { %7924 = vmatprep.mubr.msk.f32.mxu1 %vm8710_vm2, %v8709_v22 }
0x159d   :  { %v3019_v62 = vpop.f32.mrb[38].mxu1 }
0x159e   :  { %v3020_v63 = vadd.f32 %v7396_v61, %v3019_v62  ;;  %v7891_v0 = vpop.f32.mrb[39].mxu1 }
0x15a0   :  { %v3023_v1 = vmax.f32 %v3020_v63, 0.0 }
0x15a2   :  { %7909 = vmatmul.mubr.msk.f32.vlgmr.msra.gmra.mrb[32].mxu0 %vm1965_vm15, %v3023_v1 }
0x15a3   :  { %7934 = vmatprep.mubr.msk.f32.mxu0 %vm8710_vm2, %v8709_v22 }
0x15a5   :  { %v3241_v4 = vpop.f32.mrb[40].mxu1 }
0x15a6   :  { %v9496_v5 = vadd.f32 %v7404_v3, %v3241_v4  ;;  %v7921_v6 = vpop.f32.mrb[41].mxu1 }
0x15a8   :  { %3413 = vrot.lane.b32.xlu1 %v9496_v5, %s8714_s14  ;;  %3246 = vrot.lane.b32.xlu0 %v9496_v5, %s8713_s13 }
0x15ac   :  { %3411 = vrot.lane.b32.xlu1 %v9496_v5, %s8715_s15  ;;  %3580 = vrot.lane.b32.xlu0 %v9496_v5, %s8712_s12 }
0x15b0   :  { %3578 = vrot.lane.b32.xlu1 %v9496_v5, %s8716_s16  ;;  %3747 = vrot.lane.b32.xlu0 %v9496_v5, %s8717_s17 }
0x15b4   :  { %3745 = vrot.lane.b32.xlu1 %v9496_v5, %s8718_s18 }
0x161a   :  { %v3414_v7 = vpop.permute.xlu1 %3413  ;;  %v3247_v9 = vpop.permute.xlu0 %3246 }
0x161b   :  { %7923 = vmatpush3.xpose.msk.msra.mxu1 %vm882_vm8, %v3247_v9  ;;  %7933 = vmatpush3.xpose.msk.msra.mxu0 %vm882_vm8, %v3414_v7 }
0x161c   :  { %7942 = vmatprep.subr.mxu0 %v8709_v22  ;;  %7927 = vmatprep.subr.mxu1 %v8709_v22 }
0x161e   :  { %v3412_v10 = vpop.permute.xlu1 %3411  ;;  %7925 = vmatmul.mubr.msk.f32.vlgmr.msra.gmra.mrb[42].mxu1 %vm882_vm8, %v9496_v5  ;;  %v3581_v12 = vpop.permute.xlu0 %3580 }
0x161f   :  { %7935 = vmatmul.mubr.msk.f32.vlgmr.msra.gmra.mrb[34].mxu0 %vm882_vm8, %v3412_v10  ;;  %7929 = vmatprep.mubr.msk.f32.mxu1 %vm8710_vm2, %v8709_v22 }
0x1620   :  { %7943 = vmatpush3.xpose.msk.msra.mxu0 %vm882_vm8, %v3581_v12  ;;  %7944 = vmatprep.mubr.msk.f32.mxu0 %vm8710_vm2, %v8709_v22 }
0x1621   :  { %7952 = vmatprep.subr.mxu0 %v8709_v22 }
0x1622   :  { %v3579_v2 = vpop.permute.xlu1 %3578  ;;  %v3748_v11 = vpop.permute.xlu0 %3747 }
0x1623   :  { %7945 = vmatmul.mubr.msk.f32.vlgmr.msra.gmra.mrb[36].mxu0 %vm882_vm8, %v3579_v2 }
0x1624   :  { %7953 = vmatpush3.xpose.msk.msra.mxu0 %vm882_vm8, %v3748_v11  ;;  %7954 = vmatprep.mubr.msk.f32.mxu0 %vm8710_vm2, %v8709_v22 }
0x1625   :  { %8307 = vmatprep.subr.bf16.mxu0 %v8711_v34 }
0x1626   :  { %v3746_v14 = vpop.permute.xlu1 %3745 }
0x1627   :  { %7955 = vmatmul.mubr.msk.f32.vlgmr.msra.gmra.mrb[38].mxu0 %vm882_vm8, %v3746_v14  ;;  %v3927_v14 = vld [vmem:[%s10174_s0 + $0x228] sm:$0xff] }
0x1628   :  { %7970 = vmatprep.mubr.msk.f32.mxu0 %vm8710_vm2, %v8709_v22 }
0x1675   :  { %v9533_v15 = vpop.f32.mrb[32].mxu0 }
0x1676   :  { %v7910_v16 = vpop.f32.mrb[33].mxu0 }
0x1677   :  { %v3928_v16 = vld [vmem:[%s10174_s0 + $0x230] sm:$0xff] }
0x16f1   :  { %v3318_v13 = vpop.f32.mrb[42].mxu1 }
0x16f2   :  { %v3322_v18 = vmul.f32 0.35355338, %v3318_v13  ;;  %v7926_v19 = vpop.f32.mrb[43].mxu1  ;;  %v3485_v20 = vpop.f32.mrb[34].mxu0  ;;  %v8308_v13 = vpack.c.bf16 %v3928_v16, %v3927_v14  ;;  %v7400_v14 = vld [vmem:[%s10174_s0 + $0x1e0] ss:$0 sm:$0xff] }
0x16f3   :  { %v3489_v21 = vmul.f32 0.35355338, %v3485_v20  ;;  %v7936_v23 = vpop.f32.mrb[35].mxu0  ;;  %v3930_v19 = vld [vmem:[%s10174_s0 + $0x240] sm:$0xff] }
0x16f4   :  { %v3323_v24 = vadd.f32 %v3322_v18, %v9538_v17  ;;  %8309 = vmatpush3.bf16.msra.mxu0 %v8308_v13  ;;  %v3929_v18 = vld [vmem:[%s10174_s0 + $0x238] sm:$0xff] }
0x16f5   :  { %v3490_v25 = vadd.f32 %v3489_v21, %v9538_v17  ;;  %8310 = vmatprep.subr.bf16.mxu0 %v8711_v34  ;;  %v8311_v20 = vpack.c.bf16 %v3930_v19, %v3929_v18 }
0x16f6   :  { %v3652_v26 = vpop.f32.mrb[36].mxu0  ;;  %v3324_v27 = vsel %vm882_vm8, %v3323_v24, -inf }
0x16f7   :  { %v3656_v28 = vmul.f32 0.35355338, %v3652_v26  ;;  %3325 = vmax.xlane.f32.xlu0 %v3324_v27  ;;  %v7946_v29 = vpop.f32.mrb[37].mxu0  ;;  %v3491_v30 = vsel %vm882_vm8, %v3490_v25, -inf }
0x16f8   :  { %3492 = vmax.xlane.f32.xlu1 %v3491_v30  ;;  %8312 = vmatpush3.bf16.msra.mxu0 %v8311_v20  ;;  %v7398_v30 = vld [vmem:[%s10174_s0 + $0x1d8] ss:$0 sm:$0xff] }
0x16f9   :  { %v3657_v31 = vadd.f32 %v3656_v28, %v9538_v17  ;;  %8319 = vmatprep.subr.bf16.mxu0 %v8711_v34 }
0x16fa   :  { %v3819_v32 = vpop.f32.mrb[38].mxu0 }
0x16fb   :  { %v3823_v33 = vmul.f32 0.35355338, %v3819_v32  ;;  %v7956_v35 = vpop.f32.mrb[39].mxu0  ;;  %v3658_v36 = vsel %vm882_vm8, %v3657_v31, -inf }
0x16fc   :  { %3659 = vmax.xlane.f32.xlu0 %v3658_v36 }
0x16fd   :  { %v3824_v37 = vadd.f32 %v3823_v33, %v9538_v17 }
0x16ff   :  { %v3825_v38 = vsel %vm882_vm8, %v3824_v37, -inf }
0x1700   :  { %3826 = vmax.xlane.f32.xlu0 %v3825_v38 }
0x1709   :  { %3335 = vrot.lane.b32.xlu1 %v9496_v5, %s8719_s21 }
0x1784   :  { %v3326_v40 = vpop.xlane.xlu0 %3325 }
0x1785   :  { %v3327_v39 = vsub.f32 %v3323_v24, %v3326_v40  ;;  %v3493_v41 = vpop.xlane.xlu1 %3492 }
0x1786   :  { %v3494_v42 = vsub.f32 %v3490_v25, %v3493_v41 }
0x1787   :  { %v3328_v43 = vmul.f32 1.442695, %v3327_v39 }
0x1788   :  { %v3495_v44 = vmul.f32 1.442695, %v3494_v42 }
0x1789   :  { %8605 = vpow2.f32 %v3328_v43  ;;  %v3336_v45 = vpop.permute.xlu1 %3335  ;;  %v3660_v46 = vpop.xlane.xlu0 %3659 }
0x178a   :  { %8607 = vpow2.f32 %v3495_v44  ;;  %v3661_v47 = vsub.f32 %v3657_v31, %v3660_v46  ;;  %7928 = vmatpush3.msra.mxu1 %v3336_v45  ;;  %v3107_v31 = vadd.f32 %v7398_v30, %v9533_v15 }
0x178b   :  { %7937 = vmatprep.subr.mxu1 %v8709_v22 }
0x178c   :  { %v3662_v48 = vmul.f32 1.442695, %v3661_v47  ;;  %v3110_v32 = vadd.f32 %v3107_v31, %v9406_v8  ;;  %v7418_v8 = vld [vmem:[%s10174_s0 + $0x248] ss:$0 sm:$0xff] }
0x178d   :  { %v3827_v49 = vpop.xlane.xlu0 %3826 }
0x178e   :  { %8609 = vpow2.f32 %v3662_v48  ;;  %v3828_v50 = vsub.f32 %v3824_v37, %v3827_v49  ;;  %v3113_v33 = vsel %vm959_vm9, %v3110_v32, 0.0 }
0x1790   :  { %v3829_v51 = vmul.f32 1.442695, %v3828_v50  ;;  %v4035_v50 = vld [vmem:[%s10174_s0 + $0x260] sm:$0xff] }
0x1792   :  { %8611 = vpow2.f32 %v3829_v51  ;;  %v4036_v51 = vld [vmem:[%s10174_s0 + $0x268] sm:$0xff] }
0x1793   :  { %v8606_v52 = vpop.eup %8605 }
0x1794   :  { %v8608_v53 = vpop.eup %8607  ;;  %v3330_v54 = vsel %vm882_vm8, %v8606_v52, 0.0 }
0x1795   :  { %3331 = vadd.xlane.f32.xlu1 %v3330_v54  ;;  %v3497_v55 = vsel %vm882_vm8, %v8608_v53, 0.0  ;;  %v4038_v54 = vld [vmem:[%s10174_s0 + $0x278] sm:$0xff] }
0x1796   :  { %3498 = vadd.xlane.f32.xlu0 %v3497_v55 }
0x1798   :  { %v8610_v57 = vpop.eup %8609 }
0x1799   :  { %v3664_v58 = vsel %vm882_vm8, %v8610_v57, 0.0 }
0x179a   :  { %3665 = vadd.xlane.f32.xlu1 %v3664_v58 }
0x179c   :  { %v8612_v59 = vpop.eup %8611 }
0x179d   :  { %v3831_v60 = vsel %vm882_vm8, %v8612_v59, 0.0 }
0x179e   :  { %3832 = vadd.xlane.f32.xlu0 %v3831_v60 }
0x17ab   :  { %3669 = vrot.lane.b32.xlu1 %v9496_v5, %s8720_s1 }
0x17af   :  { %3836 = vrot.lane.b32.xlu1 %v9496_v5, %s8721_s22 }
0x17b4   :  { %3502 = vrot.lane.b32.xlu0 %v9496_v5, %s8722_s23 }
0x1822   :  { %v3332_v61 = vpop.xlane.xlu1 %3331 }
0x1823   :  { %8613 = vrcp.f32 %v3332_v61  ;;  %v3499_v62 = vpop.xlane.xlu0 %3498 }
0x1824   :  { %8615 = vrcp.f32 %v3499_v62 }
0x1827   :  { %v3666_v63 = vpop.xlane.xlu1 %3665 }
0x1828   :  { %8617 = vrcp.f32 %v3666_v63 }
0x182b   :  { %v3833_v0 = vpop.xlane.xlu0 %3832  ;;  %v3670_v5 = vpop.permute.xlu1 %3669 }
0x182c   :  { %8619 = vrcp.f32 %v3833_v0 }
0x182d   :  { %v8614_v1 = vpop.eup %8613 }
0x182e   :  { %v3334_v3 = vmul.f32 %v8614_v1, %v8606_v52  ;;  %v8616_v4 = vpop.eup %8615  ;;  %v8417_v52 = vpack.i.bf16 %v4036_v51, %v4035_v50 }
0x182f   :  { %v3503_v6 = vpop.permute.xlu0 %3502  ;;  %v3501_v7 = vmul.f32 %v8616_v4, %v8608_v53  ;;  %v3837_v2 = vpop.permute.xlu1 %3836  ;;  %v8314_v53 = vpack.c.bf16 %v4036_v51, %v4035_v50 }
0x1830   :  { %7930 = vmatmul.mubr.msk.f32.vlgmr.msra.gmra.mrb[44].mxu1 %vm882_vm8, %v3334_v3 }
0x1831   :  { %7938 = vmatpush3.msra.mxu1 %v3503_v6  ;;  %7939 = vmatprep.mubr.msk.f32.mxu1 %vm8710_vm2, %v8709_v22  ;;  %v7422_v6 = vld [vmem:[%s10174_s0 + $0x280] ss:$0 sm:$0xff] }
0x1832   :  { %7947 = vmatprep.subr.mxu1 %v8709_v22  ;;  %v8618_v9 = vpop.eup %8617 }
0x1833   :  { %v3668_v10 = vmul.f32 %v8618_v9, %v8610_v57 }
0x1834   :  { %7940 = vmatmul.mubr.msk.f32.vlgmr.msra.gmra.mrb[46].mxu1 %vm882_vm8, %v3501_v7 }
0x1835   :  { %7948 = vmatpush3.msra.mxu1 %v3670_v5  ;;  %7949 = vmatprep.mubr.msk.f32.mxu1 %vm8710_vm2, %v8709_v22 }
0x1836   :  { %7957 = vmatprep.subr.mxu1 %v8709_v22  ;;  %v8620_v12 = vpop.eup %8619 }
0x1837   :  { %v3835_v11 = vmul.f32 %v8620_v12, %v8612_v59 }
0x1838   :  { %7950 = vmatmul.mubr.msk.f32.vlgmr.msra.gmra.mrb[48].mxu1 %vm882_vm8, %v3668_v10 }
0x1839   :  { %7958 = vmatpush3.msra.mxu1 %v3837_v2  ;;  %7959 = vmatprep.mubr.msk.f32.mxu1 %vm8710_vm2, %v8709_v22 }
0x183a   :  { %8313 = vmatprep.subr.bf16.mxu1 %v8711_v34 }
0x183c   :  { %7960 = vmatmul.mubr.msk.f32.vlgmr.msra.gmra.mrb[50].mxu1 %vm882_vm8, %v3835_v11 }
0x183d   :  { %7981 = vmatprep.mubr.msk.f32.mxu1 %vm8710_vm2, %v8709_v22  ;;  %8315 = vmatpush3.bf16.msra.mxu1 %v8314_v53 }
0x183e   :  { %8316 = vmatprep.subr.bf16.mxu1 %v8711_v34 }
0x1903   :  { %v3407_v21 = vpop.f32.mrb[44].mxu1 }
0x1904   :  { %v7931_v23 = vpop.f32.mrb[45].mxu1 }
0x1907   :  { %v3574_v24 = vpop.f32.mrb[46].mxu1 }
0x1908   :  { %3913 = vrot.lane.b32.xlu0 %v3574_v24, %s8723_s5  ;;  %v7941_v25 = vpop.f32.mrb[47].mxu1 }
0x1909   :  { %v7420_v25 = vld [vmem:[%s10174_s0 + $0x250] ss:$0 sm:$0xff] }
0x190b   :  { %v3741_v26 = vpop.f32.mrb[48].mxu1 }
0x190c   :  { %3917 = vrot.lane.b32.xlu1 %v3741_v26, %s8724_s6  ;;  %v7951_v27 = vpop.f32.mrb[49].mxu1 }
0x190d   :  { %v7421_v27 = vld [vmem:[%s10174_s0 + $0x258] ss:$0 sm:$0xff] }
0x190f   :  { %v3908_v28 = vpop.f32.mrb[50].mxu1 }
0x1910   :  { %3921 = vrot.lane.b32.xlu0 %v3908_v28, %s8725_s7  ;;  %v7961_v29 = vpop.f32.mrb[51].mxu1 }
0x1930   :  { %3114 = vadd.xlane.f32.xlu1 %v3113_v33 }
0x197a   :  { %v3914_v35 = vpop.permute.xlu0 %3913 }
0x197b   :  { %v3924_v37 = vsel %vm882_vm8, %v3407_v21, %v3914_v35  ;;  %v7401_v21 = vld [vmem:[%s10174_s0 + $0x1e8] ss:$0 sm:$0xff] }
0x197e   :  { %v3918_v36 = vpop.permute.xlu1 %3917 }
0x197f   :  { %v3925_v38 = vsel %vm1757_vm13, %v3924_v37, %v3918_v36 }
0x1982   :  { %v3922_v40 = vpop.permute.xlu0 %3921 }
0x1983   :  { %v3926_v39 = vsel %vm1759_vm14, %v3925_v38, %v3922_v40 }
0x1984   :  { %7971 = vmatmul.mubr.msk.f32.vlgmr.msra.gmra.mrb[40].mxu0 %vm993_vm10, %v3926_v39 }
0x1985   :  { %7992 = vmatprep.mubr.msk.f32.mxu0 %vm8710_vm2, %v8709_v22 }
0x19bd   :  { %v3115_v15 = vpop.xlane.xlu1 %3114 }
0x19be   :  { %v3116_v41 = vmul.f32 0.03125, %v3115_v15 }
0x19c0   :  { %v3117_v43 = vsub.f32 %v3110_v32, %v3116_v41 }
0x19c2   :  { %v3118_v48 = vmul.f32 %v3117_v43, %v3117_v43 }
0x19c4   :  { %v3119_v49 = vsel %vm959_vm9, %v3118_v48, 0.0 }
0x1a57   :  { %v4005_v42 = vpop.f32.mrb[40].mxu0 }
0x1a58   :  { %v4006_v44 = vadd.f32 %v7418_v8, %v4005_v42  ;;  %v7972_v45 = vpop.f32.mrb[41].mxu0 }
0x1a59   :  { %v9694_v45 = vld [vmem:[%s10176_s2 + $0x8] ss:$0 sm:$0xff] }
0x1a5a   :  { %v9609_v46 = vadd.f32 %v4006_v44, %v9391_v56  ;;  %v4037_v56 = vld [vmem:[%s10174_s0 + $0x270] sm:$0xff] }
0x1a5b   :  { %v8422_v55 = vpack.i.bf16 %v4038_v54, %v4037_v56  ;;  %v8317_v57 = vpack.c.bf16 %v4038_v54, %v4037_v56 }
0x1a5c   :  { %v4012_v47 = vsel %vm993_vm10, %v9609_v46, 0.0 }
0x1a5d   :  { %4013 = vadd.xlane.f32.xlu0 %v4012_v47  ;;  %8318 = vmatpush3.bf16.msra.mxu1 %v8317_v57 }
0x1a5e   :  { %7995 = vmatprep.subr.mxu1 %v8709_v22 }
0x1a61   :  { %3120 = vadd.xlane.f32.xlu0 %v3119_v49 }
0x1a77   :  { %8418 = vrot.lane.b32.xlu0 %v8417_v52, %s8713_s13 }
0x1aea   :  { %v4014_v58 = vpop.xlane.xlu0 %4013 }
0x1aeb   :  { %v4015_v59 = vmul.f32 0.03125, %v4014_v58 }
0x1aed   :  { %v4016_v60 = vsub.f32 %v9609_v46, %v4015_v59 }
0x1aee   :  { %v3121_v63 = vpop.xlane.xlu0 %3120 }
0x1aef   :  { %v4017_v61 = vmul.f32 %v4016_v60, %v4016_v60  ;;  %v3122_v7 = vmul.f32 0.03125, %v3121_v63 }
0x1af1   :  { %v4018_v62 = vsel %vm993_vm10, %v4017_v61, 0.0  ;;  %v3123_v5 = vadd.f32 1e-06, %v3122_v7 }
0x1af2   :  { %4019 = vadd.xlane.f32.xlu1 %v4018_v62  ;;  %v8419_v0 = vpop.permute.xlu0 %8418 }
0x1af3   :  { %v8421_v1 = vunpack.i.h.bf16 %v8419_v0  ;;  %v8420_v3 = vunpack.i.l.bf16 %v8419_v0  ;;  %8621 = vrsqrt.f32 %v3123_v5 }
0x1af5   :  { %v8320_v4 = vpack.c.bf16 %v8421_v1, %v8420_v3 }
0x1af7   :  { %8321 = vmatpush3.bf16.msra.mxu0 %v8320_v4 }
0x1af8   :  { %8322 = vmatprep.subr.bf16.mxu0 %v8711_v34 }
0x1afd   :  { %v8622_v9 = vpop.eup %8621 }
0x1afe   :  { %v3125_v2 = vmul.f32 %v8622_v9, %v3117_v43 }
0x1b00   :  { %v3130_v19 = vmul.f32 %v7400_v14, %v3125_v2 }
0x1b02   :  { %v9643_v23 = vadd.f32 %v7401_v21, %v3130_v19 }
0x1b03   :  { %8423 = vrot.lane.b32.xlu1 %v8422_v55, %s8713_s13 }
0x1b07   :  { %4134 = vrot.lane.b32.xlu1 %v7422_v6, %s8713_s13 }
0x1b7f   :  { %v4020_v10 = vpop.xlane.xlu1 %4019 }
0x1b80   :  { %v4021_v12 = vmul.f32 0.03125, %v4020_v10 }
0x1b82   :  { %v4022_v11 = vadd.f32 1e-06, %v4021_v12 }
0x1b83   :  { %v8424_v16 = vpop.permute.xlu1 %8423 }
0x1b84   :  { %8623 = vrsqrt.f32 %v4022_v11  ;;  %v8426_v13 = vunpack.i.h.bf16 %v8424_v16  ;;  %v8425_v18 = vunpack.i.l.bf16 %v8424_v16 }
0x1b86   :  { %v8323_v20 = vpack.c.bf16 %v8426_v13, %v8425_v18 }
0x1b87   :  { %v4135_v30 = vpop.permute.xlu1 %4134 }
0x1b88   :  { %8324 = vmatpush3.bf16.msra.mxu0 %v8323_v20 }
0x1b89   :  { %8005 = vmatprep.subr.mxu0 %v8709_v22 }
0x1b8b   :  { %7993 = vmatmul.mubr.msk.f32.vlgmr.msra.gmra.mrb[42].mxu0 %vm993_vm10, %v9643_v23 }
0x1b8c   :  { %8007 = vmatprep.mubr.msk.f32.mxu0 %vm8710_vm2, %v8709_v22 }
0x1b8e   :  { %v8624_v24 = vpop.eup %8623 }
0x1b8f   :  { %v4024_v26 = vmul.f32 %v8624_v24, %v4016_v60 }
0x1b91   :  { %v4029_v28 = vmul.f32 %v7420_v25, %v4024_v26 }
0x1b93   :  { %v4034_v29 = vadd.f32 %v7421_v27, %v4029_v28 }
0x1b95   :  { %7982 = vmatmul.mubr.msk.f32.vlgmr.msra.gmra.mrb[52].mxu1 %vm993_vm10, %v4034_v29 }
0x1b96   :  { %7997 = vmatprep.mubr.msk.f32.mxu1 %vm8710_vm2, %v8709_v22 }
0x1c5e   :  { %v4206_v31 = vpop.f32.mrb[42].mxu0 }
0x1c5f   :  { %v9659_v32 = vadd.f32 %v4206_v31, %v4135_v30  ;;  %v7994_v33 = vpop.f32.mrb[43].mxu0 }
0x1c61   :  { %4378 = vrot.lane.b32.xlu0 %v9659_v32, %s8715_s15  ;;  %7996 = vmatpush3.xpose.msk.msra.mxu1 %vm882_vm8, %v9659_v32 }
0x1c62   :  { %8000 = vmatprep.subr.mxu1 %v8709_v22 }
0x1c65   :  { %4546 = vrot.lane.b32.xlu0 %v9659_v32, %s8716_s16 }
0x1c68   :  { %v4113_v35 = vpop.f32.mrb[52].mxu1 }
0x1c69   :  { %v4114_v36 = vadd.f32 %v7422_v6, %v4113_v35  ;;  %v7983_v37 = vpop.f32.mrb[53].mxu1  ;;  %4714 = vrot.lane.b32.xlu0 %v9659_v32, %s8718_s18 }
0x1c6b   :  { %4376 = vrot.lane.b32.xlu1 %v4114_v36, %s8715_s15  ;;  %7998 = vmatmul.mubr.msk.f32.vlgmr.msra.gmra.mrb[54].mxu1 %vm882_vm8, %v4114_v36 }
0x1c6c   :  { %8002 = vmatprep.mubr.msk.f32.mxu1 %vm8710_vm2, %v8709_v22 }
0x1c6f   :  { %4544 = vrot.lane.b32.xlu1 %v4114_v36, %s8716_s16 }
0x1c73   :  { %4712 = vrot.lane.b32.xlu1 %v4114_v36, %s8718_s18 }
0x1cd3   :  { %v4379_v38 = vpop.permute.xlu0 %4378 }
0x1cd4   :  { %8006 = vmatpush3.xpose.msk.msra.mxu0 %vm882_vm8, %v4379_v38 }
0x1cd5   :  { %8015 = vmatprep.subr.mxu0 %v8709_v22 }
0x1cd7   :  { %v4547_v40 = vpop.permute.xlu0 %4546 }
0x1cdb   :  { %v4715_v41 = vpop.permute.xlu0 %4714 }
0x1cdd   :  { %v4377_v39 = vpop.permute.xlu1 %4376 }
0x1cde   :  { %8008 = vmatmul.mubr.msk.f32.vlgmr.msra.gmra.mrb[44].mxu0 %vm882_vm8, %v4377_v39 }
0x1cdf   :  { %8016 = vmatpush3.xpose.msk.msra.mxu0 %vm882_vm8, %v4547_v40  ;;  %8017 = vmatprep.mubr.msk.f32.mxu0 %vm8710_vm2, %v8709_v22 }
0x1ce0   :  { %8025 = vmatprep.subr.mxu0 %v8709_v22 }
0x1ce1   :  { %v4545_v15 = vpop.permute.xlu1 %4544 }
0x1ce2   :  { %8018 = vmatmul.mubr.msk.f32.vlgmr.msra.gmra.mrb[46].mxu0 %vm882_vm8, %v4545_v15 }
0x1ce3   :  { %8026 = vmatpush3.xpose.msk.msra.mxu0 %vm882_vm8, %v4715_v41  ;;  %8027 = vmatprep.mubr.msk.f32.mxu0 %vm8710_vm2, %v8709_v22 }
0x1ce4   :  { %8325 = vmatprep.subr.bf16.mxu0 %v8711_v34 }
0x1ce5   :  { %v4713_v8 = vpop.permute.xlu1 %4712 }
0x1ce6   :  { %8028 = vmatmul.mubr.msk.f32.vlgmr.msra.gmra.mrb[48].mxu0 %vm882_vm8, %v4713_v8 }
0x1ce7   :  { %8043 = vmatprep.mubr.msk.f32.mxu0 %vm8710_vm2, %v8709_v22 }
0x1d3e   :  { %v4282_v42 = vpop.f32.mrb[54].mxu1 }
0x1d3f   :  { %v4286_v43 = vmul.f32 0.35355338, %v4282_v42  ;;  %v7999_v44 = vpop.f32.mrb[55].mxu1  ;;  %v4895_v42 = vld [vmem:[%s10174_s0 + $0x288] sm:$0xff] }
0x1d41   :  { %v4287_v47 = vadd.f32 %v9694_v45, %v4286_v43  ;;  %v4896_v43 = vld [vmem:[%s10174_s0 + $0x290] sm:$0xff] }
0x1d42   :  { %v8326_v44 = vpack.c.bf16 %v4896_v43, %v4895_v42 }
0x1d43   :  { %v4288_v48 = vsel %vm1164_vm12, %v4287_v47, -inf }
0x1d44   :  { %4289 = vmax.xlane.f32.xlu0 %v4288_v48  ;;  %8327 = vmatpush3.bf16.msra.mxu0 %v8326_v44  ;;  %v4898_v48 = vld [vmem:[%s10174_s0 + $0x2a0] sm:$0xff]  ;;  %v7447_v44 = vld [vmem:[%s10174_s0 + $0x328] ss:$0 sm:$0xff] }
0x1d45   :  { %8328 = vmatprep.subr.bf16.mxu0 %v8711_v34 }
0x1db1   :  { %v4450_v49 = vpop.f32.mrb[44].mxu0 }
0x1db2   :  { %v4454_v50 = vmul.f32 0.35355338, %v4450_v49  ;;  %v8009_v51 = vpop.f32.mrb[45].mxu0 }
0x1db4   :  { %v4455_v56 = vadd.f32 %v9694_v45, %v4454_v50 }
0x1db5   :  { %v4618_v52 = vpop.f32.mrb[46].mxu0 }
0x1db6   :  { %v4622_v53 = vmul.f32 0.35355338, %v4618_v52  ;;  %v8019_v54 = vpop.f32.mrb[47].mxu0  ;;  %v4456_v55 = vsel %vm1164_vm12, %v4455_v56, -inf }
0x1db7   :  { %4457 = vmax.xlane.f32.xlu1 %v4456_v55 }
0x1db8   :  { %v4623_v57 = vadd.f32 %v9694_v45, %v4622_v53 }
0x1db9   :  { %v4786_v58 = vpop.f32.mrb[48].mxu0 }
0x1dba   :  { %v4790_v59 = vmul.f32 0.35355338, %v4786_v58  ;;  %v8029_v60 = vpop.f32.mrb[49].mxu0  ;;  %v4624_v61 = vsel %vm1164_vm12, %v4623_v57, -inf }
0x1dbb   :  { %4625 = vmax.xlane.f32.xlu0 %v4624_v61 }
0x1dbc   :  { %v4791_v62 = vadd.f32 %v9694_v45, %v4790_v59 }
0x1dbe   :  { %v4792_v63 = vsel %vm1164_vm12, %v4791_v62, -inf }
0x1dbf   :  { %4793 = vmax.xlane.f32.xlu0 %v4792_v63 }
0x1dc8   :  { %4299 = vrot.lane.b32.xlu1 %v9659_v32, %s8713_s13 }
0x1dd1   :  { %v4290_v0 = vpop.xlane.xlu0 %4289 }
0x1dd2   :  { %v4291_v1 = vsub.f32 %v4287_v47, %v4290_v0  ;;  %v4897_v47 = vld [vmem:[%s10174_s0 + $0x298] sm:$0xff] }
0x1dd3   :  { %v8329_v49 = vpack.c.bf16 %v4898_v48, %v4897_v47 }
0x1dd4   :  { %v4292_v3 = vmul.f32 1.442695, %v4291_v1 }
0x1dd5   :  { %8330 = vmatpush3.bf16.msra.mxu0 %v8329_v49 }
0x1dd6   :  { %8625 = vpow2.f32 %v4292_v3  ;;  %8337 = vmatprep.subr.bf16.mxu0 %v8711_v34 }
0x1de0   :  { %v8626_v4 = vpop.eup %8625 }
0x1de1   :  { %v4294_v6 = vsel %vm1164_vm12, %v8626_v4, 0.0 }
0x1dec   :  { %4295 = vadd.xlane.f32.xlu1 %v4294_v6 }
0x1e44   :  { %v4458_v7 = vpop.xlane.xlu1 %4457 }
0x1e45   :  { %v4459_v5 = vsub.f32 %v4455_v56, %v4458_v7 }
0x1e47   :  { %v4460_v9 = vmul.f32 1.442695, %v4459_v5 }
0x1e48   :  { %v4300_v10 = vpop.permute.xlu1 %4299  ;;  %v4626_v12 = vpop.xlane.xlu0 %4625 }
0x1e49   :  { %8627 = vpow2.f32 %v4460_v9  ;;  %v4627_v2 = vsub.f32 %v4623_v57, %v4626_v12  ;;  %8001 = vmatpush3.msk.msra.mxu1 %vm520_vm0, %v4300_v10  ;;  %v5003_v12 = vld [vmem:[%s10174_s0 + $0x2c0] sm:$0xff] }
0x1e4a   :  { %8010 = vmatprep.subr.mxu1 %v8709_v22 }
0x1e4b   :  { %v4628_v11 = vmul.f32 1.442695, %v4627_v2  ;;  %v5004_v2 = vld [vmem:[%s10174_s0 + $0x2c8] sm:$0xff] }
0x1e4c   :  { %v4794_v14 = vpop.xlane.xlu0 %4793 }
0x1e4d   :  { %8629 = vpow2.f32 %v4628_v11  ;;  %v4795_v16 = vsub.f32 %v4791_v62, %v4794_v14  ;;  %v7441_v62 = vld [vmem:[%s10174_s0 + $0x2a8] ss:$0 sm:$0xff]  ;;  %v8332_v11 = vpack.c.bf16 %v5004_v2, %v5003_v12  ;;  %v5006_v14 = vld [vmem:[%s10174_s0 + $0x2d8] sm:$0xff] }
0x1e4f   :  { %v4796_v13 = vmul.f32 1.442695, %v4795_v16 }
0x1e51   :  { %8631 = vpow2.f32 %v4796_v13  ;;  %v5086_v13 = vld [vmem:[%s10174_s0 + $0x2e8] sm:$0xff] }
0x1e53   :  { %v8628_v18 = vpop.eup %8627 }
0x1e54   :  { %v4462_v19 = vsel %vm1164_vm12, %v8628_v18, 0.0 }
0x1e55   :  { %4463 = vadd.xlane.f32.xlu0 %v4462_v19  ;;  %v5088_v19 = vld [vmem:[%s10174_s0 + $0x2f8] sm:$0xff] }
0x1e57   :  { %v8630_v20 = vpop.eup %8629 }
0x1e58   :  { %v4630_v21 = vsel %vm1164_vm12, %v8630_v20, 0.0 }
0x1e59   :  { %4631 = vadd.xlane.f32.xlu1 %v4630_v21  ;;  %v5089_v21 = vld [vmem:[%s10174_s0 + $0x300] sm:$0xff] }
0x1e5b   :  { %v8632_v24 = vpop.eup %8631 }
0x1e5c   :  { %v4798_v25 = vsel %vm1164_vm12, %v8632_v24, 0.0 }
0x1e5d   :  { %4799 = vadd.xlane.f32.xlu0 %v4798_v25  ;;  %v5090_v25 = vld [vmem:[%s10174_s0 + $0x308] sm:$0xff] }
0x1e6a   :  { %4635 = vrot.lane.b32.xlu1 %v9659_v32, %s8712_s12 }
0x1e6e   :  { %4803 = vrot.lane.b32.xlu1 %v9659_v32, %s8717_s17 }
0x1e73   :  { %4467 = vrot.lane.b32.xlu0 %v9659_v32, %s8714_s14 }
0x1e79   :  { %v4296_v26 = vpop.xlane.xlu1 %4295 }
0x1e7a   :  { %8633 = vrcp.f32 %v4296_v26  ;;  %v5091_v26 = vld [vmem:[%s10174_s0 + $0x310] sm:$0xff] }
0x1e84   :  { %v8634_v27 = vpop.eup %8633 }
0x1e85   :  { %v4298_v28 = vmul.f32 %v8634_v27, %v8626_v4  ;;  %v8344_v27 = vpack.c.bf16 %v5091_v26, %v5090_v25 }
0x1e87   :  { %8003 = vmatmul.mubr.msk.f32.vlgmr.msra.gmra.mrb[56].mxu1 %vm1164_vm12, %v4298_v28 }
0x1e88   :  { %8012 = vmatprep.mubr.msk.f32.mxu1 %vm8710_vm2, %v8709_v22 }
0x1ee2   :  { %v4464_v29 = vpop.xlane.xlu0 %4463 }
0x1ee3   :  { %8635 = vrcp.f32 %v4464_v29 }
0x1ee6   :  { %v4632_v30 = vpop.xlane.xlu1 %4631 }
0x1ee7   :  { %8637 = vrcp.f32 %v4632_v30 }
0x1eea   :  { %v4800_v31 = vpop.xlane.xlu0 %4799  ;;  %v4636_v36 = vpop.permute.xlu1 %4635 }
0x1eeb   :  { %8639 = vrcp.f32 %v4800_v31 }
0x1eed   :  { %v8636_v33 = vpop.eup %8635 }
0x1eee   :  { %v4466_v35 = vmul.f32 %v8636_v33, %v8628_v18  ;;  %v4468_v37 = vpop.permute.xlu0 %4467  ;;  %v4804_v40 = vpop.permute.xlu1 %4803  ;;  %v5087_v18 = vld [vmem:[%s10174_s0 + $0x2f0] sm:$0xff] }
0x1eef   :  { %8011 = vmatpush3.msk.msra.mxu1 %vm520_vm0, %v4468_v37  ;;  %v7443_v33 = vld [vmem:[%s10174_s0 + $0x2b0] ss:$0 sm:$0xff] }
0x1ef0   :  { %8013 = vmatmul.mubr.msk.f32.vlgmr.msra.gmra.mrb[58].mxu1 %vm1164_vm12, %v4466_v35  ;;  %8020 = vmatprep.subr.mxu1 %v8709_v22 }
0x1ef1   :  { %v8638_v32 = vpop.eup %8637  ;;  %8021 = vmatpush3.msk.msra.mxu1 %vm520_vm0, %v4636_v36  ;;  %8022 = vmatprep.mubr.msk.f32.mxu1 %vm8710_vm2, %v8709_v22  ;;  %v7444_v36 = vld [vmem:[%s10174_s0 + $0x2b8] ss:$0 sm:$0xff] }
0x1ef2   :  { %v4634_v38 = vmul.f32 %v8638_v32, %v8630_v20  ;;  %8030 = vmatprep.subr.mxu1 %v8709_v22  ;;  %v8338_v20 = vpack.c.bf16 %v5087_v18, %v5086_v13 }
0x1ef4   :  { %8023 = vmatmul.mubr.msk.f32.vlgmr.msra.gmra.mrb[60].mxu1 %vm1164_vm12, %v4634_v38  ;;  %v5092_v38 = vld [vmem:[%s10174_s0 + $0x318] sm:$0xff] }
0x1ef5   :  { %v8640_v39 = vpop.eup %8639  ;;  %8031 = vmatpush3.msk.msra.mxu1 %vm520_vm0, %v4804_v40  ;;  %8032 = vmatprep.mubr.msk.f32.mxu1 %vm8710_vm2, %v8709_v22  ;;  %v5093_v40 = vld [vmem:[%s10174_s0 + $0x320] sm:$0xff] }
0x1ef6   :  { %v4802_v15 = vmul.f32 %v8640_v39, %v8632_v24  ;;  %8331 = vmatprep.subr.bf16.mxu1 %v8711_v34  ;;  %v8341_v24 = vpack.c.bf16 %v5089_v21, %v5088_v19  ;;  %v8347_v39 = vpack.c.bf16 %v5093_v40, %v5092_v38 }
0x1ef8   :  { %8033 = vmatmul.mubr.msk.f32.vlgmr.msra.gmra.mrb[62].mxu1 %vm1164_vm12, %v4802_v15  ;;  %v7445_v15 = vld [vmem:[%s10174_s0 + $0x2e0] ss:$0 sm:$0xff] }
0x1ef9   :  { %8054 = vmatprep.mubr.msk.f32.mxu1 %vm8710_vm2, %v8709_v22  ;;  %8333 = vmatpush3.bf16.msra.mxu1 %v8332_v11 }
0x1efa   :  { %8334 = vmatprep.subr.bf16.mxu1 %v8711_v34 }
0x1f5a   :  { %v4372_v41 = vpop.f32.mrb[56].mxu1 }
0x1f5b   :  { %v8004_v8 = vpop.f32.mrb[57].mxu1 }
0x1fc3   :  { %v4540_v50 = vpop.f32.mrb[58].mxu1 }
0x1fc4   :  { %4881 = vrot.lane.b32.xlu0 %v4540_v50, %s8723_s5  ;;  %v8014_v51 = vpop.f32.mrb[59].mxu1 }
0x1fc7   :  { %v4708_v56 = vpop.f32.mrb[60].mxu1 }
0x1fc8   :  { %4885 = vrot.lane.b32.xlu1 %v4708_v56, %s8724_s6  ;;  %v8024_v52 = vpop.f32.mrb[61].mxu1 }
0x1fcb   :  { %v4876_v53 = vpop.f32.mrb[62].mxu1 }
0x1fcc   :  { %4889 = vrot.lane.b32.xlu0 %v4876_v53, %s8725_s7  ;;  %v8034_v54 = vpop.f32.mrb[63].mxu1 }
0x2036   :  { %v4882_v55 = vpop.permute.xlu0 %4881 }
0x2037   :  { %v4892_v58 = vsel %vm882_vm8, %v4372_v41, %v4882_v55 }
0x203a   :  { %v4886_v57 = vpop.permute.xlu1 %4885 }
0x203b   :  { %v4893_v59 = vsel %vm1757_vm13, %v4892_v58, %v4886_v57  ;;  %v5198_v57 = vld [vmem:[%s10174_s0 + $0x340] sm:$0xff]  ;;  %v5199_v58 = vld [vmem:[%s10174_s0 + $0x348] sm:$0xff] }
0x203e   :  { %v4890_v60 = vpop.permute.xlu0 %4889 }
0x203f   :  { %v4894_v61 = vsel %vm1759_vm14, %v4893_v59, %v4890_v60  ;;  %v8350_v59 = vpack.c.bf16 %v5199_v58, %v5198_v57  ;;  %v5200_v60 = vld [vmem:[%s10174_s0 + $0x350] sm:$0xff] }
0x2040   :  { %8044 = vmatmul.mubr.msk.f32.vlgmr.msra.gmra.mrb[50].mxu0 %vm993_vm10, %v4894_v61  ;;  %v5201_v61 = vld [vmem:[%s10174_s0 + $0x358] sm:$0xff] }
0x2041   :  { %8073 = vmatprep.mubr.msk.f32.mxu0 %vm8710_vm2, %v8709_v22  ;;  %8339 = vmatpush3.bf16.msra.mxu0 %v8338_v20 }
0x2042   :  { %8340 = vmatprep.subr.bf16.mxu0 %v8711_v34 }
0x2045   :  { %8342 = vmatpush3.bf16.msra.mxu0 %v8341_v24 }
0x2046   :  { %8343 = vmatprep.subr.bf16.mxu0 %v8711_v34 }
0x2049   :  { %8345 = vmatpush3.bf16.msra.mxu0 %v8344_v27 }
0x204a   :  { %8346 = vmatprep.subr.bf16.mxu0 %v8711_v34 }
0x204d   :  { %8348 = vmatpush3.bf16.msra.mxu0 %v8347_v39 }
0x204e   :  { %8097 = vmatprep.subr.mxu0 %v8709_v22 }
0x2113   :  { %v4973_v63 = vpop.f32.mrb[50].mxu0 }
0x2114   :  { %v4974_v0 = vadd.f32 %v7441_v62, %v4973_v63  ;;  %v8045_v1 = vpop.f32.mrb[51].mxu0  ;;  %v8353_v62 = vpack.c.bf16 %v5201_v61, %v5200_v60 }
0x2116   :  { %v4977_v3 = vadd.f32 %v4974_v0, %v9609_v46  ;;  %v5005_v46 = vld [vmem:[%s10174_s0 + $0x2d0] sm:$0xff] }
0x2117   :  { %v8335_v16 = vpack.c.bf16 %v5006_v14, %v5005_v46 }
0x2118   :  { %v4980_v4 = vsel %vm993_vm10, %v4977_v3, 0.0 }
0x2119   :  { %4981 = vadd.xlane.f32.xlu1 %v4980_v4  ;;  %8336 = vmatpush3.bf16.msra.mxu1 %v8335_v16  ;;  %v7449_v4 = vld [vmem:[%s10174_s0 + $0x330] ss:$0 sm:$0xff] }
0x211a   :  { %8349 = vmatprep.subr.bf16.mxu1 %v8711_v34 }
0x21a6   :  { %v4982_v6 = vpop.xlane.xlu1 %4981 }
0x21a7   :  { %v4983_v7 = vmul.f32 0.03125, %v4982_v6 }
0x21a9   :  { %v4984_v5 = vsub.f32 %v4977_v3, %v4983_v7  ;;  %v7450_v7 = vld [vmem:[%s10174_s0 + $0x338] ss:$0 sm:$0xff] }
0x21ab   :  { %v4985_v9 = vmul.f32 %v4984_v5, %v4984_v5 }
0x21ad   :  { %v4986_v10 = vsel %vm993_vm10, %v4985_v9, 0.0 }
0x21ae   :  { %4987 = vadd.xlane.f32.xlu0 %v4986_v10  ;;  %v7451_v10 = vld [vmem:[%s10174_s0 + $0x360] ss:$0 sm:$0xff] }
0x223b   :  { %v4988_v28 = vpop.xlane.xlu0 %4987 }
0x223c   :  { %v4989_v29 = vmul.f32 0.03125, %v4988_v28 }
0x223e   :  { %v4990_v30 = vadd.f32 1e-06, %v4989_v29 }
0x2240   :  { %8641 = vrsqrt.f32 %v4990_v30 }
0x224a   :  { %v8642_v31 = vpop.eup %8641 }
0x224b   :  { %v4992_v35 = vmul.f32 %v8642_v31, %v4984_v5 }
0x224d   :  { %v4997_v37 = vmul.f32 %v7443_v33, %v4992_v35 }
0x224f   :  { %v5002_v32 = vadd.f32 %v7444_v36, %v4997_v37 }
0x2251   :  { %8055 = vmatmul.mubr.msk.f32.vlgmr.msra.gmra.mrb[64].mxu1 %vm993_vm10, %v5002_v32 }
0x2252   :  { %8084 = vmatprep.mubr.msk.f32.mxu1 %vm8710_vm2, %v8709_v22  ;;  %8351 = vmatpush3.bf16.msra.mxu1 %v8350_v59 }
0x2253   :  { %8352 = vmatprep.subr.bf16.mxu1 %v8711_v34 }
0x2256   :  { %8354 = vmatpush3.bf16.msra.mxu1 %v8353_v62 }
0x2257   :  { %8087 = vmatprep.subr.mxu1 %v8709_v22 }
0x2324   :  { %v5081_v41 = vpop.f32.mrb[64].mxu1 }
0x2325   :  { %v5082_v8 = vadd.f32 %v7445_v15, %v5081_v41  ;;  %v8056_v42 = vpop.f32.mrb[65].mxu1 }
0x2327   :  { %v5085_v43 = vmax.f32 %v5082_v8, 0.0 }
0x2329   :  { %8074 = vmatmul.mubr.msk.f32.vlgmr.msra.gmra.mrb[52].mxu0 %vm1965_vm15, %v5085_v43 }
0x232a   :  { %8099 = vmatprep.mubr.msk.f32.mxu0 %vm8710_vm2, %v8709_v22 }
0x23fc   :  { %v5168_v47 = vpop.f32.mrb[52].mxu0 }
0x23fd   :  { %v5169_v48 = vadd.f32 %v7447_v44, %v5168_v47  ;;  %v8075_v49 = vpop.f32.mrb[53].mxu0 }
0x23ff   :  { %v9825_v50 = vadd.f32 %v5169_v48, %v4977_v3 }
0x2401   :  { %v5175_v51 = vsel %vm993_vm10, %v9825_v50, 0.0 }
0x2402   :  { %5176 = vadd.xlane.f32.xlu0 %v5175_v51 }
0x248f   :  { %v5177_v56 = vpop.xlane.xlu0 %5176 }
0x2490   :  { %v5178_v52 = vmul.f32 0.03125, %v5177_v56 }
0x2492   :  { %v5179_v53 = vsub.f32 %v9825_v50, %v5178_v52 }
0x2494   :  { %v5180_v54 = vmul.f32 %v5179_v53, %v5179_v53 }
0x2496   :  { %v5181_v55 = vsel %vm993_vm10, %v5180_v54, 0.0 }
0x2497   :  { %5182 = vadd.xlane.f32.xlu1 %v5181_v55 }
0x2524   :  { %v5183_v63 = vpop.xlane.xlu1 %5182 }
0x2525   :  { %v5184_v0 = vmul.f32 0.03125, %v5183_v63 }
0x2527   :  { %v5185_v1 = vadd.f32 1e-06, %v5184_v0 }
0x2529   :  { %8643 = vrsqrt.f32 %v5185_v1 }
0x2533   :  { %v8644_v3 = vpop.eup %8643 }
0x2534   :  { %v5187_v6 = vmul.f32 %v8644_v3, %v5179_v53 }
0x2536   :  { %v5192_v5 = vmul.f32 %v7449_v4, %v5187_v6 }
0x2538   :  { %v5197_v9 = vadd.f32 %v7450_v7, %v5192_v5 }
0x253a   :  { %8085 = vmatmul.mubr.msk.f32.vlgmr.msra.gmra.mrb[66].mxu1 %vm993_vm10, %v5197_v9 }
0x253b   :  { %8089 = vmatprep.mubr.msk.f32.mxu1 %vm8710_vm2, %v8709_v22 }
0x260d   :  { %v5276_v12 = vpop.f32.mrb[66].mxu1 }
0x260e   :  { %v9857_v2 = vadd.f32 %v7451_v10, %v5276_v12  ;;  %v8086_v11 = vpop.f32.mrb[67].mxu1 }
0x2610   :  { %5448 = vrot.lane.b32.xlu1 %v9857_v2, %s8714_s14  ;;  %5281 = vrot.lane.b32.xlu0 %v9857_v2, %s8713_s13 }
0x2614   :  { %5446 = vrot.lane.b32.xlu1 %v9857_v2, %s8715_s15  ;;  %5615 = vrot.lane.b32.xlu0 %v9857_v2, %s8712_s12 }
0x2618   :  { %5613 = vrot.lane.b32.xlu1 %v9857_v2, %s8716_s16  ;;  %5782 = vrot.lane.b32.xlu0 %v9857_v2, %s8717_s17 }
0x261c   :  { %5780 = vrot.lane.b32.xlu1 %v9857_v2, %s8718_s18 }
0x2682   :  { %v5449_v46 = vpop.permute.xlu1 %5448  ;;  %v5282_v14 = vpop.permute.xlu0 %5281 }
0x2683   :  { %8088 = vmatpush3.xpose.msk.msra.mxu1 %vm882_vm8, %v5282_v14  ;;  %8098 = vmatpush3.xpose.msk.msra.mxu0 %vm882_vm8, %v5449_v46 }
0x2684   :  { %8107 = vmatprep.subr.mxu0 %v8709_v22  ;;  %8092 = vmatprep.subr.mxu1 %v8709_v22 }
0x2686   :  { %v5447_v16 = vpop.permute.xlu1 %5446  ;;  %8090 = vmatmul.mubr.msk.f32.vlgmr.msra.gmra.mrb[68].mxu1 %vm882_vm8, %v9857_v2  ;;  %v5616_v13 = vpop.permute.xlu0 %5615 }
0x2687   :  { %8100 = vmatmul.mubr.msk.f32.vlgmr.msra.gmra.mrb[54].mxu0 %vm882_vm8, %v5447_v16  ;;  %8094 = vmatprep.mubr.msk.f32.mxu1 %vm8710_vm2, %v8709_v22 }
0x2688   :  { %8108 = vmatpush3.xpose.msk.msra.mxu0 %vm882_vm8, %v5616_v13  ;;  %8109 = vmatprep.mubr.msk.f32.mxu0 %vm8710_vm2, %v8709_v22 }
0x2689   :  { %8117 = vmatprep.subr.mxu0 %v8709_v22 }
0x268a   :  { %v5614_v18 = vpop.permute.xlu1 %5613  ;;  %v5783_v19 = vpop.permute.xlu0 %5782 }
0x268b   :  { %8110 = vmatmul.mubr.msk.f32.vlgmr.msra.gmra.mrb[56].mxu0 %vm882_vm8, %v5614_v18  ;;  %v5962_v18 = vld [vmem:[%s10174_s0 + $0x368] sm:$0xff] }
0x268c   :  { %8118 = vmatpush3.xpose.msk.msra.mxu0 %vm882_vm8, %v5783_v19  ;;  %8119 = vmatprep.mubr.msk.f32.mxu0 %vm8710_vm2, %v8709_v22  ;;  %v5963_v19 = vld [vmem:[%s10174_s0 + $0x370] sm:$0xff] }
0x268d   :  { %8355 = vmatprep.subr.bf16.mxu0 %v8711_v34 }
0x268e   :  { %v5781_v20 = vpop.permute.xlu1 %5780 }
0x268f   :  { %8120 = vmatmul.mubr.msk.f32.vlgmr.msra.gmra.mrb[58].mxu0 %vm882_vm8, %v5781_v20  ;;  %v8356_v20 = vpack.c.bf16 %v5963_v19, %v5962_v18 }
0x2690   :  { %8135 = vmatprep.mubr.msk.f32.mxu0 %vm8710_vm2, %v8709_v22 }
0x2691   :  { %8357 = vmatpush3.bf16.msra.mxu0 %v8356_v20 }
0x2692   :  { %8358 = vmatprep.subr.bf16.mxu0 %v8711_v34 }
0x2759   :  { %v5353_v21 = vpop.f32.mrb[68].mxu1 }
0x275a   :  { %v5357_v24 = vmul.f32 0.35355338, %v5353_v21  ;;  %v8091_v25 = vpop.f32.mrb[69].mxu1  ;;  %v5520_v26 = vpop.f32.mrb[54].mxu0  ;;  %v5964_v21 = vld [vmem:[%s10174_s0 + $0x378] sm:$0xff] }
0x275b   :  { %v5524_v27 = vmul.f32 0.35355338, %v5520_v26  ;;  %v8101_v28 = vpop.f32.mrb[55].mxu0 }
0x275c   :  { %v5358_v29 = vadd.f32 %v5357_v24, %v9538_v17  ;;  %v5965_v24 = vld [vmem:[%s10174_s0 + $0x380] sm:$0xff] }
0x275d   :  { %v5525_v30 = vadd.f32 %v5524_v27, %v9538_v17  ;;  %v8359_v25 = vpack.c.bf16 %v5965_v24, %v5964_v21 }
0x275e   :  { %v5687_v31 = vpop.f32.mrb[56].mxu0  ;;  %v5359_v33 = vsel %vm882_vm8, %v5358_v29, -inf }
0x275f   :  { %v5691_v35 = vmul.f32 0.35355338, %v5687_v31  ;;  %5360 = vmax.xlane.f32.xlu0 %v5359_v33  ;;  %v8111_v36 = vpop.f32.mrb[57].mxu0  ;;  %v5526_v37 = vsel %vm882_vm8, %v5525_v30, -inf  ;;  %8360 = vmatpush3.bf16.msra.mxu0 %v8359_v25 }
0x2760   :  { %5527 = vmax.xlane.f32.xlu1 %v5526_v37  ;;  %8367 = vmatprep.subr.bf16.mxu0 %v8711_v34 }
0x2761   :  { %v5692_v32 = vadd.f32 %v5691_v35, %v9538_v17 }
0x2762   :  { %v5854_v38 = vpop.f32.mrb[58].mxu0 }
0x2763   :  { %v5858_v40 = vmul.f32 0.35355338, %v5854_v38  ;;  %v8121_v39 = vpop.f32.mrb[59].mxu0  ;;  %v5693_v15 = vsel %vm882_vm8, %v5692_v32, -inf }
0x2764   :  { %5694 = vmax.xlane.f32.xlu0 %v5693_v15  ;;  %v7465_v15 = vld [vmem:[%s10174_s0 + $0x388] ss:$0 sm:$0xff] }
0x2765   :  { %v5859_v41 = vadd.f32 %v5858_v40, %v9538_v17 }
0x2767   :  { %v5860_v8 = vsel %vm882_vm8, %v5859_v41, -inf }
0x2768   :  { %5861 = vmax.xlane.f32.xlu0 %v5860_v8 }
0x2771   :  { %5370 = vrot.lane.b32.xlu1 %v9857_v2, %s8719_s21 }
0x27ec   :  { %v5361_v42 = vpop.xlane.xlu0 %5360 }
0x27ed   :  { %v5362_v43 = vsub.f32 %v5358_v29, %v5361_v42  ;;  %v5528_v44 = vpop.xlane.xlu1 %5527 }
0x27ee   :  { %v5529_v47 = vsub.f32 %v5525_v30, %v5528_v44 }
0x27ef   :  { %v5363_v48 = vmul.f32 1.442695, %v5362_v43 }
0x27f0   :  { %v5530_v49 = vmul.f32 1.442695, %v5529_v47  ;;  %v6072_v47 = vld [vmem:[%s10174_s0 + $0x3b0] sm:$0xff] }
0x27f1   :  { %8645 = vpow2.f32 %v5363_v48  ;;  %v5371_v51 = vpop.permute.xlu1 %5370  ;;  %v5695_v56 = vpop.xlane.xlu0 %5694  ;;  %v6073_v48 = vld [vmem:[%s10174_s0 + $0x3b8] sm:$0xff] }
0x27f2   :  { %8647 = vpow2.f32 %v5530_v49  ;;  %v5696_v52 = vsub.f32 %v5692_v32, %v5695_v56  ;;  %8093 = vmatpush3.msra.mxu1 %v5371_v51  ;;  %v8432_v49 = vpack.i.bf16 %v6073_v48, %v6072_v47 }
0x27f3   :  { %8102 = vmatprep.subr.mxu1 %v8709_v22 }
0x27f4   :  { %v5697_v17 = vmul.f32 1.442695, %v5696_v52 }
0x27f5   :  { %v5862_v53 = vpop.xlane.xlu0 %5861 }
0x27f6   :  { %8649 = vpow2.f32 %v5697_v17  ;;  %v5863_v54 = vsub.f32 %v5859_v41, %v5862_v53  ;;  %v6070_v53 = vld [vmem:[%s10174_s0 + $0x3a0] sm:$0xff] }
0x27f8   :  { %v5864_v55 = vmul.f32 1.442695, %v5863_v54  ;;  %v6071_v54 = vld [vmem:[%s10174_s0 + $0x3a8] sm:$0xff] }
0x27fa   :  { %8651 = vpow2.f32 %v5864_v55  ;;  %v8427_v55 = vpack.i.bf16 %v6071_v54, %v6070_v53 }
0x27fb   :  { %v8646_v57 = vpop.eup %8645 }
0x27fc   :  { %v8648_v58 = vpop.eup %8647  ;;  %v5365_v59 = vsel %vm882_vm8, %v8646_v57, 0.0 }
0x27fd   :  { %5366 = vadd.xlane.f32.xlu1 %v5365_v59  ;;  %v5532_v60 = vsel %vm882_vm8, %v8648_v58, 0.0  ;;  %v7469_v59 = vld [vmem:[%s10174_s0 + $0x3c0] ss:$0 sm:$0xff] }
0x27fe   :  { %5533 = vadd.xlane.f32.xlu0 %v5532_v60 }
0x2800   :  { %v8650_v61 = vpop.eup %8649 }
0x2801   :  { %v5699_v62 = vsel %vm882_vm8, %v8650_v61, 0.0 }
0x2802   :  { %5700 = vadd.xlane.f32.xlu1 %v5699_v62 }
0x2804   :  { %v8652_v63 = vpop.eup %8651 }
0x2805   :  { %v5866_v0 = vsel %vm882_vm8, %v8652_v63, 0.0 }
0x2806   :  { %5867 = vadd.xlane.f32.xlu0 %v5866_v0 }
0x2813   :  { %5704 = vrot.lane.b32.xlu1 %v9857_v2, %s8720_s1 }
0x2817   :  { %5871 = vrot.lane.b32.xlu1 %v9857_v2, %s8721_s22 }
0x281c   :  { %5537 = vrot.lane.b32.xlu0 %v9857_v2, %s8722_s23 }
0x288a   :  { %v5367_v1 = vpop.xlane.xlu1 %5366 }
0x288b   :  { %8653 = vrcp.f32 %v5367_v1  ;;  %v5534_v3 = vpop.xlane.xlu0 %5533 }
0x288c   :  { %8655 = vrcp.f32 %v5534_v3 }
0x288f   :  { %v5701_v4 = vpop.xlane.xlu1 %5700 }
0x2890   :  { %8657 = vrcp.f32 %v5701_v4 }
0x2893   :  { %v5868_v6 = vpop.xlane.xlu0 %5867  ;;  %v5705_v2 = vpop.permute.xlu1 %5704 }
0x2894   :  { %8659 = vrcp.f32 %v5868_v6 }
0x2895   :  { %v8654_v7 = vpop.eup %8653 }
0x2896   :  { %v5369_v5 = vmul.f32 %v8654_v7, %v8646_v57  ;;  %v8656_v9 = vpop.eup %8655  ;;  %v8362_v57 = vpack.c.bf16 %v6071_v54, %v6070_v53 }
0x2897   :  { %v5538_v10 = vpop.permute.xlu0 %5537  ;;  %v5536_v12 = vmul.f32 %v8656_v9, %v8648_v58  ;;  %v5872_v16 = vpop.permute.xlu1 %5871  ;;  %v8365_v58 = vpack.c.bf16 %v6073_v48, %v6072_v47 }
0x2898   :  { %8095 = vmatmul.mubr.msk.f32.vlgmr.msra.gmra.mrb[70].mxu1 %vm882_vm8, %v5369_v5 }
0x2899   :  { %8103 = vmatpush3.msra.mxu1 %v5538_v10  ;;  %8104 = vmatprep.mubr.msk.f32.mxu1 %vm8710_vm2, %v8709_v22  ;;  %v7467_v10 = vld [vmem:[%s10174_s0 + $0x390] ss:$0 sm:$0xff] }
0x289a   :  { %8112 = vmatprep.subr.mxu1 %v8709_v22  ;;  %v8658_v11 = vpop.eup %8657 }
0x289b   :  { %v5703_v46 = vmul.f32 %v8658_v11, %v8650_v61 }
0x289c   :  { %8105 = vmatmul.mubr.msk.f32.vlgmr.msra.gmra.mrb[72].mxu1 %vm882_vm8, %v5536_v12 }
0x289d   :  { %8113 = vmatpush3.msra.mxu1 %v5705_v2  ;;  %8114 = vmatprep.mubr.msk.f32.mxu1 %vm8710_vm2, %v8709_v22  ;;  %v7468_v2 = vld [vmem:[%s10174_s0 + $0x398] ss:$0 sm:$0xff] }
0x289e   :  { %8122 = vmatprep.subr.mxu1 %v8709_v22  ;;  %v8660_v14 = vpop.eup %8659 }
0x289f   :  { %v5870_v13 = vmul.f32 %v8660_v14, %v8652_v63 }
0x28a0   :  { %8115 = vmatmul.mubr.msk.f32.vlgmr.msra.gmra.mrb[74].mxu1 %vm882_vm8, %v5703_v46 }
0x28a1   :  { %8123 = vmatpush3.msra.mxu1 %v5872_v16  ;;  %8124 = vmatprep.mubr.msk.f32.mxu1 %vm8710_vm2, %v8709_v22 }
0x28a2   :  { %8361 = vmatprep.subr.bf16.mxu1 %v8711_v34 }
0x28a4   :  { %8125 = vmatmul.mubr.msk.f32.vlgmr.msra.gmra.mrb[76].mxu1 %vm882_vm8, %v5870_v13 }
0x28a5   :  { %8146 = vmatprep.mubr.msk.f32.mxu1 %vm8710_vm2, %v8709_v22  ;;  %8363 = vmatpush3.bf16.msra.mxu1 %v8362_v57 }
0x28a6   :  { %8364 = vmatprep.subr.bf16.mxu1 %v8711_v34 }
0x28a9   :  { %8366 = vmatpush3.bf16.msra.mxu1 %v8365_v58 }
0x28aa   :  { %8160 = vmatprep.subr.mxu1 %v8709_v22 }
0x296b   :  { %v5442_v26 = vpop.f32.mrb[70].mxu1 }
0x296c   :  { %v8096_v27 = vpop.f32.mrb[71].mxu1 }
0x296f   :  { %v5609_v28 = vpop.f32.mrb[72].mxu1 }
0x2970   :  { %5948 = vrot.lane.b32.xlu0 %v5609_v28, %s8723_s5  ;;  %v8106_v29 = vpop.f32.mrb[73].mxu1 }
0x2973   :  { %v5776_v30 = vpop.f32.mrb[74].mxu1 }
0x2974   :  { %5952 = vrot.lane.b32.xlu1 %v5776_v30, %s8724_s6  ;;  %v8116_v31 = vpop.f32.mrb[75].mxu1 }
0x2977   :  { %v5943_v33 = vpop.f32.mrb[76].mxu1 }
0x2978   :  { %5956 = vrot.lane.b32.xlu0 %v5943_v33, %s8725_s7  ;;  %v8126_v35 = vpop.f32.mrb[77].mxu1 }
0x29e2   :  { %v5949_v36 = vpop.permute.xlu0 %5948 }
0x29e3   :  { %v5959_v32 = vsel %vm882_vm8, %v5442_v26, %v5949_v36 }
0x29e6   :  { %v5953_v37 = vpop.permute.xlu1 %5952 }
0x29e7   :  { %v5960_v38 = vsel %vm1757_vm13, %v5959_v32, %v5953_v37 }
0x29ea   :  { %v5957_v40 = vpop.permute.xlu0 %5956 }
0x29eb   :  { %v5961_v39 = vsel %vm1759_vm14, %v5960_v38, %v5957_v40 }
0x29ec   :  { %8136 = vmatmul.mubr.msk.f32.vlgmr.msra.gmra.mrb[60].mxu0 %vm993_vm10, %v5961_v39 }
0x29ed   :  { %8157 = vmatprep.mubr.msk.f32.mxu0 %vm8710_vm2, %v8709_v22 }
0x2abf   :  { %v6040_v41 = vpop.f32.mrb[60].mxu0 }
0x2ac0   :  { %v6041_v8 = vadd.f32 %v7465_v15, %v6040_v41  ;;  %v8137_v42 = vpop.f32.mrb[61].mxu0 }
0x2ac2   :  { %v9957_v43 = vadd.f32 %v6041_v8, %v9825_v50 }
0x2ac4   :  { %v6047_v44 = vsel %vm993_vm10, %v9957_v43, 0.0 }
0x2ac5   :  { %6048 = vadd.xlane.f32.xlu1 %v6047_v44 }
0x2ad6   :  { %8433 = vrot.lane.b32.xlu1 %v8432_v49, %s8713_s13 }
0x2ada   :  { %6169 = vrot.lane.b32.xlu1 %v7469_v59, %s8713_s13 }
0x2b52   :  { %v6049_v51 = vpop.xlane.xlu1 %6048 }
0x2b53   :  { %v6050_v56 = vmul.f32 0.03125, %v6049_v51 }
0x2b55   :  { %v6051_v50 = vsub.f32 %v9957_v43, %v6050_v56 }
0x2b56   :  { %v8434_v62 = vpop.permute.xlu1 %8433 }
0x2b57   :  { %v6052_v52 = vmul.f32 %v6051_v50, %v6051_v50  ;;  %v8436_v1 = vunpack.i.h.bf16 %v8434_v62  ;;  %v8435_v6 = vunpack.i.l.bf16 %v8434_v62 }
0x2b59   :  { %v6053_v17 = vsel %vm993_vm10, %v6052_v52, 0.0  ;;  %v8371_v5 = vpack.c.bf16 %v8436_v1, %v8435_v6 }
0x2b5a   :  { %6054 = vadd.xlane.f32.xlu0 %v6053_v17  ;;  %v6170_v14 = vpop.permute.xlu1 %6169 }
0x2b70   :  { %8428 = vrot.lane.b32.xlu0 %v8427_v55, %s8713_s13 }
0x2be7   :  { %v6055_v60 = vpop.xlane.xlu0 %6054 }
0x2be8   :  { %v6056_v61 = vmul.f32 0.03125, %v6055_v60 }
0x2bea   :  { %v6057_v63 = vadd.f32 1e-06, %v6056_v61 }
0x2beb   :  { %v8429_v0 = vpop.permute.xlu0 %8428 }
0x2bec   :  { %8661 = vrsqrt.f32 %v6057_v63  ;;  %v8431_v3 = vunpack.i.h.bf16 %v8429_v0  ;;  %v8430_v4 = vunpack.i.l.bf16 %v8429_v0 }
0x2bee   :  { %v8368_v7 = vpack.c.bf16 %v8431_v3, %v8430_v4 }
0x2bf0   :  { %8369 = vmatpush3.bf16.msra.mxu0 %v8368_v7 }
0x2bf1   :  { %8370 = vmatprep.subr.bf16.mxu0 %v8711_v34 }
0x2bf4   :  { %8372 = vmatpush3.bf16.msra.mxu0 %v8371_v5 }
0x2bf5   :  { %8170 = vmatprep.subr.mxu0 %v8709_v22 }
0x2bf6   :  { %v8662_v9 = vpop.eup %8661 }
0x2bf7   :  { %v6059_v12 = vmul.f32 %v8662_v9, %v6051_v50  ;;  %8158 = vmatmul.mubr.msk.f32.vlgmr.msra.gmra.mrb[62].mxu0 %vm993_vm10, %v9643_v23 }
0x2bf8   :  { %8172 = vmatprep.mubr.msk.f32.mxu0 %vm8710_vm2, %v8709_v22 }
0x2bf9   :  { %v6064_v11 = vmul.f32 %v7467_v10, %v6059_v12 }
0x2bfb   :  { %v6069_v46 = vadd.f32 %v7468_v2, %v6064_v11 }
0x2bfd   :  { %8147 = vmatmul.mubr.msk.f32.vlgmr.msra.gmra.mrb[78].mxu1 %vm993_vm10, %v6069_v46 }
0x2bfe   :  { %8162 = vmatprep.mubr.msk.f32.mxu1 %vm8710_vm2, %v8709_v22 }
0x2cca   :  { %v6238_v16 = vpop.f32.mrb[62].mxu0 }
0x2ccb   :  { %v9998_v13 = vadd.f32 %v6238_v16, %v6170_v14  ;;  %v8159_v18 = vpop.f32.mrb[63].mxu0 }
0x2ccd   :  { %6410 = vrot.lane.b32.xlu0 %v9998_v13, %s8715_s15  ;;  %8161 = vmatpush3.xpose.msk.msra.mxu1 %vm882_vm8, %v9998_v13 }
0x2cce   :  { %8165 = vmatprep.subr.mxu1 %v8709_v22 }
0x2cd0   :  { %v6148_v23 = vpop.f32.mrb[78].mxu1 }
0x2cd1   :  { %v6149_v19 = vadd.f32 %v7469_v59, %v6148_v23  ;;  %v8148_v20 = vpop.f32.mrb[79].mxu1  ;;  %6578 = vrot.lane.b32.xlu0 %v9998_v13, %s8716_s16 }
0x2cd3   :  { %6408 = vrot.lane.b32.xlu1 %v6149_v19, %s8715_s15  ;;  %8163 = vmatmul.mubr.msk.f32.vlgmr.msra.gmra.mrb[80].mxu1 %vm882_vm8, %v6149_v19 }
0x2cd4   :  { %8167 = vmatprep.mubr.msk.f32.mxu1 %vm8710_vm2, %v8709_v22 }
0x2cd5   :  { %6746 = vrot.lane.b32.xlu0 %v9998_v13, %s8718_s18 }
0x2cd7   :  { %6576 = vrot.lane.b32.xlu1 %v6149_v19, %s8716_s16 }
0x2cdb   :  { %6744 = vrot.lane.b32.xlu1 %v6149_v19, %s8718_s18 }
0x2d3f   :  { %v6411_v21 = vpop.permute.xlu0 %6410 }
0x2d40   :  { %8171 = vmatpush3.xpose.msk.msra.mxu0 %vm882_vm8, %v6411_v21 }
0x2d41   :  { %8180 = vmatprep.subr.mxu0 %v8709_v22 }
0x2d43   :  { %v6579_v24 = vpop.permute.xlu0 %6578 }
0x2d45   :  { %v6409_v25 = vpop.permute.xlu1 %6408 }
0x2d46   :  { %8173 = vmatmul.mubr.msk.f32.vlgmr.msra.gmra.mrb[64].mxu0 %vm882_vm8, %v6409_v25 }
0x2d47   :  { %8181 = vmatpush3.xpose.msk.msra.mxu0 %vm882_vm8, %v6579_v24  ;;  %8182 = vmatprep.mubr.msk.f32.mxu0 %vm8710_vm2, %v8709_v22  ;;  %v6747_v27 = vpop.permute.xlu0 %6746 }
0x2d48   :  { %8190 = vmatprep.subr.mxu0 %v8709_v22 }
0x2d49   :  { %v6577_v26 = vpop.permute.xlu1 %6576 }
0x2d4a   :  { %8183 = vmatmul.mubr.msk.f32.vlgmr.msra.gmra.mrb[66].mxu0 %vm882_vm8, %v6577_v26  ;;  %v6927_v26 = vld [vmem:[%s10174_s0 + $0x3c8] sm:$0xff] }
0x2d4b   :  { %8191 = vmatpush3.xpose.msk.msra.mxu0 %vm882_vm8, %v6747_v27  ;;  %8192 = vmatprep.mubr.msk.f32.mxu0 %vm8710_vm2, %v8709_v22  ;;  %v6928_v27 = vld [vmem:[%s10174_s0 + $0x3d0] sm:$0xff] }
0x2d4c   :  { %8373 = vmatprep.subr.bf16.mxu0 %v8711_v34 }
0x2d4d   :  { %v6745_v28 = vpop.permute.xlu1 %6744 }
0x2d4e   :  { %8193 = vmatmul.mubr.msk.f32.vlgmr.msra.gmra.mrb[68].mxu0 %vm882_vm8, %v6745_v28  ;;  %v8374_v28 = vpack.c.bf16 %v6928_v27, %v6927_v26 }
0x2d4f   :  { %8208 = vmatprep.mubr.msk.f32.mxu0 %vm8710_vm2, %v8709_v22 }
0x2d50   :  { %8375 = vmatpush3.bf16.msra.mxu0 %v8374_v28 }
0x2d51   :  { %8376 = vmatprep.subr.bf16.mxu0 %v8711_v34 }
0x2da6   :  { %v6314_v29 = vpop.f32.mrb[80].mxu1 }
0x2da7   :  { %v6318_v30 = vmul.f32 0.35355338, %v6314_v29  ;;  %v8164_v31 = vpop.f32.mrb[81].mxu1  ;;  %v6929_v29 = vld [vmem:[%s10174_s0 + $0x3d8] sm:$0xff] }
0x2da9   :  { %v6319_v33 = vadd.f32 %v9694_v45, %v6318_v30  ;;  %v6930_v30 = vld [vmem:[%s10174_s0 + $0x3e0] sm:$0xff] }
0x2daa   :  { %v8377_v31 = vpack.c.bf16 %v6930_v30, %v6929_v29 }
0x2dab   :  { %v6320_v35 = vsel %vm1164_vm12, %v6319_v33, -inf }
0x2dac   :  { %6321 = vmax.xlane.f32.xlu0 %v6320_v35  ;;  %8378 = vmatpush3.bf16.msra.mxu0 %v8377_v31 }
0x2dad   :  { %8385 = vmatprep.subr.bf16.mxu0 %v8711_v34 }
0x2e19   :  { %v6482_v36 = vpop.f32.mrb[64].mxu0 }
0x2e1a   :  { %v6486_v37 = vmul.f32 0.35355338, %v6482_v36  ;;  %v8174_v32 = vpop.f32.mrb[65].mxu0 }
0x2e1c   :  { %v6487_v38 = vadd.f32 %v9694_v45, %v6486_v37 }
0x2e1d   :  { %v6650_v40 = vpop.f32.mrb[66].mxu0 }
0x2e1e   :  { %v6654_v39 = vmul.f32 0.35355338, %v6650_v40  ;;  %v8184_v15 = vpop.f32.mrb[67].mxu0  ;;  %v6488_v41 = vsel %vm1164_vm12, %v6487_v38, -inf }
0x2e1f   :  { %6489 = vmax.xlane.f32.xlu1 %v6488_v41 }
0x2e20   :  { %v6655_v8 = vadd.f32 %v9694_v45, %v6654_v39 }
0x2e21   :  { %v6818_v42 = vpop.f32.mrb[68].mxu0 }
0x2e22   :  { %v6822_v44 = vmul.f32 0.35355338, %v6818_v42  ;;  %v8194_v47 = vpop.f32.mrb[69].mxu0  ;;  %v6656_v48 = vsel %vm1164_vm12, %v6655_v8, -inf }
0x2e23   :  { %6657 = vmax.xlane.f32.xlu0 %v6656_v48 }
0x2e24   :  { %v6823_v49 = vadd.f32 %v9694_v45, %v6822_v44  ;;  %v7488_v44 = vld [vmem:[%s10174_s0 + $0x3e8] ss:$0 sm:$0xff] }
0x2e26   :  { %v6824_v51 = vsel %vm1164_vm12, %v6823_v49, -inf }
0x2e27   :  { %6825 = vmax.xlane.f32.xlu0 %v6824_v51 }
0x2e30   :  { %6331 = vrot.lane.b32.xlu1 %v9998_v13, %s8713_s13 }
0x2e39   :  { %v6322_v56 = vpop.xlane.xlu0 %6321 }
0x2e3a   :  { %v6323_v50 = vsub.f32 %v6319_v33, %v6322_v56 }
0x2e3c   :  { %v6324_v52 = vmul.f32 1.442695, %v6323_v50 }
0x2e3e   :  { %8663 = vpow2.f32 %v6324_v52 }
0x2e48   :  { %v8664_v17 = vpop.eup %8663 }
0x2e49   :  { %v6326_v53 = vsel %vm1164_vm12, %v8664_v17, 0.0 }
0x2e54   :  { %6327 = vadd.xlane.f32.xlu1 %v6326_v53 }
0x2eac   :  { %v6490_v54 = vpop.xlane.xlu1 %6489 }
0x2ead   :  { %v6491_v55 = vsub.f32 %v6487_v38, %v6490_v54 }
0x2eaf   :  { %v6492_v57 = vmul.f32 1.442695, %v6491_v55  ;;  %v7036_v55 = vld [vmem:[%s10174_s0 + $0x408] sm:$0xff] }
0x2eb0   :  { %v6332_v58 = vpop.permute.xlu1 %6331  ;;  %v6658_v59 = vpop.xlane.xlu0 %6657 }
0x2eb1   :  { %8665 = vpow2.f32 %v6492_v57  ;;  %v6659_v45 = vsub.f32 %v6655_v8, %v6658_v59  ;;  %8166 = vmatpush3.msk.msra.mxu1 %vm520_vm0, %v6332_v58  ;;  %v7038_v58 = vld [vmem:[%s10174_s0 + $0x418] sm:$0xff] }
0x2eb2   :  { %8175 = vmatprep.subr.mxu1 %v8709_v22 }
0x2eb3   :  { %v6660_v60 = vmul.f32 1.442695, %v6659_v45  ;;  %v7118_v45 = vld [vmem:[%s10174_s0 + $0x428] sm:$0xff] }
0x2eb4   :  { %v6826_v61 = vpop.xlane.xlu0 %6825 }
0x2eb5   :  { %8667 = vpow2.f32 %v6660_v60  ;;  %v6827_v62 = vsub.f32 %v6823_v49, %v6826_v61  ;;  %v7119_v60 = vld [vmem:[%s10174_s0 + $0x430] sm:$0xff]  ;;  %v7120_v61 = vld [vmem:[%s10174_s0 + $0x438] sm:$0xff] }
0x2eb7   :  { %v6828_v63 = vmul.f32 1.442695, %v6827_v62  ;;  %v8386_v62 = vpack.c.bf16 %v7119_v60, %v7118_v45 }
0x2eb9   :  { %8669 = vpow2.f32 %v6828_v63  ;;  %v7121_v63 = vld [vmem:[%s10174_s0 + $0x440] sm:$0xff] }
0x2ebb   :  { %v8666_v0 = vpop.eup %8665 }
0x2ebc   :  { %v6494_v1 = vsel %vm1164_vm12, %v8666_v0, 0.0 }
0x2ebd   :  { %6495 = vadd.xlane.f32.xlu0 %v6494_v1  ;;  %v7122_v1 = vld [vmem:[%s10174_s0 + $0x448] sm:$0xff] }
0x2ebf   :  { %v8668_v3 = vpop.eup %8667 }
0x2ec0   :  { %v6662_v4 = vsel %vm1164_vm12, %v8668_v3, 0.0 }
0x2ec1   :  { %6663 = vadd.xlane.f32.xlu1 %v6662_v4 }
0x2ec3   :  { %v8670_v6 = vpop.eup %8669 }
0x2ec4   :  { %v6830_v7 = vsel %vm1164_vm12, %v8670_v6, 0.0 }
0x2ec5   :  { %6831 = vadd.xlane.f32.xlu0 %v6830_v7 }
0x2ed2   :  { %6667 = vrot.lane.b32.xlu1 %v9998_v13, %s8712_s12 }
0x2ed6   :  { %6835 = vrot.lane.b32.xlu1 %v9998_v13, %s8717_s17 }
0x2edb   :  { %6499 = vrot.lane.b32.xlu0 %v9998_v13, %s8714_s14 }
0x2ee1   :  { %v6328_v5 = vpop.xlane.xlu1 %6327 }
0x2ee2   :  { %8671 = vrcp.f32 %v6328_v5 }
0x2eec   :  { %v8672_v9 = vpop.eup %8671 }
0x2eed   :  { %v6330_v10 = vmul.f32 %v8672_v9, %v8664_v17 }
0x2eef   :  { %8168 = vmatmul.mubr.msk.f32.vlgmr.msra.gmra.mrb[82].mxu1 %vm1164_vm12, %v6330_v10  ;;  %v7490_v10 = vld [vmem:[%s10174_s0 + $0x3f0] ss:$0 sm:$0xff] }
0x2ef0   :  { %8177 = vmatprep.mubr.msk.f32.mxu1 %vm8710_vm2, %v8709_v22 }
0x2f4a   :  { %v6496_v12 = vpop.xlane.xlu0 %6495 }
0x2f4b   :  { %8673 = vrcp.f32 %v6496_v12 }
0x2f4e   :  { %v6664_v2 = vpop.xlane.xlu1 %6663 }
0x2f4f   :  { %8675 = vrcp.f32 %v6664_v2  ;;  %v7491_v2 = vld [vmem:[%s10174_s0 + $0x3f8] ss:$0 sm:$0xff] }
0x2f52   :  { %v6832_v11 = vpop.xlane.xlu0 %6831  ;;  %v6668_v16 = vpop.permute.xlu1 %6667 }
0x2f53   :  { %8677 = vrcp.f32 %v6832_v11 }
0x2f55   :  { %v8674_v46 = vpop.eup %8673 }
0x2f56   :  { %v6498_v14 = vmul.f32 %v8674_v46, %v8666_v0  ;;  %v6500_v18 = vpop.permute.xlu0 %6499  ;;  %v6836_v19 = vpop.permute.xlu1 %6835  ;;  %v8389_v0 = vpack.c.bf16 %v7121_v63, %v7120_v61 }
0x2f57   :  { %8176 = vmatpush3.msk.msra.mxu1 %vm520_vm0, %v6500_v18  ;;  %v7492_v18 = vld [vmem:[%s10174_s0 + $0x420] ss:$0 sm:$0xff] }
0x2f58   :  { %8178 = vmatmul.mubr.msk.f32.vlgmr.msra.gmra.mrb[84].mxu1 %vm1164_vm12, %v6498_v14  ;;  %8185 = vmatprep.subr.mxu1 %v8709_v22  ;;  %v7125_v14 = vld [vmem:[%s10174_s0 + $0x460] sm:$0xff] }
0x2f59   :  { %v8676_v13 = vpop.eup %8675  ;;  %8186 = vmatpush3.msk.msra.mxu1 %vm520_vm0, %v6668_v16  ;;  %8187 = vmatprep.mubr.msk.f32.mxu1 %vm8710_vm2, %v8709_v22 }
0x2f5a   :  { %v6666_v23 = vmul.f32 %v8676_v13, %v8668_v3  ;;  %8195 = vmatprep.subr.mxu1 %v8709_v22  ;;  %v7123_v3 = vld [vmem:[%s10174_s0 + $0x450] sm:$0xff] }
0x2f5b   :  { %v8392_v4 = vpack.c.bf16 %v7123_v3, %v7122_v1 }
0x2f5c   :  { %8188 = vmatmul.mubr.msk.f32.vlgmr.msra.gmra.mrb[86].mxu1 %vm1164_vm12, %v6666_v23 }
0x2f5d   :  { %v8678_v20 = vpop.eup %8677  ;;  %8196 = vmatpush3.msk.msra.mxu1 %vm520_vm0, %v6836_v19  ;;  %8197 = vmatprep.mubr.msk.f32.mxu1 %vm8710_vm2, %v8709_v22 }
0x2f5e   :  { %v6834_v21 = vmul.f32 %v8678_v20, %v8670_v6  ;;  %8379 = vmatprep.subr.bf16.mxu1 %v8711_v34 }
0x2f60   :  { %8198 = vmatmul.mubr.msk.f32.vlgmr.msra.gmra.mrb[88].mxu1 %vm1164_vm12, %v6834_v21  ;;  %v7494_v21 = vld [vmem:[%s10174_s0 + $0x468] ss:$0 sm:$0xff] }
0x2f61   :  { %8219 = vmatprep.mubr.msk.f32.mxu1 %vm8710_vm2, %v8709_v22 }
0x2fc2   :  { %v6404_v24 = vpop.f32.mrb[82].mxu1 }
0x2fc3   :  { %v8169_v25 = vpop.f32.mrb[83].mxu1 }
0x302b   :  { %v6572_v33 = vpop.f32.mrb[84].mxu1 }
0x302c   :  { %6913 = vrot.lane.b32.xlu0 %v6572_v33, %s8723_s5  ;;  %v8179_v35 = vpop.f32.mrb[85].mxu1 }
0x302f   :  { %v6740_v36 = vpop.f32.mrb[86].mxu1 }
0x3030   :  { %6917 = vrot.lane.b32.xlu1 %v6740_v36, %s8724_s6  ;;  %v8189_v37 = vpop.f32.mrb[87].mxu1 }
0x3033   :  { %v6908_v32 = vpop.f32.mrb[88].mxu1 }
0x3034   :  { %6921 = vrot.lane.b32.xlu0 %v6908_v32, %s8725_s7  ;;  %v8199_v38 = vpop.f32.mrb[89].mxu1 }
0x309e   :  { %v6914_v40 = vpop.permute.xlu0 %6913 }
0x309f   :  { %v6924_v15 = vsel %vm882_vm8, %v6404_v24, %v6914_v40  ;;  %v7496_v40 = vld [vmem:[%s10174_s0 + $0x470] ss:$0 sm:$0xff] }
0x30a2   :  { %v6918_v39 = vpop.permute.xlu1 %6917 }
0x30a3   :  { %v6925_v41 = vsel %vm1757_vm13, %v6924_v15, %v6918_v39  ;;  %v7497_v15 = vld [vmem:[%s10174_s0 + $0x478] ss:$0 sm:$0xff] }
0x30a6   :  { %v6922_v8 = vpop.permute.xlu0 %6921 }
0x30a7   :  { %v6926_v42 = vsel %vm1759_vm14, %v6925_v41, %v6922_v8 }
0x30a8   :  { %8209 = vmatmul.mubr.msk.f32.vlgmr.msra.gmra.mrb[70].mxu0 %vm993_vm10, %v6926_v42 }
0x30a9   :  { %8238 = vmatprep.mubr.msk.f32.mxu0 %vm8710_vm2, %v8709_v22  ;;  %v7035_v22 = vld [vmem:[%s10174_s0 + $0x400] sm:$0xff]  ;;  %8387 = vmatpush3.bf16.msra.mxu0 %v8386_v62 }
0x30aa   :  { %v8380_v57 = vpack.c.bf16 %v7036_v55, %v7035_v22  ;;  %8388 = vmatprep.subr.bf16.mxu0 %v8711_v34 }
0x30ac   :  { %8381 = vmatpush3.bf16.msra.mxu1 %v8380_v57 }
0x30ad   :  { %8382 = vmatprep.subr.bf16.mxu1 %v8711_v34  ;;  %8390 = vmatpush3.bf16.msra.mxu0 %v8389_v0 }
0x30ae   :  { %8391 = vmatprep.subr.bf16.mxu0 %v8711_v34 }
0x30b1   :  { %8393 = vmatpush3.bf16.msra.mxu0 %v8392_v4 }
0x30b2   :  { %8394 = vmatprep.subr.bf16.mxu0 %v8711_v34  ;;  %v7124_v34 = vld [vmem:[%s10174_s0 + $0x458] sm:$0xff] }
0x30b3   :  { %v8395_v16 = vpack.c.bf16 %v7125_v14, %v7124_v34 }
0x30b5   :  { %8396 = vmatpush3.bf16.msra.mxu0 %v8395_v16 }
0x317b   :  { %v7005_v47 = vpop.f32.mrb[70].mxu0 }
0x317c   :  { %v7006_v48 = vadd.f32 %v7488_v44, %v7005_v47  ;;  %v8210_v49 = vpop.f32.mrb[71].mxu0 }
0x317e   :  { %v7009_v51 = vadd.f32 %v7006_v48, %v9957_v43  ;;  %v7037_v43 = vld [vmem:[%s10174_s0 + $0x410] sm:$0xff] }
0x317f   :  { %v8383_v59 = vpack.c.bf16 %v7038_v58, %v7037_v43 }
0x3180   :  { %v7012_v56 = vsel %vm993_vm10, %v7009_v51, 0.0 }
0x3181   :  { %7013 = vadd.xlane.f32.xlu1 %v7012_v56  ;;  %8384 = vmatpush3.bf16.msra.mxu1 %v8383_v59 }
0x320e   :  { %v7014_v50 = vpop.xlane.xlu1 %7013 }
0x320f   :  { %v7015_v52 = vmul.f32 0.03125, %v7014_v50 }
0x3211   :  { %v7016_v17 = vsub.f32 %v7009_v51, %v7015_v52 }
0x3213   :  { %v7017_v53 = vmul.f32 %v7016_v17, %v7016_v17 }
0x3215   :  { %v7018_v54 = vsel %vm993_vm10, %v7017_v53, 0.0 }
0x3216   :  { %7019 = vadd.xlane.f32.xlu0 %v7018_v54 }
0x32a3   :  { %v7020_v6 = vpop.xlane.xlu0 %7019 }
0x32a4   :  { %v7021_v7 = vmul.f32 0.03125, %v7020_v6 }
0x32a6   :  { %v7022_v5 = vadd.f32 1e-06, %v7021_v7 }
0x32a8   :  { %8679 = vrsqrt.f32 %v7022_v5 }
0x32b2   :  { %v8680_v9 = vpop.eup %8679 }
0x32b3   :  { %v7024_v12 = vmul.f32 %v8680_v9, %v7016_v17 }
0x32b5   :  { %v7029_v11 = vmul.f32 %v7490_v10, %v7024_v12 }
0x32b7   :  { %v7034_v46 = vadd.f32 %v7491_v2, %v7029_v11 }
0x32b9   :  { %8220 = vmatmul.mubr.msk.f32.vlgmr.msra.gmra.mrb[90].mxu1 %vm993_vm10, %v7034_v46 }
0x338c   :  { %v7113_v13 = vpop.f32.mrb[90].mxu1 }
0x338d   :  { %v7114_v23 = vadd.f32 %v7492_v18, %v7113_v13  ;;  %v8221_v19 = vpop.f32.mrb[91].mxu1 }
0x338f   :  { %v7117_v20 = vmax.f32 %v7114_v23, 0.0 }
0x3391   :  { %8239 = vmatmul.mubr.msk.f32.vlgmr.msra.gmra.mrb[72].mxu0 %vm1965_vm15, %v7117_v20 }
0x3464   :  { %v7200_v24 = vpop.f32.mrb[72].mxu0 }
0x3465   :  { %v7201_v25 = vadd.f32 %v7494_v21, %v7200_v24  ;;  %v8240_v26 = vpop.f32.mrb[73].mxu0 }
0x3467   :  { %v7204_v27 = vadd.f32 %v7201_v25, %v7009_v51 }
0x3469   :  { %v7207_v28 = vsel %vm993_vm10, %v7204_v27, 0.0 }
0x346a   :  { %7208 = vadd.xlane.f32.xlu0 %v7207_v28 }
0x34f7   :  { %v7209_v29 = vpop.xlane.xlu0 %7208 }
0x34f8   :  { %v7210_v30 = vmul.f32 0.03125, %v7209_v29 }
0x34fa   :  { %v7211_v31 = vsub.f32 %v7204_v27, %v7210_v30 }
0x34fc   :  { %v7212_v33 = vmul.f32 %v7211_v31, %v7211_v31 }
0x34fe   :  { %v7213_v35 = vsel %vm993_vm10, %v7212_v33, 0.0 }
0x34ff   :  { %7214 = vadd.xlane.f32.xlu1 %v7213_v35 }
0x358c   :  { %v7215_v36 = vpop.xlane.xlu1 %7214 }
0x358d   :  { %v7216_v37 = vmul.f32 0.03125, %v7215_v36 }
0x358f   :  { %v7217_v32 = vadd.f32 1e-06, %v7216_v37 }
0x3591   :  { %8681 = vrsqrt.f32 %v7217_v32 }
0x359b   :  { %v8682_v38 = vpop.eup %8681 }
0x359c   :  { %v7219_v39 = vmul.f32 %v8682_v38, %v7211_v31 }
0x359e   :  { %v7224_v41 = vmul.f32 %v7496_v40, %v7219_v39 }
0x35a0   :  { %v7229_v8 = vadd.f32 %v7497_v15, %v7224_v41 }
0x35a2   :  { %7230 = vst.msk [vmem:[#allocation2] sm:$0xff] %vm993_vm10, %v7229_v8 }
0x35a3   :  { %8695 = shalt.err (!%p8692_p4)
}
0x35a4   :  { %s8696_s24 = scalar_lea.hbm %s10177_s3, 128 }
0x35a5   :  { %p8697_p5 = scmp.ne.s32.totalorder %s10177_s3, %s8696_s24  ;;  %p8700_p6 = scmp.lt.u32.totalorder %s8696_s24, %s10177_s3 }
0x35a7   :  { %p8702_p7 = pnand %p8700_p6, %p8697_p5 }
0x35a9   :  { %8705 = shalt.err (!%p8702_p7)
}
0x35aa   :  { %7240 = dma.vmem_to_hbm [thread:$0]  %s7238_s10, 128, %s10177_s3, [#allocation3]  }
0x35ab   :  { %8706 = dma.done.wait [#allocation3], 128  }
0x35ac   :  { %8707 = vsyncadd [#allocation3], 4294967168 }
0x35ad   :  { %7244 = vsyncpa [#allocation3], 1 }

</bundles_post_ra>
